<compile_context>
chip_gen: v7x
topology: tpu7x:2x2x1
jax: 0.10.0
libtpu: 0.0.40
codegen_flags: <defaults>
</compile_context>

<pallas_src>
import jax
import jax.numpy as jnp
from jax import lax
from jax.experimental import pallas as pl
from jax.experimental.pallas import tpu as pltpu

D_IN = 1024
D_OUT = 1024


def _pick_tile_n():
    # v7x has 2 TensorCores per chip: a "parallel" grid of 2 lets each core
    # stream one 512-wide half of W.  Single-TC chips (v5e/v6e): one grid
    # step avoids ~0.35us/step fixed overhead.  Fallback is always correct.
    try:
        kind = jax.devices()[0].device_kind.lower()
    except Exception:
        kind = ""
    if "v7" in kind or "7x" in kind:
        return 512
    return 1024


def mean_linear_kernel(x_ref, w_ref, b_ref, o_ref):
    # x_ref : (B, S, D_IN)    constant block index -> resident, DMA'd once
    # w_ref : (TILE_N, D_IN)  row tile of W (out, in) layout; D_IN lane-dense
    # b_ref : (1, TILE_N)     bias tile
    # o_ref : (B, TILE_N)     output tile (lane-dense, multiple of 128)
    #
    # Recompute the seq-mean every step: it is ~B*S*D_IN f32 adds on a resident
    # 64 KiB block (VPU slots are otherwise idle), and having no cross-step
    # scratch keeps the grid axis safely "parallel" on multi-core chips.
    xm = jnp.mean(x_ref[...].astype(jnp.float32), axis=1)            # (B, D_IN)
    w = w_ref[...]
    # bf16 W path: bf16 x bf16 on the MXU with f32 accumulation.
    lhs = xm.astype(w.dtype) if w.dtype == jnp.bfloat16 else xm
    # Transposed-RHS matmul: contract D_IN of xm (dim 1) with D_IN of the W
    # tile (dim 1) directly on the MXU -- no XLU/VMEM transpose copy of W and
    # the output keeps TILE_N (not B) as the lane-dense last dim.
    acc = lax.dot_general(
        lhs, w,
        dimension_numbers=(((1,), (1,)), ((), ())),
        preferred_element_type=jnp.float32,
    )                                                                 # (B, TILE_N)
    o_ref[...] = (acc + b_ref[...].astype(jnp.float32)).astype(o_ref.dtype)


def mean_linear(x, w, b, *, tile_n=None):
    """Computes mean(x, axis=1) @ W.T + b with W in nn.Linear (D_OUT, D_IN) layout.

    W may be float32 or bfloat16 (bf16 halves HBM traffic of the dominant
    weight stream); accumulation is float32 either way.
    """
    B, S, D = x.shape
    assert D == D_IN and w.shape == (D_OUT, D_IN) and b.shape == (D_OUT,)
    if tile_n is None:
        tile_n = _pick_tile_n()
    assert D_OUT % tile_n == 0 and tile_n % 128 == 0
    b2 = b.reshape(1, D_OUT)  # cheap reshape, not a transpose copy
    grid = (D_OUT // tile_n,)

    bytes_accessed = (
        w.size * w.dtype.itemsize
        + x.size * x.dtype.itemsize
        + b.size * b.dtype.itemsize
        + B * D_OUT * x.dtype.itemsize
    )
    cost = pl.CostEstimate(
        flops=2 * B * D_IN * D_OUT + B * S * D_IN,
        transcendentals=0,
        bytes_accessed=bytes_accessed,
    )

    return pl.pallas_call(
        mean_linear_kernel,
        out_shape=jax.ShapeDtypeStruct((B, D_OUT), x.dtype),
        grid_spec=pltpu.PrefetchScalarGridSpec(
            num_scalar_prefetch=0,
            grid=grid,
            in_specs=[
                pl.BlockSpec((B, S, D_IN), lambda j: (0, 0, 0)),   # x: resident
                pl.BlockSpec((tile_n, D_IN), lambda j: (j, 0)),    # W row tile
                pl.BlockSpec((1, tile_n), lambda j: (0, j)),       # bias tile
            ],
            out_specs=pl.BlockSpec((B, tile_n), lambda j: (0, j)),
        ),
        # No cross-step state -> safe to shard the tile axis across cores.
        compiler_params=pltpu.CompilerParams(
            dimension_semantics=("parallel",)),
        cost_estimate=cost,
    )(x, w, b2)


def reference(x, w, b):
    return jnp.mean(x, axis=1) @ w.T + b


if __name__ == "__main__":
    key = jax.random.PRNGKey(0)
    kx, kw, kb = jax.random.split(key, 3)

    B, S = 2, 8
    x = jax.random.normal(kx, (B, S, D_IN), dtype=jnp.float32)

    # Deterministic "Linear(1024, 1024)" params in native (out, in) layout.
    bound = 1.0 / (D_IN ** 0.5)
    W = jax.random.uniform(kw, (D_OUT, D_IN), jnp.float32, -bound, bound)
    b = jax.random.uniform(kb, (D_OUT,), jnp.float32, -bound, bound)

    ref = reference(x, W, b)

    # Exact module semantics: f32 weights.
    out = jax.block_until_ready(mean_linear(x, W, b))
    assert out.shape == (B, D_OUT)
    assert jnp.allclose(out, ref, atol=1e-4, rtol=1e-4)

    # Perf-review path: bf16 weight stream (half HBM bytes), f32 accumulation.
    out_bf16 = jax.block_until_ready(mean_linear(x, W.astype(jnp.bfloat16), b))
    assert out_bf16.shape == (B, D_OUT)
    assert jnp.allclose(out_bf16, ref, atol=3e-2, rtol=3e-2)

    print("KERNEL_OK")
</pallas_src>

<mosaic_0001>
module attributes {stable_mosaic.version = 11 : i64} {
  func.func @mean_linear_kernel(%arg0: i32, %arg1: memref<2x8x1024xf32, #tpu.memory_space<vmem>>, %arg2: memref<1024x1024xf32, #tpu.memory_space<vmem>>, %arg3: memref<1x1024xf32, #tpu.memory_space<vmem>>, %arg4: memref<2x1024xf32, #tpu.memory_space<vmem>>) attributes {dimension_semantics = [#tpu.dimension_semantics<parallel>], iteration_bounds = array<i64: 1>, scalar_prefetch = 0 : i64, scratch_operands = 0 : i64, tpu.core_type = #tpu.core_type<tc>, window_params = [{pipeline_mode = #tpu.pipeline_mode<synchronous>, transform_indices = @transform_0, window_bounds = array<i64: 2, 8, 1024>}, {transform_indices = @transform_1, window_bounds = array<i64: 1024, 1024>}, {transform_indices = @transform_2, window_bounds = array<i64: 1, 1024>}, {transform_indices = @transform_3, window_bounds = array<i64: 2, 1024>}]} {
    %c0 = arith.constant 0 : index
    %c0_0 = arith.constant 0 : index
    %c0_1 = arith.constant 0 : index
    %0 = vector.load %arg1[%c0, %c0_0, %c0_1] : memref<2x8x1024xf32, #tpu.memory_space<vmem>>, vector<2x8x1024xf32>
    %cst = arith.constant dense<0.000000e+00> : vector<2x1024xf32>
    %1 = vector.multi_reduction <add>, %0, %cst [1] : vector<2x8x1024xf32> to vector<2x1024xf32>
    %cst_2 = arith.constant 8.000000e+00 : f32
    %2 = vector.broadcast %cst_2 : f32 to vector<2x1024xf32>
    %3 = arith.divf %1, %2 : vector<2x1024xf32>
    %c0_3 = arith.constant 0 : index
    %c0_4 = arith.constant 0 : index
    %4 = vector.load %arg2[%c0_3, %c0_4] : memref<1024x1024xf32, #tpu.memory_space<vmem>>, vector<1024x1024xf32>
    %cst_5 = arith.constant dense<0.000000e+00> : vector<2x1024xf32>
    %5 = tpu.matmul %3, %4, %cst_5 {dimension_numbers = #tpu.dot_dimension_numbers<[1], [1], [0], [0], [0, 0, 1, 0], [], []>} : vector<2x1024xf32>, vector<1024x1024xf32>, vector<2x1024xf32> -> vector<2x1024xf32>
    %c0_6 = arith.constant 0 : index
    %c0_7 = arith.constant 0 : index
    %6 = vector.load %arg3[%c0_6, %c0_7] : memref<1x1024xf32, #tpu.memory_space<vmem>>, vector<1x1024xf32>
    %7 = vector.broadcast %6 : vector<1x1024xf32> to vector<2x1024xf32>
    %8 = arith.addf %5, %7 : vector<2x1024xf32>
    %c0_8 = arith.constant 0 : index
    %c0_9 = arith.constant 0 : index
    %9 = vector.load %arg4[%c0_8, %c0_9] : memref<2x1024xf32, #tpu.memory_space<vmem>>, vector<2x1024xf32>
    tpu.vector_store %arg4[%c0_8, %c0_9], %8 {strides = array<i32>} : memref<2x1024xf32, #tpu.memory_space<vmem>>, vector<2x1024xf32>,
    return
  }
  func.func @transform_0(%arg0: i32) -> (i32, i32, i32) {
    %c0_i32 = arith.constant 0 : i32
    %c0_i32_0 = arith.constant 0 : i32
    %c0_i32_1 = arith.constant 0 : i32
    %c0_i32_2 = arith.constant 0 : i32
    return %c0_i32, %c0_i32_0, %c0_i32_1 : i32, i32, i32
  }
  func.func @transform_1(%arg0: i32) -> (i32, i32) {
    %c0_i32 = arith.constant 0 : i32
    %c0_i32_0 = arith.constant 0 : i32
    return %arg0, %c0_i32 : i32, i32
  }
  func.func @transform_2(%arg0: i32) -> (i32, i32) {
    %c0_i32 = arith.constant 0 : i32
    %c0_i32_0 = arith.constant 0 : i32
    return %c0_i32, %arg0 : i32, i32
  }
  func.func @transform_3(%arg0: i32) -> (i32, i32) {
    %c0_i32 = arith.constant 0 : i32
    %c0_i32_0 = arith.constant 0 : i32
    return %c0_i32, %arg0 : i32, i32
  }
}

</mosaic_0001>

<bundles_post_ra>
// kernel: tpu_custom_call.1
= control target key start
LH: loop header
LB: loop body
LE: loop exit
PB: predicated region body
PF: predicated region fallthrough
CT: control target
= control target key end

     0   :  { %8 = vsyncpa [#allocation3], 0  ;;  %s3793_s0 = inlined_call_operand.hbm [shape: f32[2,8,1024], index: 0, kind: input, shape index: {}]   ;;  %s3794_s1 = inlined_call_operand.hbm [shape: f32[1024,1024], index: 1, kind: input, shape index: {}]   ;;  %s3795_s2 = inlined_call_operand.hbm [shape: f32[1,1024], index: 2, kind: input, shape index: {}]   ;;  %s3796_s3 = inlined_call_operand.hbm [shape: f32[2,1024], index: 3, kind: output, shape index: {}]  }
   0x1   :  { %9 = vsyncpa [#allocation6], 0 }
   0x2   :  { %10 = vsyncpa [#allocation4], 0  ;;  %s3638_s12 = smov [#allocation5]   ;;  %s3639_s14 = smov [#allocation2]  }
   0x3   :  { %s28_s13 = sshll.u32 %s3638_s12, 4  ;;  %s16_s15 = sshll.u32 %s3639_s14, 4  ;;  %s29_s13 = int_to_ptr.vmem [resolvable:$true] %s28_s13  ;;  %s3665_s15 = int_to_ptr.vmem [resolvable:$true] %s16_s15 }
   0x4   :  { %s3544_s18 = scalar_lea.hbm %s3794_s1, 131072 }
   0x5   :  { %p3545_p0 = scmp.ne.s32.totalorder %s3794_s1, %s3544_s18  ;;  %p3548_p1 = scmp.lt.u32.totalorder %s3544_s18, %s3794_s1 }
   0x7   :  { %p3550_p2 = pnand %p3548_p1, %p3545_p0 }
   0x9   :  { %3553 = shalt.err (!%p3550_p2)
}
   0xa   :  { %s3554_s23 = scalar_lea.vmem %s29_s13, 131072  ;;  %p3559_p4 = scmp.lt.s32.totalorder %s29_s13, %s29_s13 }
   0xb   :  { %p3555_p3 = scmp.ne.s32.totalorder %s29_s13, %s3554_s23  ;;  %p3560_p5 = scmp.lt.s32.totalorder %s3554_s23, %s3554_s23 }
   0xd   :  { %p3561_p6 = por %p3560_p5, %p3559_p4 }
   0xf   :  { %p3562_p7 = pnand %p3561_p6, %p3555_p3 }
  0x11   :  { %3565 = shalt.err (!%p3562_p7)
}
  0x12   :  { %s3640_s24 = smov 1024   ;;  %s3641_s25 = smov 64  }
  0x13   :  { %34 = dma.hbm_to_vmem [thread:$0]  %s3794_s1, 131072, %s29_s13, [#allocation6], %s3640_s24, %s3640_s24, %s3641_s25  }
  0x14   :  { %s3566_s30 = scalar_lea.hbm %s3793_s0, 2048 }
  0x15   :  { %p3567_p8 = scmp.ne.s32.totalorder %s3793_s0, %s3566_s30  ;;  %p3570_p9 = scmp.lt.u32.totalorder %s3566_s30, %s3793_s0 }
  0x17   :  { %p3572_p10 = pnand %p3570_p9, %p3567_p8 }
  0x19   :  { %3575 = shalt.err (!%p3572_p10)
}
  0x1a   :  { %s3576_s8 = scalar_lea.vmem %s3665_s15, 2048  ;;  %p3581_p12 = scmp.lt.s32.totalorder %s3665_s15, %s3665_s15 }
  0x1b   :  { %p3577_p11 = scmp.ne.s32.totalorder %s3665_s15, %s3576_s8  ;;  %p3582_p13 = scmp.lt.s32.totalorder %s3576_s8, %s3576_s8 }
  0x1d   :  { %p3583_p0 = por %p3582_p13, %p3581_p12 }
  0x1f   :  { %p3584_p1 = pnand %p3583_p0, %p3577_p11 }
  0x21   :  { %3587 = shalt.err (!%p3584_p1)
}
  0x22   :  { %22 = dma.hbm_to_vmem [thread:$0]  %s3793_s0, 2048, %s3665_s15, [#allocation3], %s3640_s24, %s3640_s24, %s3641_s25  }
  0x23   :  { %s3642_s10 = smov [#allocation7]   ;;  %s3588_s14 = scalar_lea.hbm %s3795_s2, 128 }
  0x24   :  { %s41_s11 = sshll.u32 %s3642_s10, 4  ;;  %p3589_p2 = scmp.ne.s32.totalorder %s3795_s2, %s3588_s14  ;;  %s42_s11 = int_to_ptr.vmem [resolvable:$true] %s41_s11 }
  0x25   :  { %p3592_p3 = scmp.lt.u32.totalorder %s3588_s14, %s3795_s2 }
  0x27   :  { %p3594_p4 = pnand %p3592_p3, %p3589_p2 }
  0x29   :  { %3597 = shalt.err (!%p3594_p4)
}
  0x2a   :  { %s3598_s20 = scalar_lea.vmem %s42_s11, 128  ;;  %p3603_p6 = scmp.lt.s32.totalorder %s42_s11, %s42_s11 }
  0x2b   :  { %p3599_p5 = scmp.ne.s32.totalorder %s42_s11, %s3598_s20  ;;  %p3604_p7 = scmp.lt.s32.totalorder %s3598_s20, %s3598_s20 }
  0x2d   :  { %p3605_p8 = por %p3604_p7, %p3603_p6 }
  0x2f   :  { %p3606_p9 = pnand %p3605_p8, %p3599_p5 }
  0x31   :  { %3609 = shalt.err (!%p3606_p9)
}
  0x32   :  { %44 = dma.hbm_to_vmem [thread:$0]  %s3795_s2, 128, %s42_s11, [#allocation6]  }
  0x33   :  { %3632 = dma.done.wait [#allocation3], 2048  }
  0x34   :  { %3633 = vsyncadd [#allocation3], 4294965248 }
  0x35   :  { %3634 = dma.done.wait [#allocation6], 131200  }
  0x36   :  { %3635 = vsyncadd [#allocation6], 4294836096  ;;  %v184_v0 = vld [vmem:[#allocation5 + $0x8] sm:$0xff]  ;;  %v183_v5 = vld [vmem:[#allocation5] sm:$0xff]  ;;  %vm1265_vm0 = vcmask 1041409   ;;  %s3644_s2 = smov [#allocation8]  }
  0x37   :  { %v192_v1 = vld [vmem:[#allocation5 + $0x48] sm:$0xff]  ;;  %v191_v6 = vld [vmem:[#allocation5 + $0x40] sm:$0xff]  ;;  %s2470_s21 = sshll.u32 %s3644_s2, 4  ;;  %s2471_s21 = int_to_ptr.vmem [resolvable:$true] %s2470_s21 }
  0x38   :  { %v440_v2 = vld [vmem:[#allocation5 + $0x808] sm:$0xff]  ;;  %v2480_v3 = vpack.c.bf16 %v192_v1, %v184_v0  ;;  %v2482_v8 = vpack.c.bf16 %v191_v6, %v183_v5  ;;  %v439_v9 = vld [vmem:[#allocation5 + $0x800] sm:$0xff]  ;;  %s3610_s22 = scalar_lea.vmem %s2471_s21, 256  ;;  %p3615_p11 = scmp.lt.s32.totalorder %s2471_s21, %s2471_s21 }
  0x39   :  { %v448_v4 = vld [vmem:[#allocation5 + $0x848] sm:$0xff]  ;;  %v447_v10 = vld [vmem:[#allocation5 + $0x840] sm:$0xff]  ;;  %p3611_p10 = scmp.ne.s32.totalorder %s2471_s21, %s3610_s22  ;;  %p3616_p12 = scmp.lt.s32.totalorder %s3610_s22, %s3610_s22 }
  0x3a   :  { %v2736_v7 = vpack.c.bf16 %v448_v4, %v440_v2  ;;  %v200_v11 = vld [vmem:[#allocation5 + $0x88] sm:$0xff]  ;;  %2481 = vmatprep.subr.bf16.mxu0 %v2480_v3  ;;  %v2738_v12 = vpack.c.bf16 %v447_v10, %v439_v9  ;;  %v199_v18 = vld [vmem:[#allocation5 + $0x80] sm:$0xff] }
  0x3b   :  { %v208_v13 = vld [vmem:[#allocation5 + $0xc8] sm:$0xff]  ;;  %2483 = vmatpush1.bf16.xpose.msra.mxu0 %v2482_v8  ;;  %v207_v19 = vld [vmem:[#allocation5 + $0xc0] sm:$0xff]  ;;  %p3617_p13 = por %p3616_p12, %p3615_p11 }
  0x3c   :  { %v456_v14 = vld [vmem:[#allocation5 + $0x888] sm:$0xff]  ;;  %2737 = vmatprep.subr.bf16.mxu1 %v2736_v7  ;;  %v2484_v16 = vpack.c.bf16 %v208_v13, %v200_v11  ;;  %v455_v20 = vld [vmem:[#allocation5 + $0x880] sm:$0xff]  ;;  %v2486_v26 = vpack.c.bf16 %v207_v19, %v199_v18 }
  0x3d   :  { %v464_v15 = vld [vmem:[#allocation5 + $0x8c8] sm:$0xff]  ;;  %2739 = vmatpush1.bf16.xpose.msra.mxu1 %v2738_v12  ;;  %v463_v21 = vld [vmem:[#allocation5 + $0x8c0] sm:$0xff]  ;;  %p3618_p0 = pnand %p3617_p13, %p3611_p10 }
  0x3e   :  { %v2740_v17 = vpack.c.bf16 %v464_v15, %v456_v14  ;;  %2485 = vmatprep.subr.bf16.mxu0 %v2484_v16  ;;  %v216_v22 = vld [vmem:[#allocation5 + $0x108] sm:$0xff]  ;;  %v2742_v27 = vpack.c.bf16 %v463_v21, %v455_v20  ;;  %v215_v30 = vld [vmem:[#allocation5 + $0x100] sm:$0xff] }
  0x3f   :  { %v224_v23 = vld [vmem:[#allocation5 + $0x148] sm:$0xff]  ;;  %v223_v31 = vld [vmem:[#allocation5 + $0x140] sm:$0xff] }
  0x40   :  { %2741 = vmatprep.subr.bf16.mxu1 %v2740_v17  ;;  %v472_v24 = vld [vmem:[#allocation5 + $0x908] sm:$0xff]  ;;  %v2488_v28 = vpack.c.bf16 %v224_v23, %v216_v22  ;;  %v471_v32 = vld [vmem:[#allocation5 + $0x900] sm:$0xff]  ;;  %v2490_v38 = vpack.c.bf16 %v223_v31, %v215_v30 }
  0x41   :  { %v480_v25 = vld [vmem:[#allocation5 + $0x948] sm:$0xff]  ;;  %v479_v33 = vld [vmem:[#allocation5 + $0x940] sm:$0xff] }
  0x42   :  { %v2744_v29 = vpack.c.bf16 %v480_v25, %v472_v24  ;;  %v232_v34 = vld [vmem:[#allocation5 + $0x188] sm:$0xff]  ;;  %v2746_v39 = vpack.c.bf16 %v479_v33, %v471_v32  ;;  %v231_v42 = vld [vmem:[#allocation5 + $0x180] sm:$0xff] }
  0x43   :  { %2487 = vmatpush1.bf16.xpose.msra.mxu0 %v2486_v26  ;;  %v240_v35 = vld [vmem:[#allocation5 + $0x1c8] sm:$0xff]  ;;  %v239_v43 = vld [vmem:[#allocation5 + $0x1c0] sm:$0xff] }
  0x44   :  { %2489 = vmatprep.subr.bf16.mxu0 %v2488_v28  ;;  %v488_v36 = vld [vmem:[#allocation5 + $0x988] sm:$0xff]  ;;  %v2492_v40 = vpack.c.bf16 %v240_v35, %v232_v34  ;;  %v487_v44 = vld [vmem:[#allocation5 + $0x980] sm:$0xff]  ;;  %v2494_v50 = vpack.c.bf16 %v239_v43, %v231_v42 }
  0x45   :  { %2743 = vmatpush1.bf16.xpose.msra.mxu1 %v2742_v27  ;;  %v496_v37 = vld [vmem:[#allocation5 + $0x9c8] sm:$0xff]  ;;  %v495_v45 = vld [vmem:[#allocation5 + $0x9c0] sm:$0xff] }
  0x46   :  { %2745 = vmatprep.subr.bf16.mxu1 %v2744_v29  ;;  %v2748_v41 = vpack.c.bf16 %v496_v37, %v488_v36  ;;  %v248_v46 = vld [vmem:[#allocation5 + $0x208] sm:$0xff]  ;;  %v2750_v51 = vpack.c.bf16 %v495_v45, %v487_v44  ;;  %v247_v54 = vld [vmem:[#allocation5 + $0x200] sm:$0xff] }
  0x47   :  { %v256_v47 = vld [vmem:[#allocation5 + $0x248] sm:$0xff]  ;;  %v255_v55 = vld [vmem:[#allocation5 + $0x240] sm:$0xff] }
  0x48   :  { %v504_v48 = vld [vmem:[#allocation5 + $0xa08] sm:$0xff]  ;;  %v2496_v52 = vpack.c.bf16 %v256_v47, %v248_v46  ;;  %v503_v56 = vld [vmem:[#allocation5 + $0xa00] sm:$0xff]  ;;  %v2498_v62 = vpack.c.bf16 %v255_v55, %v247_v54 }
  0x49   :  { %v512_v49 = vld [vmem:[#allocation5 + $0xa48] sm:$0xff]  ;;  %v511_v57 = vld [vmem:[#allocation5 + $0xa40] sm:$0xff] }
  0x4a   :  { %v2752_v53 = vpack.c.bf16 %v512_v49, %v504_v48  ;;  %v264_v58 = vld [vmem:[#allocation5 + $0x288] sm:$0xff]  ;;  %v2754_v63 = vpack.c.bf16 %v511_v57, %v503_v56  ;;  %v263_v2 = vld [vmem:[#allocation5 + $0x280] sm:$0xff] }
  0x4b   :  { %2491 = vmatpush1.bf16.xpose.msra.mxu0 %v2490_v38  ;;  %v272_v59 = vld [vmem:[#allocation5 + $0x2c8] sm:$0xff]  ;;  %v271_v3 = vld [vmem:[#allocation5 + $0x2c0] sm:$0xff] }
  0x4c   :  { %2493 = vmatprep.subr.bf16.mxu0 %v2492_v40  ;;  %v520_v60 = vld [vmem:[#allocation5 + $0xa88] sm:$0xff]  ;;  %v2500_v0 = vpack.c.bf16 %v272_v59, %v264_v58  ;;  %v519_v4 = vld [vmem:[#allocation5 + $0xa80] sm:$0xff]  ;;  %v2502_v10 = vpack.c.bf16 %v271_v3, %v263_v2 }
  0x4d   :  { %2747 = vmatpush1.bf16.xpose.msra.mxu1 %v2746_v39  ;;  %v528_v61 = vld [vmem:[#allocation5 + $0xac8] sm:$0xff]  ;;  %v527_v5 = vld [vmem:[#allocation5 + $0xac0] sm:$0xff] }
  0x4e   :  { %2749 = vmatprep.subr.bf16.mxu1 %v2748_v41  ;;  %v2756_v1 = vpack.c.bf16 %v528_v61, %v520_v60  ;;  %v280_v6 = vld [vmem:[#allocation5 + $0x308] sm:$0xff]  ;;  %v2758_v11 = vpack.c.bf16 %v527_v5, %v519_v4  ;;  %v279_v18 = vld [vmem:[#allocation5 + $0x300] sm:$0xff] }
  0x4f   :  { %v288_v7 = vld [vmem:[#allocation5 + $0x348] sm:$0xff]  ;;  %v287_v19 = vld [vmem:[#allocation5 + $0x340] sm:$0xff] }
  0x50   :  { %v536_v8 = vld [vmem:[#allocation5 + $0xb08] sm:$0xff]  ;;  %v2504_v12 = vpack.c.bf16 %v288_v7, %v280_v6  ;;  %v535_v20 = vld [vmem:[#allocation5 + $0xb00] sm:$0xff]  ;;  %v2506_v29 = vpack.c.bf16 %v287_v19, %v279_v18 }
  0x51   :  { %v544_v9 = vld [vmem:[#allocation5 + $0xb48] sm:$0xff]  ;;  %v543_v22 = vld [vmem:[#allocation5 + $0xb40] sm:$0xff] }
  0x52   :  { %v2760_v13 = vpack.c.bf16 %v544_v9, %v536_v8  ;;  %v55_v14 = vld [vmem:[#allocation2 + $0x8] sm:$0xff]  ;;  %v2762_v31 = vpack.c.bf16 %v543_v22, %v535_v20  ;;  %v295_v38 = vld [vmem:[#allocation5 + $0x380] sm:$0xff] }
  0x53   :  { %2495 = vmatpush1.bf16.xpose.msra.mxu0 %v2494_v50  ;;  %v63_v15 = vld [vmem:[#allocation2 + $0x48] sm:$0xff]  ;;  %v76_v16 = vrot.slane %v55_v14, 4  ;;  %v303_v39 = vld [vmem:[#allocation5 + $0x3c0] sm:$0xff] }
  0x54   :  { %2497 = vmatprep.subr.bf16.mxu0 %v2496_v52  ;;  %v124_v17 = vrot.slane %v63_v15, 4  ;;  %v296_v23 = vld [vmem:[#allocation5 + $0x388] sm:$0xff]  ;;  %v551_v40 = vld [vmem:[#allocation5 + $0xb80] sm:$0xff]  ;;  %v2510_v49 = vpack.c.bf16 %v303_v39, %v295_v38 }
  0x55   :  { %2751 = vmatpush1.bf16.xpose.msra.mxu1 %v2750_v51  ;;  %v77_v21 = vadd.f32 %v76_v16, %v55_v14  ;;  %v304_v24 = vld [vmem:[#allocation5 + $0x3c8] sm:$0xff]  ;;  %v559_v42 = vld [vmem:[#allocation5 + $0xbc0] sm:$0xff] }
  0x56   :  { %2753 = vmatprep.subr.bf16.mxu1 %v2752_v53  ;;  %v125_v25 = vadd.f32 %v124_v17, %v63_v15  ;;  %v552_v26 = vld [vmem:[#allocation5 + $0xb88] sm:$0xff]  ;;  %v2508_v32 = vpack.c.bf16 %v304_v24, %v296_v23  ;;  %v2766_v51 = vpack.c.bf16 %v559_v42, %v551_v40  ;;  %v311_v55 = vld [vmem:[#allocation5 + $0x400] sm:$0xff] }
  0x57   :  { %v560_v27 = vld [vmem:[#allocation5 + $0xbc8] sm:$0xff]  ;;  %v78_v28 = vrot.slane %v77_v21, 2  ;;  %v319_v56 = vld [vmem:[#allocation5 + $0x440] sm:$0xff] }
  0x58   :  { %v126_v30 = vrot.slane %v125_v25, 2  ;;  %v2764_v34 = vpack.c.bf16 %v560_v27, %v552_v26  ;;  %v312_v43 = vld [vmem:[#allocation5 + $0x408] sm:$0xff]  ;;  %v567_v57 = vld [vmem:[#allocation5 + $0xc00] sm:$0xff] }
  0x59   :  { %v79_v33 = vadd.f32 %v78_v28, %v77_v21  ;;  %v320_v44 = vld [vmem:[#allocation5 + $0x448] sm:$0xff]  ;;  %v575_v58 = vld [vmem:[#allocation5 + $0xc40] sm:$0xff] }
  0x5a   :  { %v127_v35 = vadd.f32 %v126_v30, %v125_v25  ;;  %v568_v46 = vld [vmem:[#allocation5 + $0xc08] sm:$0xff]  ;;  %v2512_v52 = vpack.c.bf16 %v320_v44, %v312_v43  ;;  %v327_v3 = vld [vmem:[#allocation5 + $0x480] sm:$0xff] }
  0x5b   :  { %2499 = vmatpush1.bf16.xpose.msra.mxu0 %v2498_v62  ;;  %v80_v36 = vrot.slane %v79_v33, 1  ;;  %v576_v47 = vld [vmem:[#allocation5 + $0xc48] sm:$0xff]  ;;  %v335_v4 = vld [vmem:[#allocation5 + $0x4c0] sm:$0xff] }
  0x5c   :  { %2501 = vmatprep.subr.bf16.mxu0 %v2500_v0  ;;  %v128_v37 = vrot.slane %v127_v35, 1  ;;  %v2768_v53 = vpack.c.bf16 %v576_v47, %v568_v46  ;;  %v328_v59 = vld [vmem:[#allocation5 + $0x488] sm:$0xff]  ;;  %v2770_v0 = vpack.c.bf16 %v575_v58, %v567_v57  ;;  %v583_v5 = vld [vmem:[#allocation5 + $0xc80] sm:$0xff] }
  0x5d   :  { %2755 = vmatpush1.bf16.xpose.msra.mxu1 %v2754_v63  ;;  %v81_v41 = vadd.f32 %v80_v36, %v79_v33  ;;  %v336_v60 = vld [vmem:[#allocation5 + $0x4c8] sm:$0xff]  ;;  %v2514_v63 = vpack.c.bf16 %v319_v56, %v311_v55  ;;  %v591_v6 = vld [vmem:[#allocation5 + $0xcc0] sm:$0xff] }
  0x5e   :  { %2757 = vmatprep.subr.bf16.mxu1 %v2756_v1  ;;  %v129_v45 = vadd.f32 %v128_v37, %v127_v35  ;;  %v584_v61 = vld [vmem:[#allocation5 + $0xc88] sm:$0xff]  ;;  %v2516_v1 = vpack.c.bf16 %v336_v60, %v328_v59  ;;  %v343_v15 = vld [vmem:[#allocation5 + $0x500] sm:$0xff] }
  0x5f   :  { %v168_v48 = vmul.f32 0.125, %v81_v41  ;;  %v592_v62 = vld [vmem:[#allocation5 + $0xcc8] sm:$0xff]  ;;  %v351_v16 = vld [vmem:[#allocation5 + $0x540] sm:$0xff] }
  0x60   :  { %v176_v50 = vmul.f32 0.125, %v129_v45  ;;  %v2772_v2 = vpack.c.bf16 %v592_v62, %v584_v61  ;;  %v344_v7 = vld [vmem:[#allocation5 + $0x508] sm:$0xff]  ;;  %v599_v17 = vld [vmem:[#allocation5 + $0xd00] sm:$0xff]  ;;  %v2522_v23 = vpack.c.bf16 %v351_v16, %v343_v15 }
  0x61   :  { %v352_v8 = vld [vmem:[#allocation5 + $0x548] sm:$0xff]  ;;  %v607_v18 = vld [vmem:[#allocation5 + $0xd40] sm:$0xff] }
  0x62   :  { %v3709_v54 = vsel %vm1265_vm0, %v176_v50, %v168_v48  ;;  %v600_v9 = vld [vmem:[#allocation5 + $0xd08] sm:$0xff]  ;;  %v2778_v24 = vpack.c.bf16 %v607_v18, %v599_v17  ;;  %v359_v27 = vld [vmem:[#allocation5 + $0x580] sm:$0xff] }
  0x63   :  { %2503 = vmatpush1.bf16.xpose.msra.mxu0 %v2502_v10  ;;  %1346 = vmatprep.mubr.f32.mxu0 %v3709_v54  ;;  %v608_v10 = vld [vmem:[#allocation5 + $0xd48] sm:$0xff]  ;;  %v367_v28 = vld [vmem:[#allocation5 + $0x5c0] sm:$0xff] }
  0x64   :  { %2505 = vmatprep.subr.bf16.mxu0 %v2504_v12  ;;  %1630 = vmatprep.mubr.f32.mxu1 %v3709_v54  ;;  %v2774_v12 = vpack.c.bf16 %v591_v6, %v583_v5  ;;  %v2776_v14 = vpack.c.bf16 %v608_v10, %v600_v9  ;;  %v360_v19 = vld [vmem:[#allocation5 + $0x588] sm:$0xff]  ;;  %v623_v30 = vld [vmem:[#allocation5 + $0xdc0] sm:$0xff]  ;;  %v2526_v35 = vpack.c.bf16 %v367_v28, %v359_v27 }
  0x65   :  { %2759 = vmatpush1.bf16.xpose.msra.mxu1 %v2758_v11  ;;  %v2518_v11 = vpack.c.bf16 %v335_v4, %v327_v3  ;;  %v368_v20 = vld [vmem:[#allocation5 + $0x5c8] sm:$0xff]  ;;  %v375_v39 = vld [vmem:[#allocation5 + $0x600] sm:$0xff] }
  0x66   :  { %2761 = vmatprep.subr.bf16.mxu1 %v2760_v13  ;;  %v2520_v13 = vpack.c.bf16 %v352_v8, %v344_v7  ;;  %v616_v21 = vld [vmem:[#allocation5 + $0xd88] sm:$0xff]  ;;  %v2524_v25 = vpack.c.bf16 %v368_v20, %v360_v19  ;;  %v383_v40 = vld [vmem:[#allocation5 + $0x640] sm:$0xff] }
  0x67   :  { %v624_v22 = vld [vmem:[#allocation5 + $0xdc8] sm:$0xff]  ;;  %v631_v41 = vld [vmem:[#allocation5 + $0xe00] sm:$0xff]  ;;  %v2530_v47 = vpack.c.bf16 %v383_v40, %v375_v39 }
  0x68   :  { %v2780_v26 = vpack.c.bf16 %v624_v22, %v616_v21  ;;  %v632_v33 = vld [vmem:[#allocation5 + $0xe08] sm:$0xff]  ;;  %v639_v42 = vld [vmem:[#allocation5 + $0xe40] sm:$0xff] }
  0x69   :  { %v392_v43 = vld [vmem:[#allocation5 + $0x688] sm:$0xff]  ;;  %v2786_v48 = vpack.c.bf16 %v639_v42, %v631_v41  ;;  %v54_v50 = vld [vmem:[#allocation2] sm:$0xff] }
  0x6a   :  { %v400_v44 = vld [vmem:[#allocation5 + $0x6c8] sm:$0xff]  ;;  %v391_v56 = vld [vmem:[#allocation5 + $0x680] sm:$0xff] }
  0x6b   :  { %2507 = vmatpush1.bf16.xpose.msra.mxu0 %v2506_v29  ;;  %v615_v29 = vld [vmem:[#allocation5 + $0xd80] sm:$0xff]  ;;  %v648_v45 = vld [vmem:[#allocation5 + $0xe88] sm:$0xff] }
  0x6c   :  { %2509 = vmatprep.subr.bf16.mxu0 %v2508_v32  ;;  %v384_v32 = vld [vmem:[#allocation5 + $0x648] sm:$0xff]  ;;  %v2782_v36 = vpack.c.bf16 %v623_v30, %v615_v29  ;;  %v399_v57 = vld [vmem:[#allocation5 + $0x6c0] sm:$0xff] }
  0x6d   :  { %2763 = vmatpush1.bf16.xpose.msra.mxu1 %v2762_v31  ;;  %v376_v31 = vld [vmem:[#allocation5 + $0x608] sm:$0xff]  ;;  %v647_v58 = vld [vmem:[#allocation5 + $0xe80] sm:$0xff] }
  0x6e   :  { %2765 = vmatprep.subr.bf16.mxu1 %v2764_v34  ;;  %v640_v34 = vld [vmem:[#allocation5 + $0xe48] sm:$0xff]  ;;  %v2528_v37 = vpack.c.bf16 %v384_v32, %v376_v31  ;;  %v655_v59 = vld [vmem:[#allocation5 + $0xec0] sm:$0xff]  ;;  %v186_v32 = vld [vmem:[#allocation5 + $0x18] sm:$0xff] }
  0x6f   :  { %v2784_v38 = vpack.c.bf16 %v640_v34, %v632_v33  ;;  %v656_v46 = vld [vmem:[#allocation5 + $0xec8] sm:$0xff]  ;;  %v2790_v3 = vpack.c.bf16 %v655_v59, %v647_v58  ;;  %v407_v8 = vld [vmem:[#allocation5 + $0x700] sm:$0xff]  ;;  %v194_v33 = vld [vmem:[#allocation5 + $0x58] sm:$0xff] }
  0x70   :  { %v408_v60 = vld [vmem:[#allocation5 + $0x708] sm:$0xff]  ;;  %v415_v9 = vld [vmem:[#allocation5 + $0x740] sm:$0xff]  ;;  %v442_v34 = vld [vmem:[#allocation5 + $0x818] sm:$0xff]  ;;  %v2544_v42 = vpack.c.bf16 %v194_v33, %v186_v32 }
  0x71   :  { %v416_v61 = vld [vmem:[#allocation5 + $0x748] sm:$0xff]  ;;  %v663_v10 = vld [vmem:[#allocation5 + $0xf00] sm:$0xff]  ;;  %v2538_v16 = vpack.c.bf16 %v415_v9, %v407_v8  ;;  %v210_v58 = vld [vmem:[#allocation5 + $0xd8] sm:$0xff] }
  0x72   :  { %v664_v62 = vld [vmem:[#allocation5 + $0xf08] sm:$0xff]  ;;  %v2536_v4 = vpack.c.bf16 %v416_v61, %v408_v60  ;;  %v431_v27 = vld [vmem:[#allocation5 + $0x7c0] sm:$0xff]  ;;  %v458_v59 = vld [vmem:[#allocation5 + $0x898] sm:$0xff] }
  0x73   :  { %2511 = vmatpush1.bf16.xpose.msra.mxu0 %v2510_v49  ;;  %v2532_v49 = vpack.c.bf16 %v400_v44, %v392_v43  ;;  %v688_v15 = vld [vmem:[#allocation5 + $0xfc8] sm:$0xff]  ;;  %v679_v28 = vld [vmem:[#allocation5 + $0xf80] sm:$0xff]  ;;  %v466_v60 = vld [vmem:[#allocation5 + $0x8d8] sm:$0xff] }
  0x74   :  { %2513 = vmatprep.subr.bf16.mxu0 %v2512_v52  ;;  %v2788_v52 = vpack.c.bf16 %v656_v46, %v648_v45  ;;  %v687_v31 = vld [vmem:[#allocation5 + $0xfc0] sm:$0xff]  ;;  %v209_v8 = vld [vmem:[#allocation5 + $0xd0] sm:$0xff] }
  0x75   :  { %2767 = vmatpush1.bf16.xpose.msra.mxu1 %v2766_v51  ;;  %v62_v51 = vld [vmem:[#allocation2 + $0x40] sm:$0xff]  ;;  %v2798_v41 = vpack.c.bf16 %v687_v31, %v679_v28  ;;  %v457_v9 = vld [vmem:[#allocation5 + $0x890] sm:$0xff] }
  0x76   :  { %2769 = vmatprep.subr.bf16.mxu1 %v2768_v53  ;;  %v70_v53 = vrot.slane %v54_v50, 4  ;;  %v118_v55 = vrot.slane %v62_v51, 4  ;;  %v233_v31 = vld [vmem:[#allocation5 + $0x190] sm:$0xff] }
  0x77   :  { %v241_v32 = vld [vmem:[#allocation5 + $0x1d0] sm:$0xff] }
  0x78   :  { %v489_v33 = vld [vmem:[#allocation5 + $0x990] sm:$0xff] }
  0x7b   :  { %2515 = vmatpush1.bf16.xpose.msra.mxu0 %v2514_v63  ;;  %v672_v63 = vld [vmem:[#allocation5 + $0xf48] sm:$0xff] }
  0x7c   :  { %2517 = vmatprep.subr.bf16.mxu0 %v2516_v1  ;;  %v71_v1 = vadd.f32 %v70_v53, %v54_v50  ;;  %v2792_v5 = vpack.c.bf16 %v672_v63, %v664_v62  ;;  %v185_v50 = vld [vmem:[#allocation5 + $0x10] sm:$0xff] }
  0x7d   :  { %2771 = vmatpush1.bf16.xpose.msra.mxu1 %v2770_v0  ;;  %v2534_v0 = vpack.c.bf16 %v399_v57, %v391_v56  ;;  %v449_v56 = vld [vmem:[#allocation5 + $0x850] sm:$0xff]  ;;  %v202_v57 = vld [vmem:[#allocation5 + $0x98] sm:$0xff] }
  0x7e   :  { %2773 = vmatprep.subr.bf16.mxu1 %v2772_v2  ;;  %v119_v2 = vadd.f32 %v118_v55, %v62_v51  ;;  %v72_v6 = vrot.slane %v71_v1, 2  ;;  %v193_v51 = vld [vmem:[#allocation5 + $0x50] sm:$0xff] }
  0x80   :  { %v120_v7 = vrot.slane %v119_v2, 2  ;;  %v73_v17 = vadd.f32 %v72_v6, %v71_v1 }
  0x82   :  { %v121_v18 = vadd.f32 %v120_v7, %v119_v2  ;;  %v74_v22 = vrot.slane %v73_v17, 1  ;;  %v2548_v2 = vpack.c.bf16 %v210_v58, %v202_v57  ;;  %v201_v7 = vld [vmem:[#allocation5 + $0x90] sm:$0xff] }
  0x83   :  { %2519 = vmatpush1.bf16.xpose.msra.mxu0 %v2518_v11  ;;  %v671_v11 = vld [vmem:[#allocation5 + $0xf40] sm:$0xff]  ;;  %v273_v57 = vld [vmem:[#allocation5 + $0x2d0] sm:$0xff] }
  0x84   :  { %2521 = vmatprep.subr.bf16.mxu0 %v2520_v13  ;;  %v432_v13 = vld [vmem:[#allocation5 + $0x7c8] sm:$0xff]  ;;  %v2794_v19 = vpack.c.bf16 %v671_v11, %v663_v10  ;;  %v75_v39 = vadd.f32 %v74_v22, %v73_v17  ;;  %v465_v10 = vld [vmem:[#allocation5 + $0x8d0] sm:$0xff]  ;;  %v218_v11 = vld [vmem:[#allocation5 + $0x118] sm:$0xff] }
  0x85   :  { %2775 = vmatpush1.bf16.xpose.msra.mxu1 %v2774_v12  ;;  %v424_v12 = vld [vmem:[#allocation5 + $0x788] sm:$0xff]  ;;  %v481_v22 = vld [vmem:[#allocation5 + $0x950] sm:$0xff] }
  0x86   :  { %2777 = vmatprep.subr.bf16.mxu1 %v2776_v14  ;;  %v680_v14 = vld [vmem:[#allocation5 + $0xf88] sm:$0xff]  ;;  %v2540_v20 = vpack.c.bf16 %v432_v13, %v424_v12  ;;  %v226_v12 = vld [vmem:[#allocation5 + $0x158] sm:$0xff]  ;;  %v521_v58 = vld [vmem:[#allocation5 + $0xa90] sm:$0xff] }
  0x87   :  { %v2796_v21 = vpack.c.bf16 %v688_v15, %v680_v14  ;;  %v474_v13 = vld [vmem:[#allocation5 + $0x918] sm:$0xff]  ;;  %v2550_v15 = vpack.c.bf16 %v209_v8, %v201_v7  ;;  %v2552_v17 = vpack.c.bf16 %v226_v12, %v218_v11  ;;  %v289_v7 = vld [vmem:[#allocation5 + $0x350] sm:$0xff] }
  0x88   :  { %v482_v14 = vld [vmem:[#allocation5 + $0x958] sm:$0xff]  ;;  %v537_v8 = vld [vmem:[#allocation5 + $0xb10] sm:$0xff] }
  0x89   :  { %v306_v11 = vld [vmem:[#allocation5 + $0x3d8] sm:$0xff] }
  0x8a   :  { %v554_v12 = vld [vmem:[#allocation5 + $0xb98] sm:$0xff] }
  0x8b   :  { %2523 = vmatpush1.bf16.xpose.msra.mxu0 %v2522_v23  ;;  %v122_v23 = vrot.slane %v121_v18, 1 }
  0x8c   :  { %2525 = vmatprep.subr.bf16.mxu0 %v2524_v25  ;;  %v65_v25 = vld [vmem:[#allocation2 + $0x58] sm:$0xff] }
  0x8d   :  { %2779 = vmatpush1.bf16.xpose.msra.mxu1 %v2778_v24  ;;  %v57_v24 = vld [vmem:[#allocation2 + $0x18] sm:$0xff]  ;;  %v136_v30 = vrot.slane %v65_v25, 4  ;;  %v123_v40 = vadd.f32 %v122_v23, %v121_v18  ;;  %v2808_v18 = vpack.c.bf16 %v482_v14, %v474_v13 }
  0x8e   :  { %2781 = vmatprep.subr.bf16.mxu1 %v2780_v26  ;;  %v423_v26 = vld [vmem:[#allocation5 + $0x780] sm:$0xff]  ;;  %v88_v29 = vrot.slane %v57_v24, 4  ;;  %v234_v23 = vld [vmem:[#allocation5 + $0x198] sm:$0xff] }
  0x8f   :  { %v562_v13 = vld [vmem:[#allocation5 + $0xbd8] sm:$0xff] }
  0x93   :  { %2527 = vmatpush1.bf16.xpose.msra.mxu0 %v2526_v35  ;;  %v450_v35 = vld [vmem:[#allocation5 + $0x858] sm:$0xff] }
  0x94   :  { %2529 = vmatprep.subr.bf16.mxu0 %v2528_v37  ;;  %v137_v37 = vadd.f32 %v136_v30, %v65_v25  ;;  %v2800_v45 = vpack.c.bf16 %v450_v35, %v442_v34  ;;  %v490_v25 = vld [vmem:[#allocation5 + $0x998] sm:$0xff]  ;;  %v497_v34 = vld [vmem:[#allocation5 + $0x9d0] sm:$0xff] }
  0x95   :  { %2783 = vmatpush1.bf16.xpose.msra.mxu1 %v2782_v36  ;;  %v89_v36 = vadd.f32 %v88_v29, %v57_v24  ;;  %v242_v24 = vld [vmem:[#allocation5 + $0x1d8] sm:$0xff] }
  0x96   :  { %2785 = vmatprep.subr.bf16.mxu1 %v2784_v38  ;;  %v2542_v38 = vpack.c.bf16 %v431_v27, %v423_v26  ;;  %v138_v44 = vrot.slane %v137_v37, 2  ;;  %v498_v26 = vld [vmem:[#allocation5 + $0x9d8] sm:$0xff]  ;;  %v2556_v29 = vpack.c.bf16 %v242_v24, %v234_v23 }
  0x97   :  { %v90_v43 = vrot.slane %v89_v36, 2  ;;  %v2812_v30 = vpack.c.bf16 %v498_v26, %v490_v25  ;;  %v250_v35 = vld [vmem:[#allocation5 + $0x218] sm:$0xff] }
  0x98   :  { %v322_v23 = vld [vmem:[#allocation5 + $0x458] sm:$0xff] }
  0x99   :  { %v91_v46 = vadd.f32 %v90_v43, %v89_v36  ;;  %v258_v36 = vld [vmem:[#allocation5 + $0x258] sm:$0xff]  ;;  %v249_v43 = vld [vmem:[#allocation5 + $0x210] sm:$0xff] }
  0x9a   :  { %v570_v24 = vld [vmem:[#allocation5 + $0xc18] sm:$0xff] }
  0x9b   :  { %2531 = vmatpush1.bf16.xpose.msra.mxu0 %v2530_v47  ;;  %v139_v47 = vadd.f32 %v138_v44, %v137_v37  ;;  %v92_v53 = vrot.slane %v91_v46, 1  ;;  %v506_v37 = vld [vmem:[#allocation5 + $0xa18] sm:$0xff]  ;;  %v257_v44 = vld [vmem:[#allocation5 + $0x250] sm:$0xff] }
  0x9c   :  { %2533 = vmatprep.subr.bf16.mxu0 %v2532_v49  ;;  %v175_v49 = vmul.f32 0.125, %v123_v40  ;;  %v2814_v40 = vpack.c.bf16 %v497_v34, %v489_v33  ;;  %v578_v25 = vld [vmem:[#allocation5 + $0xc58] sm:$0xff]  ;;  %v577_v33 = vld [vmem:[#allocation5 + $0xc50] sm:$0xff] }
  0x9d   :  { %2787 = vmatpush1.bf16.xpose.msra.mxu1 %v2786_v48  ;;  %v167_v48 = vmul.f32 0.125, %v75_v39  ;;  %v140_v55 = vrot.slane %v139_v47, 1  ;;  %v93_v61 = vadd.f32 %v92_v53, %v91_v46  ;;  %v2558_v39 = vpack.c.bf16 %v241_v32, %v233_v31  ;;  %v513_v46 = vld [vmem:[#allocation5 + $0xa50] sm:$0xff]  ;;  %v330_v34 = vld [vmem:[#allocation5 + $0x498] sm:$0xff] }
  0x9e   :  { %2789 = vmatprep.subr.bf16.mxu1 %v2788_v52  ;;  %v441_v52 = vld [vmem:[#allocation5 + $0x810] sm:$0xff] }
  0x9f   :  { %v141_v62 = vadd.f32 %v140_v55, %v139_v47  ;;  %v3714_v63 = vsel %vm1265_vm0, %v175_v49, %v167_v48  ;;  %v2802_v1 = vpack.c.bf16 %v449_v56, %v441_v52  ;;  %v266_v47 = vld [vmem:[#allocation5 + $0x298] sm:$0xff]  ;;  %v265_v56 = vld [vmem:[#allocation5 + $0x290] sm:$0xff] }
  0xa0   :  { %v274_v48 = vld [vmem:[#allocation5 + $0x2d8] sm:$0xff]  ;;  %v321_v31 = vld [vmem:[#allocation5 + $0x450] sm:$0xff] }
  0xa1   :  { %v522_v49 = vld [vmem:[#allocation5 + $0xa98] sm:$0xff]  ;;  %v2564_v53 = vpack.c.bf16 %v274_v48, %v266_v47  ;;  %v569_v32 = vld [vmem:[#allocation5 + $0xc10] sm:$0xff] }
  0xa2   :  { %v354_v47 = vld [vmem:[#allocation5 + $0x558] sm:$0xff] }
  0xa3   :  { %2535 = vmatpush1.bf16.xpose.msra.mxu0 %v2534_v0  ;;  %v2546_v0 = vpack.c.bf16 %v193_v51, %v185_v50  ;;  %v530_v50 = vld [vmem:[#allocation5 + $0xad8] sm:$0xff]  ;;  %v2562_v51 = vpack.c.bf16 %v257_v44, %v249_v43  ;;  %v337_v43 = vld [vmem:[#allocation5 + $0x4d0] sm:$0xff] }
  0xa4   :  { %2537 = vmatprep.subr.bf16.mxu0 %v2536_v4  ;;  %v178_v4 = vmul.f32 0.125, %v141_v62  ;;  %v2820_v55 = vpack.c.bf16 %v530_v50, %v522_v49  ;;  %v538_v62 = vld [vmem:[#allocation5 + $0xb18] sm:$0xff]  ;;  %v585_v44 = vld [vmem:[#allocation5 + $0xc90] sm:$0xff] }
  0xa5   :  { %2791 = vmatpush1.bf16.xpose.msra.mxu1 %v2790_v3  ;;  %v170_v3 = vmul.f32 0.125, %v93_v61  ;;  %v290_v61 = vld [vmem:[#allocation5 + $0x358] sm:$0xff] }
  0xa6   :  { %2793 = vmatprep.subr.bf16.mxu1 %v2792_v5  ;;  %v2804_v5 = vpack.c.bf16 %v466_v60, %v458_v59  ;;  %v529_v59 = vld [vmem:[#allocation5 + $0xad0] sm:$0xff]  ;;  %v282_v60 = vld [vmem:[#allocation5 + $0x318] sm:$0xff] }
  0xa7   :  { %v3718_v6 = vsel %vm1265_vm0, %v178_v4, %v170_v3  ;;  %v2568_v3 = vpack.c.bf16 %v290_v61, %v282_v60  ;;  %v602_v48 = vld [vmem:[#allocation5 + $0xd18] sm:$0xff] }
  0xa8   :  { %v610_v49 = vld [vmem:[#allocation5 + $0xd58] sm:$0xff] }
  0xa9   :  { %v370_v60 = vld [vmem:[#allocation5 + $0x5d8] sm:$0xff] }
  0xaa   :  { %v618_v61 = vld [vmem:[#allocation5 + $0xd98] sm:$0xff] }
  0xab   :  { %2539 = vmatpush1.bf16.xpose.msra.mxu0 %v2538_v16  ;;  %v2806_v16 = vpack.c.bf16 %v465_v10, %v457_v9  ;;  %v545_v9 = vld [vmem:[#allocation5 + $0xb50] sm:$0xff]  ;;  %v298_v10 = vld [vmem:[#allocation5 + $0x398] sm:$0xff] }
  0xac   :  { %2541 = vmatprep.subr.bf16.mxu0 %v2540_v20  ;;  %v225_v20 = vld [vmem:[#allocation5 + $0x150] sm:$0xff] }
  0xad   :  { %2795 = vmatpush1.bf16.xpose.msra.mxu1 %v2794_v19  ;;  %v217_v19 = vld [vmem:[#allocation5 + $0x110] sm:$0xff] }
  0xae   :  { %2797 = vmatprep.subr.bf16.mxu1 %v2796_v21  ;;  %v473_v21 = vld [vmem:[#allocation5 + $0x910] sm:$0xff]  ;;  %v2554_v27 = vpack.c.bf16 %v225_v20, %v217_v19 }
  0xaf   :  { %v2810_v28 = vpack.c.bf16 %v481_v22, %v473_v21  ;;  %v305_v19 = vld [vmem:[#allocation5 + $0x3d0] sm:$0xff]  ;;  %v314_v22 = vld [vmem:[#allocation5 + $0x418] sm:$0xff] }
  0xb0   :  { %v553_v20 = vld [vmem:[#allocation5 + $0xb90] sm:$0xff] }
  0xb1   :  { %v561_v21 = vld [vmem:[#allocation5 + $0xbd0] sm:$0xff] }
  0xb3   :  { %2543 = vmatpush1.bf16.xpose.msra.mxu0 %v2542_v38  ;;  %v514_v38 = vld [vmem:[#allocation5 + $0xa58] sm:$0xff] }
  0xb4   :  { %2545 = vmatprep.subr.bf16.mxu0 %v2544_v42  ;;  %v2816_v42 = vpack.c.bf16 %v514_v38, %v506_v37  ;;  %v594_v37 = vld [vmem:[#allocation5 + $0xcd8] sm:$0xff] }
  0xb5   :  { %2799 = vmatpush1.bf16.xpose.msra.mxu1 %v2798_v41  ;;  %v2560_v41 = vpack.c.bf16 %v258_v36, %v250_v35  ;;  %v338_v35 = vld [vmem:[#allocation5 + $0x4d8] sm:$0xff] }
  0xb6   :  { %2801 = vmatprep.subr.bf16.mxu1 %v2800_v45  ;;  %v505_v45 = vld [vmem:[#allocation5 + $0xa10] sm:$0xff]  ;;  %v586_v36 = vld [vmem:[#allocation5 + $0xc98] sm:$0xff] }
  0xb7   :  { %v2818_v52 = vpack.c.bf16 %v513_v46, %v505_v45  ;;  %v593_v45 = vld [vmem:[#allocation5 + $0xcd0] sm:$0xff]  ;;  %v346_v46 = vld [vmem:[#allocation5 + $0x518] sm:$0xff] }
  0xba   :  { %1347 = vmatmul.mubr.f32.vlgmr.msra.gmra.mrb[0].mxu0 %v3714_v63 }
  0xbb   :  { %2547 = vmatpush1.bf16.xpose.msra.mxu0 %v2546_v0  ;;  %1417 = vmatprep.mubr.f32.mxu0 %v3718_v6  ;;  %v546_v0 = vld [vmem:[#allocation5 + $0xb58] sm:$0xff] }
  0xbc   :  { %1631 = vmatmul.mubr.f32.vlgmr.msra.gmra.mrb[0].mxu1 %v3714_v63  ;;  %2549 = vmatprep.subr.bf16.mxu0 %v2548_v2  ;;  %v2822_v2 = vpack.c.bf16 %v529_v59, %v521_v58  ;;  %v2824_v4 = vpack.c.bf16 %v546_v0, %v538_v62  ;;  %v609_v58 = vld [vmem:[#allocation5 + $0xd50] sm:$0xff]  ;;  %v362_v59 = vld [vmem:[#allocation5 + $0x598] sm:$0xff] }
  0xbd   :  { %2803 = vmatpush1.bf16.xpose.msra.mxu1 %v2802_v1  ;;  %1701 = vmatprep.mubr.f32.mxu1 %v3718_v6  ;;  %v2566_v1 = vpack.c.bf16 %v273_v57, %v265_v56  ;;  %v353_v56 = vld [vmem:[#allocation5 + $0x550] sm:$0xff]  ;;  %v626_v62 = vld [vmem:[#allocation5 + $0xdd8] sm:$0xff] }
  0xbe   :  { %2805 = vmatprep.subr.bf16.mxu1 %v2804_v5  ;;  %v281_v5 = vld [vmem:[#allocation5 + $0x310] sm:$0xff] }
  0xbf   :  { %v2570_v14 = vpack.c.bf16 %v289_v7, %v281_v5  ;;  %v601_v57 = vld [vmem:[#allocation5 + $0xd10] sm:$0xff] }
  0xc0   :  { %v369_v5 = vld [vmem:[#allocation5 + $0x5d0] sm:$0xff] }
  0xc1   :  { %v617_v7 = vld [vmem:[#allocation5 + $0xd90] sm:$0xff] }
  0xc3   :  { %2551 = vmatpush1.bf16.xpose.msra.mxu0 %v2550_v15  ;;  %v2826_v15 = vpack.c.bf16 %v545_v9, %v537_v8  ;;  %v625_v8 = vld [vmem:[#allocation5 + $0xdd0] sm:$0xff]  ;;  %v378_v9 = vld [vmem:[#allocation5 + $0x618] sm:$0xff] }
  0xc4   :  { %2553 = vmatprep.subr.bf16.mxu0 %v2552_v17  ;;  %v2828_v17 = vpack.c.bf16 %v562_v13, %v554_v12  ;;  %v642_v12 = vld [vmem:[#allocation5 + $0xe58] sm:$0xff] }
  0xc5   :  { %2807 = vmatpush1.bf16.xpose.msra.mxu1 %v2806_v16  ;;  %v2572_v16 = vpack.c.bf16 %v306_v11, %v298_v10  ;;  %v386_v10 = vld [vmem:[#allocation5 + $0x658] sm:$0xff] }
  0xc6   :  { %2809 = vmatprep.subr.bf16.mxu1 %v2808_v18  ;;  %v297_v18 = vld [vmem:[#allocation5 + $0x390] sm:$0xff]  ;;  %v634_v11 = vld [vmem:[#allocation5 + $0xe18] sm:$0xff] }
  0xc7   :  { %v2574_v26 = vpack.c.bf16 %v305_v19, %v297_v18  ;;  %v385_v18 = vld [vmem:[#allocation5 + $0x650] sm:$0xff] }
  0xc8   :  { %v633_v19 = vld [vmem:[#allocation5 + $0xe10] sm:$0xff] }
  0xcb   :  { %2555 = vmatpush1.bf16.xpose.msra.mxu0 %v2554_v27  ;;  %v2830_v27 = vpack.c.bf16 %v561_v21, %v553_v20  ;;  %v641_v20 = vld [vmem:[#allocation5 + $0xe50] sm:$0xff]  ;;  %v394_v21 = vld [vmem:[#allocation5 + $0x698] sm:$0xff] }
  0xcc   :  { %2557 = vmatprep.subr.bf16.mxu0 %v2556_v29  ;;  %v2832_v29 = vpack.c.bf16 %v578_v25, %v570_v24  ;;  %v658_v24 = vld [vmem:[#allocation5 + $0xed8] sm:$0xff] }
  0xcd   :  { %2811 = vmatpush1.bf16.xpose.msra.mxu1 %v2810_v28  ;;  %v2576_v28 = vpack.c.bf16 %v322_v23, %v314_v22  ;;  %v402_v22 = vld [vmem:[#allocation5 + $0x6d8] sm:$0xff] }
  0xce   :  { %2813 = vmatprep.subr.bf16.mxu1 %v2812_v30  ;;  %v313_v30 = vld [vmem:[#allocation5 + $0x410] sm:$0xff]  ;;  %v650_v23 = vld [vmem:[#allocation5 + $0xe98] sm:$0xff] }
  0xcf   :  { %v2578_v38 = vpack.c.bf16 %v321_v31, %v313_v30  ;;  %v2852_v30 = vpack.c.bf16 %v658_v24, %v650_v23 }
  0xd3   :  { %2559 = vmatpush1.bf16.xpose.msra.mxu0 %v2558_v39  ;;  %v2834_v39 = vpack.c.bf16 %v577_v33, %v569_v32  ;;  %v393_v33 = vld [vmem:[#allocation5 + $0x690] sm:$0xff] }
  0xd4   :  { %2561 = vmatprep.subr.bf16.mxu0 %v2560_v41  ;;  %v2836_v41 = vpack.c.bf16 %v594_v37, %v586_v36  ;;  %v657_v36 = vld [vmem:[#allocation5 + $0xed0] sm:$0xff]  ;;  %v410_v37 = vld [vmem:[#allocation5 + $0x718] sm:$0xff] }
  0xd5   :  { %2815 = vmatpush1.bf16.xpose.msra.mxu1 %v2814_v40  ;;  %v2580_v40 = vpack.c.bf16 %v338_v35, %v330_v34  ;;  %v401_v34 = vld [vmem:[#allocation5 + $0x6d0] sm:$0xff] }
  0xd6   :  { %2817 = vmatprep.subr.bf16.mxu1 %v2816_v42  ;;  %v329_v42 = vld [vmem:[#allocation5 + $0x490] sm:$0xff] }
  0xd7   :  { %v2582_v50 = vpack.c.bf16 %v337_v43, %v329_v42  ;;  %v649_v35 = vld [vmem:[#allocation5 + $0xe90] sm:$0xff] }
  0xdb   :  { %2563 = vmatpush1.bf16.xpose.msra.mxu0 %v2562_v51  ;;  %v2838_v51 = vpack.c.bf16 %v593_v45, %v585_v44  ;;  %v2854_v44 = vpack.c.bf16 %v657_v36, %v649_v35  ;;  %v451_v35 = vld [vmem:[#allocation5 + $0x860] sm:$0xff]  ;;  %v204_v36 = vld [vmem:[#allocation5 + $0xa8] sm:$0xff] }
  0xdc   :  { %2565 = vmatprep.subr.bf16.mxu0 %v2564_v53  ;;  %v2840_v53 = vpack.c.bf16 %v610_v49, %v602_v48  ;;  %v409_v49 = vld [vmem:[#allocation5 + $0x710] sm:$0xff] }
  0xdd   :  { %2819 = vmatpush1.bf16.xpose.msra.mxu1 %v2818_v52  ;;  %v2584_v52 = vpack.c.bf16 %v354_v47, %v346_v46 }
  0xde   :  { %2821 = vmatprep.subr.bf16.mxu1 %v2820_v55  ;;  %v345_v55 = vld [vmem:[#allocation5 + $0x510] sm:$0xff] }
  0xdf   :  { %v2586_v0 = vpack.c.bf16 %v353_v56, %v345_v55  ;;  %v434_v55 = vld [vmem:[#allocation5 + $0x7d8] sm:$0xff] }
  0xe0   :  { %v682_v56 = vld [vmem:[#allocation5 + $0xf98] sm:$0xff] }
  0xe3   :  { %2567 = vmatpush1.bf16.xpose.msra.mxu0 %v2566_v1  ;;  %v2842_v1 = vpack.c.bf16 %v609_v58, %v601_v57  ;;  %v690_v57 = vld [vmem:[#allocation5 + $0xfd8] sm:$0xff] }
  0xe4   :  { %2569 = vmatprep.subr.bf16.mxu0 %v2568_v3  ;;  %v2844_v3 = vpack.c.bf16 %v626_v62, %v618_v61 }
  0xe5   :  { %2823 = vmatpush1.bf16.xpose.msra.mxu1 %v2822_v2  ;;  %v2588_v2 = vpack.c.bf16 %v370_v60, %v362_v59 }
  0xe6   :  { %2825 = vmatprep.subr.bf16.mxu1 %v2824_v4  ;;  %v361_v4 = vld [vmem:[#allocation5 + $0x590] sm:$0xff] }
  0xe7   :  { %v2590_v13 = vpack.c.bf16 %v369_v5, %v361_v4  ;;  %v67_v4 = vld [vmem:[#allocation2 + $0x68] sm:$0xff]  ;;  %v425_v5 = vld [vmem:[#allocation5 + $0x790] sm:$0xff] }
  0xeb   :  { %2571 = vmatpush1.bf16.xpose.msra.mxu0 %v2570_v14  ;;  %v2846_v14 = vpack.c.bf16 %v625_v8, %v617_v7  ;;  %v433_v7 = vld [vmem:[#allocation5 + $0x7d0] sm:$0xff] }
  0xec   :  { %2573 = vmatprep.subr.bf16.mxu0 %v2572_v16  ;;  %v2848_v16 = vpack.c.bf16 %v642_v12, %v634_v11  ;;  %v681_v8 = vld [vmem:[#allocation5 + $0xf90] sm:$0xff]  ;;  %v188_v12 = vld [vmem:[#allocation5 + $0x28] sm:$0xff] }
  0xed   :  { %2827 = vmatpush1.bf16.xpose.msra.mxu1 %v2826_v15  ;;  %v2592_v15 = vpack.c.bf16 %v386_v10, %v378_v9  ;;  %v148_v10 = vrot.slane %v67_v4, 4  ;;  %v689_v11 = vld [vmem:[#allocation5 + $0xfd0] sm:$0xff] }
  0xee   :  { %2829 = vmatprep.subr.bf16.mxu1 %v2828_v17  ;;  %v377_v17 = vld [vmem:[#allocation5 + $0x610] sm:$0xff] }
  0xef   :  { %v2594_v25 = vpack.c.bf16 %v385_v18, %v377_v17  ;;  %v149_v17 = vadd.f32 %v148_v10, %v67_v4  ;;  %v2606_v18 = vpack.c.bf16 %v433_v7, %v425_v5  ;;  %v236_v4 = vld [vmem:[#allocation5 + $0x1a8] sm:$0xff] }
  0xf0   :  { %v244_v5 = vld [vmem:[#allocation5 + $0x1e8] sm:$0xff] }
  0xf1   :  { %v150_v24 = vrot.slane %v149_v17, 2  ;;  %v492_v7 = vld [vmem:[#allocation5 + $0x9a8] sm:$0xff] }
  0xf3   :  { %2575 = vmatpush1.bf16.xpose.msra.mxu0 %v2574_v26  ;;  %v2850_v26 = vpack.c.bf16 %v641_v20, %v633_v19 }
  0xf4   :  { %2577 = vmatprep.subr.bf16.mxu0 %v2576_v28  ;;  %v56_v28 = vld [vmem:[#allocation2 + $0x10] sm:$0xff] }
  0xf5   :  { %2831 = vmatpush1.bf16.xpose.msra.mxu1 %v2830_v27  ;;  %v2596_v27 = vpack.c.bf16 %v402_v22, %v394_v21  ;;  %v82_v31 = vrot.slane %v56_v28, 4  ;;  %v2862_v21 = vpack.c.bf16 %v689_v11, %v681_v8  ;;  %v500_v8 = vld [vmem:[#allocation5 + $0x9e8] sm:$0xff]  ;;  %v2620_v11 = vpack.c.bf16 %v244_v5, %v236_v4  ;;  %v563_v4 = vld [vmem:[#allocation5 + $0xbe0] sm:$0xff] }
  0xf6   :  { %2833 = vmatprep.subr.bf16.mxu1 %v2832_v29  ;;  %v64_v29 = vld [vmem:[#allocation2 + $0x50] sm:$0xff]  ;;  %v316_v5 = vld [vmem:[#allocation5 + $0x428] sm:$0xff] }
  0xf7   :  { %v130_v32 = vrot.slane %v64_v29, 4  ;;  %v83_v42 = vadd.f32 %v82_v31, %v56_v28  ;;  %v195_v31 = vld [vmem:[#allocation5 + $0x60] sm:$0xff] }
  0xf9   :  { %v131_v43 = vadd.f32 %v130_v32, %v64_v29  ;;  %v84_v47 = vrot.slane %v83_v42, 2  ;;  %v443_v32 = vld [vmem:[#allocation5 + $0x820] sm:$0xff] }
  0xfb   :  { %2579 = vmatpush1.bf16.xpose.msra.mxu0 %v2578_v38  ;;  %v418_v38 = vld [vmem:[#allocation5 + $0x758] sm:$0xff]  ;;  %v132_v48 = vrot.slane %v131_v43, 2  ;;  %v85_v59 = vadd.f32 %v84_v47, %v83_v42 }
  0xfc   :  { %2581 = vmatprep.subr.bf16.mxu0 %v2580_v40  ;;  %v674_v40 = vld [vmem:[#allocation5 + $0xf58] sm:$0xff]  ;;  %v2600_v45 = vpack.c.bf16 %v418_v38, %v410_v37  ;;  %v212_v37 = vld [vmem:[#allocation5 + $0xe8] sm:$0xff] }
  0xfd   :  { %2835 = vmatpush1.bf16.xpose.msra.mxu1 %v2834_v39  ;;  %v666_v39 = vld [vmem:[#allocation5 + $0xf18] sm:$0xff]  ;;  %v133_v60 = vadd.f32 %v132_v48, %v131_v43  ;;  %v460_v38 = vld [vmem:[#allocation5 + $0x8a8] sm:$0xff] }
  0xfe   :  { %2837 = vmatprep.subr.bf16.mxu1 %v2836_v41  ;;  %v2598_v41 = vpack.c.bf16 %v401_v34, %v393_v33  ;;  %v2856_v46 = vpack.c.bf16 %v674_v40, %v666_v39  ;;  %v468_v39 = vld [vmem:[#allocation5 + $0x8e8] sm:$0xff] }
  0xff   :  { %v2868_v48 = vpack.c.bf16 %v468_v39, %v460_v38  ;;  %v275_v38 = vld [vmem:[#allocation5 + $0x2e0] sm:$0xff] }
 0x100   :  { %v523_v39 = vld [vmem:[#allocation5 + $0xaa0] sm:$0xff] }
 0x103   :  { %2583 = vmatpush1.bf16.xpose.msra.mxu0 %v2582_v50  ;;  %v417_v50 = vld [vmem:[#allocation5 + $0x750] sm:$0xff] }
 0x104   :  { %2585 = vmatprep.subr.bf16.mxu0 %v2584_v52  ;;  %v673_v52 = vld [vmem:[#allocation5 + $0xf50] sm:$0xff]  ;;  %v2602_v58 = vpack.c.bf16 %v417_v50, %v409_v49  ;;  %v203_v50 = vld [vmem:[#allocation5 + $0xa0] sm:$0xff] }
 0x105   :  { %2839 = vmatpush1.bf16.xpose.msra.mxu1 %v2838_v51  ;;  %v665_v51 = vld [vmem:[#allocation5 + $0xf10] sm:$0xff] }
 0x106   :  { %2841 = vmatprep.subr.bf16.mxu1 %v2840_v53  ;;  %v426_v53 = vld [vmem:[#allocation5 + $0x798] sm:$0xff]  ;;  %v2858_v61 = vpack.c.bf16 %v673_v52, %v665_v51  ;;  %v211_v51 = vld [vmem:[#allocation5 + $0xe0] sm:$0xff] }
 0x107   :  { %v2604_v62 = vpack.c.bf16 %v434_v55, %v426_v53  ;;  %v459_v52 = vld [vmem:[#allocation5 + $0x8a0] sm:$0xff]  ;;  %v220_v55 = vld [vmem:[#allocation5 + $0x128] sm:$0xff] }
 0x108   :  { %v467_v53 = vld [vmem:[#allocation5 + $0x8e0] sm:$0xff] }
 0x10b   :  { %2587 = vmatpush1.bf16.xpose.msra.mxu0 %v2586_v0  ;;  %v2860_v0 = vpack.c.bf16 %v690_v57, %v682_v56  ;;  %v228_v56 = vld [vmem:[#allocation5 + $0x168] sm:$0xff] }
 0x10c   :  { %2589 = vmatprep.subr.bf16.mxu0 %v2588_v2  ;;  %v134_v2 = vrot.slane %v133_v60, 1  ;;  %v476_v57 = vld [vmem:[#allocation5 + $0x928] sm:$0xff] }
 0x10d   :  { %2843 = vmatpush1.bf16.xpose.msra.mxu1 %v2842_v1  ;;  %v86_v1 = vrot.slane %v85_v59, 1 }
 0x10e   :  { %2845 = vmatprep.subr.bf16.mxu1 %v2844_v3  ;;  %v59_v3 = vld [vmem:[#allocation2 + $0x28] sm:$0xff]  ;;  %v135_v20 = vadd.f32 %v134_v2, %v133_v60  ;;  %v2870_v60 = vpack.c.bf16 %v467_v53, %v459_v52  ;;  %v475_v2 = vld [vmem:[#allocation5 + $0x920] sm:$0xff] }
 0x10f   :  { %v100_v9 = vrot.slane %v59_v3, 4  ;;  %v87_v19 = vadd.f32 %v86_v1, %v85_v59  ;;  %v2614_v59 = vpack.c.bf16 %v211_v51, %v203_v50  ;;  %v227_v1 = vld [vmem:[#allocation5 + $0x160] sm:$0xff] }
 0x110   :  { %v177_v29 = vmul.f32 0.125, %v135_v20  ;;  %v516_v20 = vld [vmem:[#allocation5 + $0xa68] sm:$0xff]  ;;  %v283_v51 = vld [vmem:[#allocation5 + $0x320] sm:$0xff] }
 0x111   :  { %v169_v28 = vmul.f32 0.125, %v87_v19  ;;  %v508_v19 = vld [vmem:[#allocation5 + $0xa28] sm:$0xff]  ;;  %v291_v52 = vld [vmem:[#allocation5 + $0x360] sm:$0xff] }
 0x112   :  { %v539_v53 = vld [vmem:[#allocation5 + $0xb20] sm:$0xff] }
 0x113   :  { %2591 = vmatpush1.bf16.xpose.msra.mxu0 %v2590_v13  ;;  %v196_v13 = vld [vmem:[#allocation5 + $0x68] sm:$0xff]  ;;  %v3724_v42 = vsel %vm1265_vm0, %v177_v29, %v169_v28  ;;  %v515_v28 = vld [vmem:[#allocation5 + $0xa60] sm:$0xff] }
 0x114   :  { %2593 = vmatprep.subr.bf16.mxu0 %v2592_v15  ;;  %v452_v15 = vld [vmem:[#allocation5 + $0x868] sm:$0xff]  ;;  %v2608_v22 = vpack.c.bf16 %v196_v13, %v188_v12  ;;  %v2876_v12 = vpack.c.bf16 %v500_v8, %v492_v7  ;;  %v235_v13 = vld [vmem:[#allocation5 + $0x1a0] sm:$0xff] }
 0x115   :  { %2847 = vmatpush1.bf16.xpose.msra.mxu1 %v2846_v14  ;;  %v444_v14 = vld [vmem:[#allocation5 + $0x828] sm:$0xff] }
 0x116   :  { %2849 = vmatprep.subr.bf16.mxu1 %v2848_v16  ;;  %v101_v16 = vadd.f32 %v100_v9, %v59_v3  ;;  %v483_v3 = vld [vmem:[#allocation5 + $0x960] sm:$0xff]  ;;  %v268_v29 = vld [vmem:[#allocation5 + $0x2a8] sm:$0xff] }
 0x117   :  { %v2874_v10 = vpack.c.bf16 %v483_v3, %v475_v2  ;;  %v307_v2 = vld [vmem:[#allocation5 + $0x3e0] sm:$0xff]  ;;  %v324_v7 = vld [vmem:[#allocation5 + $0x468] sm:$0xff] }
 0x118   :  { %v102_v23 = vrot.slane %v101_v16, 2  ;;  %v555_v3 = vld [vmem:[#allocation5 + $0xba0] sm:$0xff]  ;;  %v572_v8 = vld [vmem:[#allocation5 + $0xc28] sm:$0xff] }
 0x11b   :  { %2595 = vmatpush1.bf16.xpose.msra.mxu0 %v2594_v25  ;;  %v2864_v25 = vpack.c.bf16 %v452_v15, %v444_v14  ;;  %v243_v14 = vld [vmem:[#allocation5 + $0x1e0] sm:$0xff] }
 0x11c   :  { %2597 = vmatprep.subr.bf16.mxu0 %v2596_v27  ;;  %v151_v27 = vadd.f32 %v150_v24, %v149_v17  ;;  %v491_v15 = vld [vmem:[#allocation5 + $0x9a0] sm:$0xff]  ;;  %v252_v17 = vld [vmem:[#allocation5 + $0x228] sm:$0xff]  ;;  %v2880_v24 = vpack.c.bf16 %v516_v20, %v508_v19 }
 0x11d   :  { %2851 = vmatpush1.bf16.xpose.msra.mxu1 %v2850_v26  ;;  %v103_v26 = vadd.f32 %v102_v23, %v101_v16  ;;  %v499_v16 = vld [vmem:[#allocation5 + $0x9e0] sm:$0xff]  ;;  %v340_v19 = vld [vmem:[#allocation5 + $0x4e8] sm:$0xff] }
 0x11e   :  { %2853 = vmatprep.subr.bf16.mxu1 %v2852_v30  ;;  %v187_v30 = vld [vmem:[#allocation5 + $0x20] sm:$0xff]  ;;  %v152_v34 = vrot.slane %v151_v27, 1  ;;  %v588_v20 = vld [vmem:[#allocation5 + $0xca8] sm:$0xff] }
 0x11f   :  { %v104_v33 = vrot.slane %v103_v26, 1  ;;  %v2610_v43 = vpack.c.bf16 %v195_v31, %v187_v30  ;;  %v276_v30 = vld [vmem:[#allocation5 + $0x2e8] sm:$0xff] }
 0x120   :  { %v524_v31 = vld [vmem:[#allocation5 + $0xaa8] sm:$0xff] }
 0x121   :  { %v105_v40 = vadd.f32 %v104_v33, %v103_v26  ;;  %v259_v26 = vld [vmem:[#allocation5 + $0x260] sm:$0xff] }
 0x123   :  { %2599 = vmatpush1.bf16.xpose.msra.mxu0 %v2598_v41  ;;  %v153_v41 = vadd.f32 %v152_v34, %v151_v27  ;;  %v507_v27 = vld [vmem:[#allocation5 + $0xa20] sm:$0xff] }
 0x124   :  { %2601 = vmatprep.subr.bf16.mxu0 %v2600_v45  ;;  %v2612_v45 = vpack.c.bf16 %v212_v37, %v204_v36  ;;  %v2882_v34 = vpack.c.bf16 %v515_v28, %v507_v27  ;;  %v267_v37 = vld [vmem:[#allocation5 + $0x2a0] sm:$0xff] }
 0x125   :  { %2855 = vmatpush1.bf16.xpose.msra.mxu1 %v2854_v44  ;;  %v2866_v44 = vpack.c.bf16 %v451_v35, %v443_v32  ;;  %v180_v47 = vmul.f32 0.125, %v153_v41  ;;  %v532_v32 = vld [vmem:[#allocation5 + $0xae8] sm:$0xff]  ;;  %v2628_v35 = vpack.c.bf16 %v276_v30, %v268_v29  ;;  %v339_v27 = vld [vmem:[#allocation5 + $0x4e0] sm:$0xff] }
 0x126   :  { %2857 = vmatprep.subr.bf16.mxu1 %v2856_v46  ;;  %v172_v46 = vmul.f32 0.125, %v105_v40  ;;  %v2884_v36 = vpack.c.bf16 %v532_v32, %v524_v31  ;;  %v531_v40 = vld [vmem:[#allocation5 + $0xae0] sm:$0xff]  ;;  %v284_v41 = vld [vmem:[#allocation5 + $0x328] sm:$0xff] }
 0x127   :  { %v587_v28 = vld [vmem:[#allocation5 + $0xca0] sm:$0xff]  ;;  %v348_v30 = vld [vmem:[#allocation5 + $0x528] sm:$0xff] }
 0x128   :  { %v3728_v49 = vsel %vm1265_vm0, %v180_v47, %v172_v46  ;;  %v2630_v46 = vpack.c.bf16 %v275_v38, %v267_v37  ;;  %v2886_v47 = vpack.c.bf16 %v531_v40, %v523_v39  ;;  %v595_v29 = vld [vmem:[#allocation5 + $0xce0] sm:$0xff]  ;;  %v356_v31 = vld [vmem:[#allocation5 + $0x568] sm:$0xff] }
 0x129   :  { %v604_v32 = vld [vmem:[#allocation5 + $0xd28] sm:$0xff]  ;;  %v347_v38 = vld [vmem:[#allocation5 + $0x520] sm:$0xff] }
 0x12a   :  { %v355_v39 = vld [vmem:[#allocation5 + $0x560] sm:$0xff] }
 0x12b   :  { %2603 = vmatpush1.bf16.xpose.msra.mxu0 %v2602_v58  ;;  %v484_v58 = vld [vmem:[#allocation5 + $0x968] sm:$0xff]  ;;  %v603_v40 = vld [vmem:[#allocation5 + $0xd20] sm:$0xff] }
 0x12c   :  { %2605 = vmatprep.subr.bf16.mxu0 %v2604_v62  ;;  %v2872_v62 = vpack.c.bf16 %v484_v58, %v476_v57  ;;  %v308_v57 = vld [vmem:[#allocation5 + $0x3e8] sm:$0xff] }
 0x12d   :  { %2859 = vmatpush1.bf16.xpose.msra.mxu1 %v2858_v61  ;;  %v2616_v61 = vpack.c.bf16 %v228_v56, %v220_v55  ;;  %v547_v55 = vld [vmem:[#allocation5 + $0xb60] sm:$0xff]  ;;  %v300_v56 = vld [vmem:[#allocation5 + $0x3a8] sm:$0xff] }
 0x12e   :  { %2861 = vmatprep.subr.bf16.mxu1 %v2860_v0  ;;  %v219_v0 = vld [vmem:[#allocation5 + $0x120] sm:$0xff]  ;;  %v556_v58 = vld [vmem:[#allocation5 + $0xba8] sm:$0xff] }
 0x12f   :  { %v2618_v9 = vpack.c.bf16 %v227_v1, %v219_v0  ;;  %v299_v1 = vld [vmem:[#allocation5 + $0x3a0] sm:$0xff] }
 0x133   :  { %2607 = vmatpush1.bf16.xpose.msra.mxu0 %v2606_v18  ;;  %v260_v18 = vld [vmem:[#allocation5 + $0x268] sm:$0xff] }
 0x134   :  { %2609 = vmatprep.subr.bf16.mxu0 %v2608_v22  ;;  %v2878_v22 = vpack.c.bf16 %v499_v16, %v491_v15  ;;  %v2624_v23 = vpack.c.bf16 %v260_v18, %v252_v17  ;;  %v323_v15 = vld [vmem:[#allocation5 + $0x460] sm:$0xff]  ;;  %v332_v18 = vld [vmem:[#allocation5 + $0x4a8] sm:$0xff] }
 0x135   :  { %2863 = vmatpush1.bf16.xpose.msra.mxu1 %v2862_v21  ;;  %v2622_v21 = vpack.c.bf16 %v243_v14, %v235_v13  ;;  %v315_v14 = vld [vmem:[#allocation5 + $0x420] sm:$0xff] }
 0x136   :  { %2865 = vmatprep.subr.bf16.mxu1 %v2864_v25  ;;  %v251_v25 = vld [vmem:[#allocation5 + $0x220] sm:$0xff] }
 0x137   :  { %v2626_v33 = vpack.c.bf16 %v259_v26, %v251_v25  ;;  %v571_v16 = vld [vmem:[#allocation5 + $0xc20] sm:$0xff] }
 0x138   :  { %v579_v17 = vld [vmem:[#allocation5 + $0xc60] sm:$0xff] }
 0x139   :  { %v331_v26 = vld [vmem:[#allocation5 + $0x4a0] sm:$0xff] }
 0x13a   :  { %1418 = vmatmul.mubr.f32.vlgmr.msra.gmra.mrb[0].mxu0 %v3724_v42 }
 0x13b   :  { %2611 = vmatpush1.bf16.xpose.msra.mxu0 %v2610_v43  ;;  %1488 = vmatprep.mubr.f32.mxu0 %v3728_v49  ;;  %v292_v43 = vld [vmem:[#allocation5 + $0x368] sm:$0xff] }
 0x13c   :  { %1702 = vmatmul.mubr.f32.vlgmr.msra.gmra.mrb[0].mxu1 %v3724_v42  ;;  %2613 = vmatprep.subr.bf16.mxu0 %v2612_v45  ;;  %v548_v45 = vld [vmem:[#allocation5 + $0xb68] sm:$0xff] }
 0x13d   :  { %2867 = vmatpush1.bf16.xpose.msra.mxu1 %v2866_v44  ;;  %1772 = vmatprep.mubr.f32.mxu1 %v3728_v49  ;;  %v540_v44 = vld [vmem:[#allocation5 + $0xb28] sm:$0xff] }
 0x13e   :  { %2869 = vmatprep.subr.bf16.mxu1 %v2868_v48  ;;  %v2632_v48 = vpack.c.bf16 %v292_v43, %v284_v41  ;;  %v2888_v50 = vpack.c.bf16 %v548_v45, %v540_v44  ;;  %v611_v41 = vld [vmem:[#allocation5 + $0xd60] sm:$0xff]  ;;  %v364_v43 = vld [vmem:[#allocation5 + $0x5a8] sm:$0xff] }
 0x13f   :  { %v372_v44 = vld [vmem:[#allocation5 + $0x5e8] sm:$0xff] }
 0x140   :  { %v620_v45 = vld [vmem:[#allocation5 + $0xda8] sm:$0xff] }
 0x143   :  { %2615 = vmatpush1.bf16.xpose.msra.mxu0 %v2614_v59  ;;  %v564_v59 = vld [vmem:[#allocation5 + $0xbe8] sm:$0xff] }
 0x144   :  { %2617 = vmatprep.subr.bf16.mxu0 %v2616_v61  ;;  %v2890_v61 = vpack.c.bf16 %v547_v55, %v539_v53  ;;  %v2892_v0 = vpack.c.bf16 %v564_v59, %v556_v58  ;;  %v371_v53 = vld [vmem:[#allocation5 + $0x5e0] sm:$0xff]  ;;  %v388_v58 = vld [vmem:[#allocation5 + $0x668] sm:$0xff] }
 0x145   :  { %2871 = vmatpush1.bf16.xpose.msra.mxu1 %v2870_v60  ;;  %v2634_v60 = vpack.c.bf16 %v291_v52, %v283_v51  ;;  %v363_v52 = vld [vmem:[#allocation5 + $0x5a0] sm:$0xff]  ;;  %v636_v59 = vld [vmem:[#allocation5 + $0xe28] sm:$0xff] }
 0x146   :  { %2873 = vmatprep.subr.bf16.mxu1 %v2872_v62  ;;  %v2636_v62 = vpack.c.bf16 %v308_v57, %v300_v56  ;;  %v619_v55 = vld [vmem:[#allocation5 + $0xda0] sm:$0xff]  ;;  %v380_v57 = vld [vmem:[#allocation5 + $0x628] sm:$0xff] }
 0x147   :  { %v627_v56 = vld [vmem:[#allocation5 + $0xde0] sm:$0xff] }
 0x14b   :  { %2619 = vmatpush1.bf16.xpose.msra.mxu0 %v2618_v9  ;;  %v580_v9 = vld [vmem:[#allocation5 + $0xc68] sm:$0xff] }
 0x14c   :  { %2621 = vmatprep.subr.bf16.mxu0 %v2620_v11  ;;  %v2894_v11 = vpack.c.bf16 %v563_v4, %v555_v3  ;;  %v2896_v13 = vpack.c.bf16 %v580_v9, %v572_v8  ;;  %v387_v3 = vld [vmem:[#allocation5 + $0x660] sm:$0xff]  ;;  %v404_v8 = vld [vmem:[#allocation5 + $0x6e8] sm:$0xff] }
 0x14d   :  { %2875 = vmatpush1.bf16.xpose.msra.mxu1 %v2874_v10  ;;  %v2638_v10 = vpack.c.bf16 %v307_v2, %v299_v1  ;;  %v379_v2 = vld [vmem:[#allocation5 + $0x620] sm:$0xff]  ;;  %v652_v9 = vld [vmem:[#allocation5 + $0xea8] sm:$0xff] }
 0x14e   :  { %2877 = vmatprep.subr.bf16.mxu1 %v2876_v12  ;;  %v2640_v12 = vpack.c.bf16 %v324_v7, %v316_v5  ;;  %v635_v4 = vld [vmem:[#allocation5 + $0xe20] sm:$0xff]  ;;  %v396_v7 = vld [vmem:[#allocation5 + $0x6a8] sm:$0xff] }
 0x14f   :  { %v643_v5 = vld [vmem:[#allocation5 + $0xe60] sm:$0xff] }
 0x153   :  { %2623 = vmatpush1.bf16.xpose.msra.mxu0 %v2622_v21  ;;  %v596_v21 = vld [vmem:[#allocation5 + $0xce8] sm:$0xff] }
 0x154   :  { %2625 = vmatprep.subr.bf16.mxu0 %v2624_v23  ;;  %v2898_v23 = vpack.c.bf16 %v579_v17, %v571_v16  ;;  %v2900_v25 = vpack.c.bf16 %v596_v21, %v588_v20  ;;  %v403_v20 = vld [vmem:[#allocation5 + $0x6e0] sm:$0xff] }
 0x155   :  { %2879 = vmatpush1.bf16.xpose.msra.mxu1 %v2878_v22  ;;  %v2642_v22 = vpack.c.bf16 %v323_v15, %v315_v14  ;;  %v58_v14 = vld [vmem:[#allocation2 + $0x20] sm:$0xff] }
 0x156   :  { %2881 = vmatprep.subr.bf16.mxu1 %v2880_v24  ;;  %v2644_v24 = vpack.c.bf16 %v340_v19, %v332_v18  ;;  %v66_v15 = vld [vmem:[#allocation2 + $0x60] sm:$0xff]  ;;  %v94_v17 = vrot.slane %v58_v14, 4 }
 0x157   :  { %v142_v18 = vrot.slane %v66_v15, 4  ;;  %v395_v19 = vld [vmem:[#allocation5 + $0x6a0] sm:$0xff] }
 0x158   :  { %v651_v21 = vld [vmem:[#allocation5 + $0xea0] sm:$0xff] }
 0x15b   :  { %2627 = vmatpush1.bf16.xpose.msra.mxu0 %v2626_v33  ;;  %v612_v33 = vld [vmem:[#allocation5 + $0xd68] sm:$0xff] }
 0x15c   :  { %2629 = vmatprep.subr.bf16.mxu0 %v2628_v35  ;;  %v2902_v35 = vpack.c.bf16 %v595_v29, %v587_v28  ;;  %v2904_v37 = vpack.c.bf16 %v612_v33, %v604_v32  ;;  %v95_v28 = vadd.f32 %v94_v17, %v58_v14  ;;  %v143_v29 = vadd.f32 %v142_v18, %v66_v15 }
 0x15d   :  { %2883 = vmatpush1.bf16.xpose.msra.mxu1 %v2882_v34  ;;  %v2646_v34 = vpack.c.bf16 %v339_v27, %v331_v26  ;;  %v676_v26 = vld [vmem:[#allocation5 + $0xf68] sm:$0xff]  ;;  %v2662_v27 = vpack.c.bf16 %v403_v20, %v395_v19  ;;  %v189_v20 = vld [vmem:[#allocation5 + $0x30] sm:$0xff] }
 0x15e   :  { %2885 = vmatprep.subr.bf16.mxu1 %v2884_v36  ;;  %v2648_v36 = vpack.c.bf16 %v356_v31, %v348_v30  ;;  %v96_v33 = vrot.slane %v95_v28, 2 }
 0x163   :  { %2631 = vmatpush1.bf16.xpose.msra.mxu0 %v2630_v46  ;;  %v628_v46 = vld [vmem:[#allocation5 + $0xde8] sm:$0xff] }
 0x164   :  { %2633 = vmatprep.subr.bf16.mxu0 %v2632_v48  ;;  %v2906_v48 = vpack.c.bf16 %v611_v41, %v603_v40  ;;  %v2908_v51 = vpack.c.bf16 %v628_v46, %v620_v45  ;;  %v436_v40 = vld [vmem:[#allocation5 + $0x7e8] sm:$0xff]  ;;  %v97_v45 = vadd.f32 %v96_v33, %v95_v28  ;;  %v462_v28 = vld [vmem:[#allocation5 + $0x8b8] sm:$0xff] }
 0x165   :  { %2887 = vmatpush1.bf16.xpose.msra.mxu1 %v2886_v47  ;;  %v2650_v47 = vpack.c.bf16 %v355_v39, %v347_v38  ;;  %v675_v38 = vld [vmem:[#allocation5 + $0xf60] sm:$0xff]  ;;  %v428_v39 = vld [vmem:[#allocation5 + $0x7a8] sm:$0xff] }
 0x166   :  { %2889 = vmatprep.subr.bf16.mxu1 %v2888_v50  ;;  %v2652_v50 = vpack.c.bf16 %v372_v44, %v364_v43  ;;  %v684_v41 = vld [vmem:[#allocation5 + $0xfa8] sm:$0xff] }
 0x167   :  { %v692_v43 = vld [vmem:[#allocation5 + $0xfe8] sm:$0xff] }
 0x16b   :  { %2635 = vmatpush1.bf16.xpose.msra.mxu0 %v2634_v60  ;;  %v644_v60 = vld [vmem:[#allocation5 + $0xe68] sm:$0xff] }
 0x16c   :  { %2637 = vmatprep.subr.bf16.mxu0 %v2636_v62  ;;  %v2910_v62 = vpack.c.bf16 %v627_v56, %v619_v55  ;;  %v2912_v1 = vpack.c.bf16 %v644_v60, %v636_v59  ;;  %v435_v55 = vld [vmem:[#allocation5 + $0x7e0] sm:$0xff]  ;;  %v98_v56 = vrot.slane %v97_v45, 1 }
 0x16d   :  { %2891 = vmatpush1.bf16.xpose.msra.mxu1 %v2890_v61  ;;  %v2654_v61 = vpack.c.bf16 %v371_v53, %v363_v52  ;;  %v69_v52 = vld [vmem:[#allocation2 + $0x78] sm:$0xff]  ;;  %v427_v53 = vld [vmem:[#allocation5 + $0x7a0] sm:$0xff] }
 0x16e   :  { %2893 = vmatprep.subr.bf16.mxu1 %v2892_v0  ;;  %v2656_v0 = vpack.c.bf16 %v388_v58, %v380_v57  ;;  %v160_v59 = vrot.slane %v69_v52, 4  ;;  %v683_v60 = vld [vmem:[#allocation5 + $0xfa0] sm:$0xff] }
 0x173   :  { %2639 = vmatpush1.bf16.xpose.msra.mxu0 %v2638_v10  ;;  %v660_v10 = vld [vmem:[#allocation5 + $0xee8] sm:$0xff] }
 0x174   :  { %2641 = vmatprep.subr.bf16.mxu0 %v2640_v12  ;;  %v2914_v12 = vpack.c.bf16 %v643_v5, %v635_v4  ;;  %v2916_v16 = vpack.c.bf16 %v660_v10, %v652_v9  ;;  %v446_v4 = vld [vmem:[#allocation5 + $0x838] sm:$0xff] }
 0x175   :  { %2895 = vmatpush1.bf16.xpose.msra.mxu1 %v2894_v11  ;;  %v2658_v11 = vpack.c.bf16 %v387_v3, %v379_v2  ;;  %v161_v2 = vadd.f32 %v160_v59, %v69_v52  ;;  %v2670_v3 = vpack.c.bf16 %v435_v55, %v427_v53  ;;  %v454_v5 = vld [vmem:[#allocation5 + $0x878] sm:$0xff]  ;;  %v221_v52 = vld [vmem:[#allocation5 + $0x130] sm:$0xff] }
 0x176   :  { %2897 = vmatprep.subr.bf16.mxu1 %v2896_v13  ;;  %v2660_v13 = vpack.c.bf16 %v404_v8, %v396_v7  ;;  %v99_v7 = vadd.f32 %v98_v56, %v97_v45  ;;  %v478_v45 = vld [vmem:[#allocation5 + $0x938] sm:$0xff]  ;;  %v229_v53 = vld [vmem:[#allocation5 + $0x170] sm:$0xff] }
 0x177   :  { %v162_v10 = vrot.slane %v161_v2, 2  ;;  %v477_v55 = vld [vmem:[#allocation5 + $0x930] sm:$0xff]  ;;  %v494_v59 = vld [vmem:[#allocation5 + $0x9b8] sm:$0xff] }
 0x178   :  { %v485_v56 = vld [vmem:[#allocation5 + $0x970] sm:$0xff] }
 0x179   :  { %v163_v15 = vadd.f32 %v162_v10, %v161_v2  ;;  %v237_v2 = vld [vmem:[#allocation5 + $0x1b0] sm:$0xff]  ;;  %v518_v10 = vld [vmem:[#allocation5 + $0xa78] sm:$0xff] }
 0x17b   :  { %2643 = vmatpush1.bf16.xpose.msra.mxu0 %v2642_v22  ;;  %v659_v22 = vld [vmem:[#allocation5 + $0xee0] sm:$0xff]  ;;  %v164_v19 = vrot.slane %v163_v15, 1 }
 0x17c   :  { %2645 = vmatprep.subr.bf16.mxu0 %v2644_v24  ;;  %v420_v24 = vld [vmem:[#allocation5 + $0x768] sm:$0xff]  ;;  %v2918_v30 = vpack.c.bf16 %v659_v22, %v651_v21  ;;  %v197_v21 = vld [vmem:[#allocation5 + $0x70] sm:$0xff] }
 0x17d   :  { %2899 = vmatpush1.bf16.xpose.msra.mxu1 %v2898_v23  ;;  %v412_v23 = vld [vmem:[#allocation5 + $0x728] sm:$0xff]  ;;  %v445_v22 = vld [vmem:[#allocation5 + $0x830] sm:$0xff] }
 0x17e   :  { %2901 = vmatprep.subr.bf16.mxu1 %v2900_v25  ;;  %v668_v25 = vld [vmem:[#allocation5 + $0xf28] sm:$0xff]  ;;  %v2664_v31 = vpack.c.bf16 %v420_v24, %v412_v23  ;;  %v453_v23 = vld [vmem:[#allocation5 + $0x870] sm:$0xff]  ;;  %v206_v24 = vld [vmem:[#allocation5 + $0xb8] sm:$0xff] }
 0x17f   :  { %v2920_v32 = vpack.c.bf16 %v676_v26, %v668_v25  ;;  %v214_v25 = vld [vmem:[#allocation5 + $0xf8] sm:$0xff] }
 0x183   :  { %2647 = vmatpush1.bf16.xpose.msra.mxu0 %v2646_v34  ;;  %v144_v34 = vrot.slane %v143_v29, 2 }
 0x184   :  { %2649 = vmatprep.subr.bf16.mxu0 %v2648_v36  ;;  %v419_v36 = vld [vmem:[#allocation5 + $0x760] sm:$0xff] }
 0x185   :  { %2903 = vmatpush1.bf16.xpose.msra.mxu1 %v2902_v35  ;;  %v411_v35 = vld [vmem:[#allocation5 + $0x720] sm:$0xff]  ;;  %v145_v46 = vadd.f32 %v144_v34, %v143_v29  ;;  %v470_v29 = vld [vmem:[#allocation5 + $0x8f8] sm:$0xff]  ;;  %v2930_v34 = vpack.c.bf16 %v453_v23, %v445_v22 }
 0x186   :  { %2905 = vmatprep.subr.bf16.mxu1 %v2904_v37  ;;  %v667_v37 = vld [vmem:[#allocation5 + $0xf20] sm:$0xff]  ;;  %v2666_v44 = vpack.c.bf16 %v419_v36, %v411_v35  ;;  %v2676_v35 = vpack.c.bf16 %v214_v25, %v206_v24  ;;  %v2932_v36 = vpack.c.bf16 %v470_v29, %v462_v28  ;;  %v534_v22 = vld [vmem:[#allocation5 + $0xaf8] sm:$0xff]  ;;  %v277_v28 = vld [vmem:[#allocation5 + $0x2f0] sm:$0xff] }
 0x187   :  { %v146_v57 = vrot.slane %v145_v46, 1  ;;  %v525_v29 = vld [vmem:[#allocation5 + $0xab0] sm:$0xff] }
 0x189   :  { %v147_v8 = vadd.f32 %v146_v57, %v145_v46  ;;  %v486_v46 = vld [vmem:[#allocation5 + $0x978] sm:$0xff] }
 0x18a   :  { %v238_v57 = vld [vmem:[#allocation5 + $0x1b8] sm:$0xff] }
 0x18b   :  { %2651 = vmatpush1.bf16.xpose.msra.mxu0 %v2650_v47  ;;  %v2922_v47 = vpack.c.bf16 %v675_v38, %v667_v37  ;;  %v179_v17 = vmul.f32 0.125, %v147_v8  ;;  %v205_v38 = vld [vmem:[#allocation5 + $0xb0] sm:$0xff]  ;;  %v262_v8 = vld [vmem:[#allocation5 + $0x278] sm:$0xff] }
 0x18c   :  { %2653 = vmatprep.subr.bf16.mxu0 %v2652_v50  ;;  %v2924_v50 = vpack.c.bf16 %v692_v43, %v684_v41  ;;  %v469_v41 = vld [vmem:[#allocation5 + $0x8f0] sm:$0xff]  ;;  %v222_v43 = vld [vmem:[#allocation5 + $0x138] sm:$0xff] }
 0x18d   :  { %2907 = vmatpush1.bf16.xpose.msra.mxu1 %v2906_v48  ;;  %v2668_v48 = vpack.c.bf16 %v436_v40, %v428_v39  ;;  %v213_v39 = vld [vmem:[#allocation5 + $0xf0] sm:$0xff] }
 0x18e   :  { %2909 = vmatprep.subr.bf16.mxu1 %v2908_v51  ;;  %v61_v51 = vld [vmem:[#allocation2 + $0x38] sm:$0xff]  ;;  %v461_v40 = vld [vmem:[#allocation5 + $0x8b0] sm:$0xff] }
 0x18f   :  { %v112_v58 = vrot.slane %v61_v51, 4 }
 0x193   :  { %2655 = vmatpush1.bf16.xpose.msra.mxu0 %v2654_v61  ;;  %v691_v61 = vld [vmem:[#allocation5 + $0xfe0] sm:$0xff] }
 0x194   :  { %2657 = vmatprep.subr.bf16.mxu0 %v2656_v0  ;;  %v198_v0 = vld [vmem:[#allocation5 + $0x78] sm:$0xff] }
 0x195   :  { %2911 = vmatpush1.bf16.xpose.msra.mxu1 %v2910_v62  ;;  %v190_v62 = vld [vmem:[#allocation5 + $0x38] sm:$0xff] }
 0x196   :  { %2913 = vmatprep.subr.bf16.mxu1 %v2912_v1  ;;  %v113_v1 = vadd.f32 %v112_v58, %v61_v51  ;;  %v2936_v51 = vpack.c.bf16 %v486_v46, %v478_v45  ;;  %v246_v58 = vld [vmem:[#allocation5 + $0x1f8] sm:$0xff]  ;;  %v549_v45 = vld [vmem:[#allocation5 + $0xb70] sm:$0xff] }
 0x197   :  { %v302_v46 = vld [vmem:[#allocation5 + $0x3b8] sm:$0xff] }
 0x198   :  { %v114_v9 = vrot.slane %v113_v1, 2 }
 0x19a   :  { %v115_v14 = vadd.f32 %v114_v9, %v113_v1  ;;  %v510_v9 = vld [vmem:[#allocation5 + $0xa38] sm:$0xff] }
 0x19b   :  { %2659 = vmatpush1.bf16.xpose.msra.mxu0 %v2658_v11  ;;  %v2926_v11 = vpack.c.bf16 %v691_v61, %v683_v60  ;;  %v502_v60 = vld [vmem:[#allocation5 + $0x9f8] sm:$0xff]  ;;  %v2682_v61 = vpack.c.bf16 %v229_v53, %v221_v52 }
 0x19c   :  { %2661 = vmatprep.subr.bf16.mxu0 %v2660_v13  ;;  %v2928_v13 = vpack.c.bf16 %v454_v5, %v446_v4  ;;  %v116_v18 = vrot.slane %v115_v14, 1  ;;  %v2940_v1 = vpack.c.bf16 %v502_v60, %v494_v59  ;;  %v493_v4 = vld [vmem:[#allocation5 + $0x9b0] sm:$0xff]  ;;  %v318_v60 = vld [vmem:[#allocation5 + $0x438] sm:$0xff] }
 0x19d   :  { %2915 = vmatpush1.bf16.xpose.msra.mxu1 %v2914_v12  ;;  %v2672_v12 = vpack.c.bf16 %v198_v0, %v190_v62  ;;  %v2938_v62 = vpack.c.bf16 %v485_v56, %v477_v55  ;;  %v2684_v0 = vpack.c.bf16 %v246_v58, %v238_v57  ;;  %v501_v5 = vld [vmem:[#allocation5 + $0x9f0] sm:$0xff] }
 0x19e   :  { %2917 = vmatprep.subr.bf16.mxu1 %v2916_v16  ;;  %v171_v16 = vmul.f32 0.125, %v99_v7  ;;  %v117_v26 = vadd.f32 %v116_v18, %v115_v14  ;;  %v254_v7 = vld [vmem:[#allocation5 + $0x238] sm:$0xff]  ;;  %v2944_v14 = vpack.c.bf16 %v518_v10, %v510_v9  ;;  %v517_v18 = vld [vmem:[#allocation5 + $0xa70] sm:$0xff] }
 0x19f   :  { %v301_v56 = vld [vmem:[#allocation5 + $0x3b0] sm:$0xff]  ;;  %v334_v10 = vld [vmem:[#allocation5 + $0x4b8] sm:$0xff] }
 0x1a0   :  { %v309_v57 = vld [vmem:[#allocation5 + $0x3f0] sm:$0xff] }
 0x1a1   :  { %v557_v58 = vld [vmem:[#allocation5 + $0xbb0] sm:$0xff] }
 0x1a2   :  { %v565_v59 = vld [vmem:[#allocation5 + $0xbf0] sm:$0xff] }
 0x1a3   :  { %2663 = vmatpush1.bf16.xpose.msra.mxu0 %v2662_v27  ;;  %v165_v27 = vadd.f32 %v164_v19, %v163_v15  ;;  %v253_v15 = vld [vmem:[#allocation5 + $0x230] sm:$0xff]  ;;  %v270_v19 = vld [vmem:[#allocation5 + $0x2b8] sm:$0xff] }
 0x1a4   :  { %2665 = vmatprep.subr.bf16.mxu0 %v2664_v31  ;;  %v2674_v31 = vpack.c.bf16 %v197_v21, %v189_v20  ;;  %v278_v20 = vld [vmem:[#allocation5 + $0x2f8] sm:$0xff]  ;;  %v581_v9 = vld [vmem:[#allocation5 + $0xc70] sm:$0xff] }
 0x1a5   :  { %2919 = vmatpush1.bf16.xpose.msra.mxu1 %v2918_v30  ;;  %v3734_v30 = vsel %vm1265_vm0, %v179_v17, %v171_v16  ;;  %v182_v33 = vmul.f32 0.125, %v165_v27  ;;  %v261_v16 = vld [vmem:[#allocation5 + $0x270] sm:$0xff]  ;;  %v526_v21 = vld [vmem:[#allocation5 + $0xab8] sm:$0xff]  ;;  %v2692_v25 = vpack.c.bf16 %v278_v20, %v270_v19 }
 0x1a6   :  { %2921 = vmatprep.subr.bf16.mxu1 %v2920_v32  ;;  %v174_v32 = vmul.f32 0.125, %v117_v26  ;;  %v509_v17 = vld [vmem:[#allocation5 + $0xa30] sm:$0xff]  ;;  %v2690_v23 = vpack.c.bf16 %v261_v16, %v253_v15  ;;  %v2948_v26 = vpack.c.bf16 %v534_v22, %v526_v21  ;;  %v350_v22 = vld [vmem:[#allocation5 + $0x538] sm:$0xff] }
 0x1a7   :  { %v2946_v24 = vpack.c.bf16 %v517_v18, %v509_v17  ;;  %v269_v27 = vld [vmem:[#allocation5 + $0x2b0] sm:$0xff] }
 0x1a8   :  { %v3738_v37 = vsel %vm1265_vm0, %v182_v33, %v174_v32  ;;  %v286_v32 = vld [vmem:[#allocation5 + $0x338] sm:$0xff]  ;;  %v333_v18 = vld [vmem:[#allocation5 + $0x4b0] sm:$0xff] }
 0x1a9   :  { %v294_v33 = vld [vmem:[#allocation5 + $0x378] sm:$0xff]  ;;  %v341_v19 = vld [vmem:[#allocation5 + $0x4f0] sm:$0xff] }
 0x1aa   :  { %v589_v20 = vld [vmem:[#allocation5 + $0xcb0] sm:$0xff] }
 0x1ab   :  { %2667 = vmatpush1.bf16.xpose.msra.mxu0 %v2666_v44  ;;  %v230_v44 = vld [vmem:[#allocation5 + $0x178] sm:$0xff]  ;;  %v597_v21 = vld [vmem:[#allocation5 + $0xcf0] sm:$0xff] }
 0x1ac   :  { %2669 = vmatprep.subr.bf16.mxu0 %v2668_v48  ;;  %v2934_v48 = vpack.c.bf16 %v469_v41, %v461_v40  ;;  %v285_v41 = vld [vmem:[#allocation5 + $0x330] sm:$0xff] }
 0x1ad   :  { %2923 = vmatpush1.bf16.xpose.msra.mxu1 %v2922_v47  ;;  %v2678_v47 = vpack.c.bf16 %v213_v39, %v205_v38  ;;  %v2696_v39 = vpack.c.bf16 %v294_v33, %v286_v32  ;;  %v357_v32 = vld [vmem:[#allocation5 + $0x570] sm:$0xff] }
 0x1ae   :  { %2925 = vmatprep.subr.bf16.mxu1 %v2924_v50  ;;  %v2680_v50 = vpack.c.bf16 %v230_v44, %v222_v43  ;;  %v293_v43 = vld [vmem:[#allocation5 + $0x370] sm:$0xff] }
 0x1af   :  { %v541_v44 = vld [vmem:[#allocation5 + $0xb30] sm:$0xff] }
 0x1b0   :  { %v2954_v52 = vpack.c.bf16 %v549_v45, %v541_v44  ;;  %v605_v33 = vld [vmem:[#allocation5 + $0xd30] sm:$0xff] }
 0x1b1   :  { %v365_v45 = vld [vmem:[#allocation5 + $0x5b0] sm:$0xff] }
 0x1b3   :  { %2671 = vmatpush1.bf16.xpose.msra.mxu0 %v2670_v3  ;;  %v245_v3 = vld [vmem:[#allocation5 + $0x1f0] sm:$0xff] }
 0x1b4   :  { %2673 = vmatprep.subr.bf16.mxu0 %v2672_v12  ;;  %v2942_v12 = vpack.c.bf16 %v501_v5, %v493_v4  ;;  %v317_v5 = vld [vmem:[#allocation5 + $0x430] sm:$0xff] }
 0x1b5   :  { %2927 = vmatpush1.bf16.xpose.msra.mxu1 %v2926_v11  ;;  %v2686_v11 = vpack.c.bf16 %v245_v3, %v237_v2  ;;  %v2958_v2 = vpack.c.bf16 %v565_v59, %v557_v58  ;;  %v381_v59 = vld [vmem:[#allocation5 + $0x630] sm:$0xff] }
 0x1b6   :  { %2929 = vmatprep.subr.bf16.mxu1 %v2928_v13  ;;  %v2688_v13 = vpack.c.bf16 %v262_v8, %v254_v7  ;;  %v325_v7 = vld [vmem:[#allocation5 + $0x470] sm:$0xff] }
 0x1b7   :  { %v573_v8 = vld [vmem:[#allocation5 + $0xc30] sm:$0xff] }
 0x1b8   :  { %v2962_v15 = vpack.c.bf16 %v581_v9, %v573_v8  ;;  %v60_v8 = vld [vmem:[#allocation2 + $0x30] sm:$0xff] }
 0x1b9   :  { %v68_v9 = vld [vmem:[#allocation2 + $0x70] sm:$0xff] }
 0x1ba   :  { %1489 = vmatmul.mubr.f32.vlgmr.msra.gmra.mrb[0].mxu0 %v3734_v30 }
 0x1bb   :  { %2675 = vmatpush1.bf16.xpose.msra.mxu0 %v2674_v31  ;;  %1559 = vmatprep.mubr.f32.mxu0 %v3738_v37  ;;  %v533_v31 = vld [vmem:[#allocation5 + $0xaf0] sm:$0xff] }
 0x1bc   :  { %1773 = vmatmul.mubr.f32.vlgmr.msra.gmra.mrb[0].mxu1 %v3734_v30  ;;  %2677 = vmatprep.subr.bf16.mxu0 %v2676_v35  ;;  %v550_v35 = vld [vmem:[#allocation5 + $0xb78] sm:$0xff]  ;;  %v2950_v38 = vpack.c.bf16 %v533_v31, %v525_v29  ;;  %v349_v31 = vld [vmem:[#allocation5 + $0x530] sm:$0xff] }
 0x1bd   :  { %2931 = vmatpush1.bf16.xpose.msra.mxu1 %v2930_v34  ;;  %1843 = vmatprep.mubr.f32.mxu1 %v3738_v37  ;;  %v542_v34 = vld [vmem:[#allocation5 + $0xb38] sm:$0xff] }
 0x1be   :  { %2933 = vmatprep.subr.bf16.mxu1 %v2932_v36  ;;  %v2694_v36 = vpack.c.bf16 %v277_v28, %v269_v27  ;;  %v2952_v40 = vpack.c.bf16 %v550_v35, %v542_v34  ;;  %v2966_v27 = vpack.c.bf16 %v597_v21, %v589_v20  ;;  %v613_v34 = vld [vmem:[#allocation5 + $0xd70] sm:$0xff]  ;;  %v366_v35 = vld [vmem:[#allocation5 + $0x5b8] sm:$0xff] }
 0x1bf   :  { %v678_v20 = vld [vmem:[#allocation5 + $0xf78] sm:$0xff] }
 0x1c3   :  { %2679 = vmatpush1.bf16.xpose.msra.mxu0 %v2678_v47  ;;  %v310_v47 = vld [vmem:[#allocation5 + $0x3f8] sm:$0xff] }
 0x1c4   :  { %2681 = vmatprep.subr.bf16.mxu0 %v2680_v50  ;;  %v566_v50 = vld [vmem:[#allocation5 + $0xbf8] sm:$0xff]  ;;  %v2700_v53 = vpack.c.bf16 %v310_v47, %v302_v46  ;;  %v373_v46 = vld [vmem:[#allocation5 + $0x5f0] sm:$0xff] }
 0x1c5   :  { %2935 = vmatpush1.bf16.xpose.msra.mxu1 %v2934_v48  ;;  %v558_v48 = vld [vmem:[#allocation5 + $0xbb8] sm:$0xff]  ;;  %v621_v47 = vld [vmem:[#allocation5 + $0xdb0] sm:$0xff] }
 0x1c6   :  { %2937 = vmatprep.subr.bf16.mxu1 %v2936_v51  ;;  %v2698_v51 = vpack.c.bf16 %v293_v43, %v285_v41  ;;  %v2956_v55 = vpack.c.bf16 %v566_v50, %v558_v48  ;;  %v2970_v41 = vpack.c.bf16 %v613_v34, %v605_v33  ;;  %v629_v48 = vld [vmem:[#allocation5 + $0xdf0] sm:$0xff]  ;;  %v382_v50 = vld [vmem:[#allocation5 + $0x638] sm:$0xff] }
 0x1c7   :  { %v677_v33 = vld [vmem:[#allocation5 + $0xf70] sm:$0xff]  ;;  %v430_v34 = vld [vmem:[#allocation5 + $0x7b8] sm:$0xff] }
 0x1cb   :  { %2683 = vmatpush1.bf16.xpose.msra.mxu0 %v2682_v61  ;;  %v326_v61 = vld [vmem:[#allocation5 + $0x478] sm:$0xff] }
 0x1cc   :  { %2685 = vmatprep.subr.bf16.mxu0 %v2684_v0  ;;  %v582_v0 = vld [vmem:[#allocation5 + $0xc78] sm:$0xff]  ;;  %v2704_v3 = vpack.c.bf16 %v326_v61, %v318_v60  ;;  %v389_v60 = vld [vmem:[#allocation5 + $0x670] sm:$0xff] }
 0x1cd   :  { %2939 = vmatpush1.bf16.xpose.msra.mxu1 %v2938_v62  ;;  %v574_v62 = vld [vmem:[#allocation5 + $0xc38] sm:$0xff]  ;;  %v637_v61 = vld [vmem:[#allocation5 + $0xe30] sm:$0xff] }
 0x1ce   :  { %2941 = vmatprep.subr.bf16.mxu1 %v2940_v1  ;;  %v2702_v1 = vpack.c.bf16 %v309_v57, %v301_v56  ;;  %v2960_v4 = vpack.c.bf16 %v582_v0, %v574_v62  ;;  %v2974_v56 = vpack.c.bf16 %v629_v48, %v621_v47  ;;  %v645_v62 = vld [vmem:[#allocation5 + $0xe70] sm:$0xff]  ;;  %v398_v0 = vld [vmem:[#allocation5 + $0x6b8] sm:$0xff] }
 0x1cf   :  { %v429_v48 = vld [vmem:[#allocation5 + $0x7b0] sm:$0xff] }
 0x1d3   :  { %2687 = vmatpush1.bf16.xpose.msra.mxu0 %v2686_v11  ;;  %v342_v11 = vld [vmem:[#allocation5 + $0x4f8] sm:$0xff] }
 0x1d4   :  { %2689 = vmatprep.subr.bf16.mxu0 %v2688_v13  ;;  %v598_v13 = vld [vmem:[#allocation5 + $0xcf8] sm:$0xff]  ;;  %v2708_v16 = vpack.c.bf16 %v342_v11, %v334_v10  ;;  %v106_v11 = vrot.slane %v60_v8, 4 }
 0x1d5   :  { %2943 = vmatpush1.bf16.xpose.msra.mxu1 %v2942_v12  ;;  %v590_v12 = vld [vmem:[#allocation5 + $0xcb8] sm:$0xff] }
 0x1d6   :  { %2945 = vmatprep.subr.bf16.mxu1 %v2944_v14  ;;  %v2706_v14 = vpack.c.bf16 %v325_v7, %v317_v5  ;;  %v2964_v17 = vpack.c.bf16 %v598_v13, %v590_v12  ;;  %v2978_v5 = vpack.c.bf16 %v645_v62, %v637_v61  ;;  %v154_v12 = vrot.slane %v68_v9, 4  ;;  %v397_v13 = vld [vmem:[#allocation5 + $0x6b0] sm:$0xff] }
 0x1db   :  { %2691 = vmatpush1.bf16.xpose.msra.mxu0 %v2690_v23  ;;  %v358_v23 = vld [vmem:[#allocation5 + $0x578] sm:$0xff] }
 0x1dc   :  { %2693 = vmatprep.subr.bf16.mxu0 %v2692_v25  ;;  %v614_v25 = vld [vmem:[#allocation5 + $0xd78] sm:$0xff]  ;;  %v2712_v28 = vpack.c.bf16 %v358_v23, %v350_v22  ;;  %v107_v22 = vadd.f32 %v106_v11, %v60_v8  ;;  %v155_v23 = vadd.f32 %v154_v12, %v68_v9  ;;  %v712_v8 = vld [vmem:[#allocation5 + $0x1088] sm:$0xff] }
 0x1dd   :  { %2947 = vmatpush1.bf16.xpose.msra.mxu1 %v2946_v24  ;;  %v606_v24 = vld [vmem:[#allocation5 + $0xd38] sm:$0xff]  ;;  %v720_v9 = vld [vmem:[#allocation5 + $0x10c8] sm:$0xff] }
 0x1de   :  { %2949 = vmatprep.subr.bf16.mxu1 %v2948_v26  ;;  %v2710_v26 = vpack.c.bf16 %v341_v19, %v333_v18  ;;  %v2968_v29 = vpack.c.bf16 %v614_v25, %v606_v24  ;;  %v422_v18 = vld [vmem:[#allocation5 + $0x778] sm:$0xff]  ;;  %v976_v11 = vld [vmem:[#allocation5 + $0x18c8] sm:$0xff] }
 0x1df   :  { %v670_v19 = vld [vmem:[#allocation5 + $0xf38] sm:$0xff] }
 0x1e3   :  { %2695 = vmatpush1.bf16.xpose.msra.mxu0 %v2694_v36  ;;  %v374_v36 = vld [vmem:[#allocation5 + $0x5f8] sm:$0xff] }
 0x1e4   :  { %2697 = vmatprep.subr.bf16.mxu0 %v2696_v39  ;;  %v630_v39 = vld [vmem:[#allocation5 + $0xdf8] sm:$0xff]  ;;  %v2716_v43 = vpack.c.bf16 %v374_v36, %v366_v35 }
 0x1e5   :  { %2951 = vmatpush1.bf16.xpose.msra.mxu1 %v2950_v38  ;;  %v622_v38 = vld [vmem:[#allocation5 + $0xdb8] sm:$0xff] }
 0x1e6   :  { %2953 = vmatprep.subr.bf16.mxu1 %v2952_v40  ;;  %v2714_v40 = vpack.c.bf16 %v357_v32, %v349_v31  ;;  %v2972_v44 = vpack.c.bf16 %v630_v39, %v622_v38  ;;  %v421_v31 = vld [vmem:[#allocation5 + $0x770] sm:$0xff]  ;;  %v438_v35 = vld [vmem:[#allocation5 + $0x7f8] sm:$0xff] }
 0x1e7   :  { %v669_v32 = vld [vmem:[#allocation5 + $0xf30] sm:$0xff]  ;;  %v686_v36 = vld [vmem:[#allocation5 + $0xfb8] sm:$0xff] }
 0x1e8   :  { %v694_v38 = vld [vmem:[#allocation5 + $0xff8] sm:$0xff] }
 0x1eb   :  { %2699 = vmatpush1.bf16.xpose.msra.mxu0 %v2698_v51  ;;  %v390_v51 = vld [vmem:[#allocation5 + $0x678] sm:$0xff] }
 0x1ec   :  { %2701 = vmatprep.subr.bf16.mxu0 %v2700_v53  ;;  %v646_v53 = vld [vmem:[#allocation5 + $0xe78] sm:$0xff]  ;;  %v2720_v57 = vpack.c.bf16 %v390_v51, %v382_v50  ;;  %v437_v50 = vld [vmem:[#allocation5 + $0x7f0] sm:$0xff] }
 0x1ed   :  { %2955 = vmatpush1.bf16.xpose.msra.mxu1 %v2954_v52  ;;  %v638_v52 = vld [vmem:[#allocation5 + $0xe38] sm:$0xff]  ;;  %v685_v51 = vld [vmem:[#allocation5 + $0xfb0] sm:$0xff] }
 0x1ee   :  { %2957 = vmatprep.subr.bf16.mxu1 %v2956_v55  ;;  %v2718_v55 = vpack.c.bf16 %v373_v46, %v365_v45  ;;  %v2976_v58 = vpack.c.bf16 %v646_v53, %v638_v52  ;;  %v2988_v45 = vpack.c.bf16 %v694_v38, %v686_v36  ;;  %v693_v52 = vld [vmem:[#allocation5 + $0xff0] sm:$0xff]  ;;  %v696_v53 = vld [vmem:[#allocation5 + $0x1008] sm:$0xff] }
 0x1ef   :  { %v2990_v61 = vpack.c.bf16 %v693_v52, %v685_v51  ;;  %v1000_v36 = vld [vmem:[#allocation5 + $0x1988] sm:$0xff] }
 0x1f0   :  { %v1008_v38 = vld [vmem:[#allocation5 + $0x19c8] sm:$0xff] }
 0x1f1   :  { %v1024_v51 = vld [vmem:[#allocation5 + $0x1a48] sm:$0xff] }
 0x1f3   :  { %2703 = vmatpush1.bf16.xpose.msra.mxu0 %v2702_v1  ;;  %v406_v1 = vld [vmem:[#allocation5 + $0x6f8] sm:$0xff] }
 0x1f4   :  { %2705 = vmatprep.subr.bf16.mxu0 %v2704_v3  ;;  %v662_v3 = vld [vmem:[#allocation5 + $0xef8] sm:$0xff]  ;;  %v2724_v7 = vpack.c.bf16 %v406_v1, %v398_v0 }
 0x1f5   :  { %2959 = vmatpush1.bf16.xpose.msra.mxu1 %v2958_v2  ;;  %v654_v2 = vld [vmem:[#allocation5 + $0xeb8] sm:$0xff] }
 0x1f6   :  { %2961 = vmatprep.subr.bf16.mxu1 %v2960_v4  ;;  %v2722_v4 = vpack.c.bf16 %v389_v60, %v381_v59  ;;  %v2980_v10 = vpack.c.bf16 %v662_v3, %v654_v2  ;;  %v695_v3 = vld [vmem:[#allocation5 + $0x1000] sm:$0xff] }
 0x1fb   :  { %2707 = vmatpush1.bf16.xpose.msra.mxu0 %v2706_v14  ;;  %v405_v14 = vld [vmem:[#allocation5 + $0x6f0] sm:$0xff] }
 0x1fc   :  { %2709 = vmatprep.subr.bf16.mxu0 %v2708_v16  ;;  %v661_v16 = vld [vmem:[#allocation5 + $0xef0] sm:$0xff]  ;;  %v2726_v21 = vpack.c.bf16 %v405_v14, %v397_v13 }
 0x1fd   :  { %2963 = vmatpush1.bf16.xpose.msra.mxu1 %v2962_v15  ;;  %v653_v15 = vld [vmem:[#allocation5 + $0xeb0] sm:$0xff] }
 0x1fe   :  { %2965 = vmatprep.subr.bf16.mxu1 %v2964_v17  ;;  %v414_v17 = vld [vmem:[#allocation5 + $0x738] sm:$0xff]  ;;  %v2982_v24 = vpack.c.bf16 %v661_v16, %v653_v15  ;;  %v2996_v15 = vpack.c.bf16 %v720_v9, %v712_v8  ;;  %v783_v8 = vld [vmem:[#allocation5 + $0x12c0] sm:$0xff] }
 0x1ff   :  { %v2728_v25 = vpack.c.bf16 %v422_v18, %v414_v17  ;;  %v711_v17 = vld [vmem:[#allocation5 + $0x1080] sm:$0xff] }
 0x200   :  { %v719_v18 = vld [vmem:[#allocation5 + $0x10c0] sm:$0xff] }
 0x201   :  { %v1031_v9 = vld [vmem:[#allocation5 + $0x1a80] sm:$0xff] }
 0x203   :  { %2711 = vmatpush1.bf16.xpose.msra.mxu0 %v2710_v26  ;;  %v2984_v26 = vpack.c.bf16 %v678_v20, %v670_v19  ;;  %v967_v19 = vld [vmem:[#allocation5 + $0x1880] sm:$0xff] }
 0x204   :  { %2713 = vmatprep.subr.bf16.mxu0 %v2712_v28  ;;  %v156_v28 = vrot.slane %v155_v23, 2  ;;  %v975_v20 = vld [vmem:[#allocation5 + $0x18c0] sm:$0xff] }
 0x205   :  { %2967 = vmatpush1.bf16.xpose.msra.mxu1 %v2966_v27  ;;  %v108_v27 = vrot.slane %v107_v22, 2 }
 0x206   :  { %2969 = vmatprep.subr.bf16.mxu1 %v2968_v29  ;;  %v413_v29 = vld [vmem:[#allocation5 + $0x730] sm:$0xff] }
 0x207   :  { %v2730_v39 = vpack.c.bf16 %v421_v31, %v413_v29  ;;  %v727_v29 = vld [vmem:[#allocation5 + $0x1100] sm:$0xff] }
 0x208   :  { %v735_v31 = vld [vmem:[#allocation5 + $0x1140] sm:$0xff] }
 0x20b   :  { %2715 = vmatpush1.bf16.xpose.msra.mxu0 %v2714_v40  ;;  %v109_v40 = vadd.f32 %v108_v27, %v107_v22  ;;  %v736_v22 = vld [vmem:[#allocation5 + $0x1148] sm:$0xff] }
 0x20c   :  { %2717 = vmatprep.subr.bf16.mxu0 %v2716_v43  ;;  %v2986_v43 = vpack.c.bf16 %v677_v33, %v669_v32  ;;  %v983_v32 = vld [vmem:[#allocation5 + $0x1900] sm:$0xff] }
 0x20d   :  { %2971 = vmatpush1.bf16.xpose.msra.mxu1 %v2970_v41  ;;  %v157_v41 = vadd.f32 %v156_v28, %v155_v23  ;;  %v110_v46 = vrot.slane %v109_v40, 1  ;;  %v984_v23 = vld [vmem:[#allocation5 + $0x1908] sm:$0xff]  ;;  %v991_v33 = vld [vmem:[#allocation5 + $0x1940] sm:$0xff] }
 0x20e   :  { %2973 = vmatprep.subr.bf16.mxu1 %v2972_v44  ;;  %v2732_v44 = vpack.c.bf16 %v438_v35, %v430_v34  ;;  %v744_v34 = vld [vmem:[#allocation5 + $0x1188] sm:$0xff] }
 0x20f   :  { %v158_v47 = vrot.slane %v157_v41, 1  ;;  %v111_v59 = vadd.f32 %v110_v46, %v109_v40  ;;  %v752_v35 = vld [vmem:[#allocation5 + $0x11c8] sm:$0xff]  ;;  %v3258_v40 = vpack.c.bf16 %v991_v33, %v983_v32  ;;  %v1007_v46 = vld [vmem:[#allocation5 + $0x19c0] sm:$0xff] }
 0x210   :  { %v807_v33 = vld [vmem:[#allocation5 + $0x1380] sm:$0xff] }
 0x211   :  { %v159_v60 = vadd.f32 %v158_v47, %v157_v41  ;;  %v173_v1 = vmul.f32 0.125, %v111_v59  ;;  %v3004_v41 = vpack.c.bf16 %v752_v35, %v744_v34  ;;  %v760_v47 = vld [vmem:[#allocation5 + $0x1208] sm:$0xff]  ;;  %v1015_v59 = vld [vmem:[#allocation5 + $0x1a00] sm:$0xff] }
 0x212   :  { %v815_v34 = vld [vmem:[#allocation5 + $0x13c0] sm:$0xff] }
 0x213   :  { %2719 = vmatpush1.bf16.xpose.msra.mxu0 %v2718_v55  ;;  %v704_v55 = vld [vmem:[#allocation5 + $0x1048] sm:$0xff]  ;;  %v181_v2 = vmul.f32 0.125, %v159_v60  ;;  %v1023_v60 = vld [vmem:[#allocation5 + $0x1a40] sm:$0xff] }
 0x214   :  { %2721 = vmatprep.subr.bf16.mxu0 %v2720_v57  ;;  %v960_v57 = vld [vmem:[#allocation5 + $0x1848] sm:$0xff]  ;;  %v2992_v62 = vpack.c.bf16 %v704_v55, %v696_v53  ;;  %v1063_v35 = vld [vmem:[#allocation5 + $0x1b80] sm:$0xff] }
 0x215   :  { %2975 = vmatpush1.bf16.xpose.msra.mxu1 %v2974_v56  ;;  %v952_v56 = vld [vmem:[#allocation5 + $0x1808] sm:$0xff]  ;;  %v3744_v12 = vsel %vm1265_vm0, %v181_v2, %v173_v1 }
 0x216   :  { %2977 = vmatprep.subr.bf16.mxu1 %v2976_v58  ;;  %v2734_v58 = vpack.c.bf16 %v437_v50, %v429_v48  ;;  %v3248_v0 = vpack.c.bf16 %v960_v57, %v952_v56  ;;  %v768_v48 = vld [vmem:[#allocation5 + $0x1248] sm:$0xff]  ;;  %v759_v57 = vld [vmem:[#allocation5 + $0x1200] sm:$0xff] }
 0x217   :  { %v1016_v50 = vld [vmem:[#allocation5 + $0x1a08] sm:$0xff]  ;;  %v3008_v55 = vpack.c.bf16 %v768_v48, %v760_v47  ;;  %v831_v47 = vld [vmem:[#allocation5 + $0x1440] sm:$0xff] }
 0x218   :  { %v3264_v56 = vpack.c.bf16 %v1024_v51, %v1016_v50  ;;  %v1040_v1 = vld [vmem:[#allocation5 + $0x1ac8] sm:$0xff]  ;;  %v1079_v48 = vld [vmem:[#allocation5 + $0x1c00] sm:$0xff] }
 0x219   :  { %v1087_v50 = vld [vmem:[#allocation5 + $0x1c40] sm:$0xff]  ;;  %v840_v51 = vld [vmem:[#allocation5 + $0x1488] sm:$0xff] }
 0x21b   :  { %2723 = vmatpush1.bf16.xpose.msra.mxu0 %v2722_v4  ;;  %v703_v4 = vld [vmem:[#allocation5 + $0x1040] sm:$0xff] }
 0x21c   :  { %2725 = vmatprep.subr.bf16.mxu0 %v2724_v7  ;;  %v959_v7 = vld [vmem:[#allocation5 + $0x1840] sm:$0xff]  ;;  %v2994_v13 = vpack.c.bf16 %v703_v4, %v695_v3  ;;  %v3266_v3 = vpack.c.bf16 %v1023_v60, %v1015_v59 }
 0x21d   :  { %2979 = vmatpush1.bf16.xpose.msra.mxu1 %v2978_v5  ;;  %v951_v5 = vld [vmem:[#allocation5 + $0x1800] sm:$0xff] }
 0x21e   :  { %2981 = vmatprep.subr.bf16.mxu1 %v2980_v10  ;;  %v968_v10 = vld [vmem:[#allocation5 + $0x1888] sm:$0xff]  ;;  %v3250_v14 = vpack.c.bf16 %v959_v7, %v951_v5  ;;  %v775_v7 = vld [vmem:[#allocation5 + $0x1280] sm:$0xff] }
 0x21f   :  { %v3252_v16 = vpack.c.bf16 %v976_v11, %v968_v10  ;;  %v1039_v10 = vld [vmem:[#allocation5 + $0x1ac0] sm:$0xff]  ;;  %v792_v11 = vld [vmem:[#allocation5 + $0x1308] sm:$0xff] }
 0x220   :  { %v839_v60 = vld [vmem:[#allocation5 + $0x1480] sm:$0xff] }
 0x223   :  { %2727 = vmatpush1.bf16.xpose.msra.mxu0 %v2726_v21  ;;  %v728_v21 = vld [vmem:[#allocation5 + $0x1108] sm:$0xff] }
 0x224   :  { %2729 = vmatprep.subr.bf16.mxu0 %v2728_v25  ;;  %v2998_v25 = vpack.c.bf16 %v719_v18, %v711_v17  ;;  %v3000_v27 = vpack.c.bf16 %v736_v22, %v728_v21  ;;  %v3270_v17 = vpack.c.bf16 %v1039_v10, %v1031_v9  ;;  %v799_v21 = vld [vmem:[#allocation5 + $0x1340] sm:$0xff] }
 0x225   :  { %2983 = vmatpush1.bf16.xpose.msra.mxu1 %v2982_v24  ;;  %v992_v24 = vld [vmem:[#allocation5 + $0x1948] sm:$0xff]  ;;  %v1047_v22 = vld [vmem:[#allocation5 + $0x1b00] sm:$0xff] }
 0x226   :  { %2985 = vmatprep.subr.bf16.mxu1 %v2984_v26  ;;  %v3254_v26 = vpack.c.bf16 %v975_v20, %v967_v19  ;;  %v3256_v28 = vpack.c.bf16 %v992_v24, %v984_v23  ;;  %v791_v20 = vld [vmem:[#allocation5 + $0x1300] sm:$0xff]  ;;  %v808_v24 = vld [vmem:[#allocation5 + $0x1388] sm:$0xff] }
 0x227   :  { %v1055_v23 = vld [vmem:[#allocation5 + $0x1b40] sm:$0xff] }
 0x228   :  { %v855_v10 = vld [vmem:[#allocation5 + $0x1500] sm:$0xff] }
 0x22b   :  { %2731 = vmatpush1.bf16.xpose.msra.mxu0 %v2730_v39  ;;  %v3002_v39 = vpack.c.bf16 %v735_v31, %v727_v29  ;;  %v3274_v29 = vpack.c.bf16 %v1055_v23, %v1047_v22  ;;  %v871_v23 = vld [vmem:[#allocation5 + $0x1580] sm:$0xff] }
 0x22c   :  { %2733 = vmatprep.subr.bf16.mxu0 %v2732_v44  ;;  %v751_v44 = vld [vmem:[#allocation5 + $0x11c0] sm:$0xff] }
 0x22d   :  { %2987 = vmatpush1.bf16.xpose.msra.mxu1 %v2986_v43  ;;  %v743_v43 = vld [vmem:[#allocation5 + $0x1180] sm:$0xff] }
 0x22e   :  { %2989 = vmatprep.subr.bf16.mxu1 %v2988_v45  ;;  %v999_v45 = vld [vmem:[#allocation5 + $0x1980] sm:$0xff]  ;;  %v3006_v52 = vpack.c.bf16 %v751_v44, %v743_v43 }
 0x22f   :  { %v3262_v53 = vpack.c.bf16 %v1007_v46, %v999_v45  ;;  %v823_v46 = vld [vmem:[#allocation5 + $0x1400] sm:$0xff] }
 0x233   :  { %2735 = vmatpush1.bf16.xpose.msra.mxu0 %v2734_v58  ;;  %v767_v58 = vld [vmem:[#allocation5 + $0x1240] sm:$0xff] }
 0x234   :  { %2993 = vmatprep.subr.bf16.mxu0 %v2992_v62  ;;  %v784_v62 = vld [vmem:[#allocation5 + $0x12c8] sm:$0xff]  ;;  %v3010_v2 = vpack.c.bf16 %v767_v58, %v759_v57  ;;  %v3282_v57 = vpack.c.bf16 %v1087_v50, %v1079_v48  ;;  %v903_v50 = vld [vmem:[#allocation5 + $0x1680] sm:$0xff] }
 0x235   :  { %2991 = vmatpush1.bf16.xpose.msra.mxu1 %v2990_v61  ;;  %v776_v61 = vld [vmem:[#allocation5 + $0x1288] sm:$0xff] }
 0x236   :  { %3249 = vmatprep.subr.bf16.mxu1 %v3248_v0  ;;  %v1032_v0 = vld [vmem:[#allocation5 + $0x1a88] sm:$0xff]  ;;  %v3012_v4 = vpack.c.bf16 %v784_v62, %v776_v61  ;;  %v847_v61 = vld [vmem:[#allocation5 + $0x14c0] sm:$0xff] }
 0x237   :  { %v3268_v5 = vpack.c.bf16 %v1040_v1, %v1032_v0  ;;  %v1095_v62 = vld [vmem:[#allocation5 + $0x1c80] sm:$0xff]  ;;  %v856_v1 = vld [vmem:[#allocation5 + $0x1508] sm:$0xff] }
 0x238   :  { %v1103_v0 = vld [vmem:[#allocation5 + $0x1cc0] sm:$0xff] }
 0x23a   :  { %1560 = vmatmul.mubr.f32.vlgmr.msra.gmra.mrb[0].mxu0 %v3744_v12 }
 0x23b   :  { %2995 = vmatpush1.bf16.xpose.msra.mxu0 %v2994_v13  ;;  %1914 = vmatprep.mubr.f32.mxu0 %v3709_v54  ;;  %v800_v13 = vld [vmem:[#allocation5 + $0x1348] sm:$0xff] }
 0x23c   :  { %1844 = vmatmul.mubr.f32.vlgmr.msra.gmra.mrb[0].mxu1 %v3744_v12  ;;  %2997 = vmatprep.subr.bf16.mxu0 %v2996_v15  ;;  %v1056_v15 = vld [vmem:[#allocation5 + $0x1b48] sm:$0xff]  ;;  %v3016_v18 = vpack.c.bf16 %v800_v13, %v792_v11  ;;  %v863_v11 = vld [vmem:[#allocation5 + $0x1540] sm:$0xff] }
 0x23d   :  { %3251 = vmatpush1.bf16.xpose.msra.mxu1 %v3250_v14  ;;  %2198 = vmatprep.mubr.f32.mxu1 %v3709_v54  ;;  %v3260_v54 = vpack.c.bf16 %v1008_v38, %v1000_v36  ;;  %v1048_v14 = vld [vmem:[#allocation5 + $0x1b08] sm:$0xff]  ;;  %v1071_v36 = vld [vmem:[#allocation5 + $0x1bc0] sm:$0xff] }
 0x23e   :  { %3253 = vmatprep.subr.bf16.mxu1 %v3252_v16  ;;  %v3014_v16 = vpack.c.bf16 %v783_v8, %v775_v7  ;;  %v3272_v19 = vpack.c.bf16 %v1056_v15, %v1048_v14  ;;  %v824_v38 = vld [vmem:[#allocation5 + $0x1408] sm:$0xff]  ;;  %v3278_v43 = vpack.c.bf16 %v1071_v36, %v1063_v35  ;;  %v3286_v7 = vpack.c.bf16 %v1103_v0, %v1095_v62  ;;  %v1111_v13 = vld [vmem:[#allocation5 + $0x1d00] sm:$0xff] }
 0x23f   :  { %v1119_v14 = vld [vmem:[#allocation5 + $0x1d40] sm:$0xff]  ;;  %v872_v15 = vld [vmem:[#allocation5 + $0x1588] sm:$0xff] }
 0x240   :  { %v887_v36 = vld [vmem:[#allocation5 + $0x1600] sm:$0xff] }
 0x241   :  { %v919_v0 = vld [vmem:[#allocation5 + $0x1700] sm:$0xff] }
 0x243   :  { %2999 = vmatpush1.bf16.xpose.msra.mxu0 %v2998_v25  ;;  %v816_v25 = vld [vmem:[#allocation5 + $0x13c8] sm:$0xff] }
 0x244   :  { %3001 = vmatprep.subr.bf16.mxu0 %v3000_v27  ;;  %v1072_v27 = vld [vmem:[#allocation5 + $0x1bc8] sm:$0xff]  ;;  %v3020_v31 = vpack.c.bf16 %v816_v25, %v808_v24  ;;  %v879_v24 = vld [vmem:[#allocation5 + $0x15c0] sm:$0xff] }
 0x245   :  { %3255 = vmatpush1.bf16.xpose.msra.mxu1 %v3254_v26  ;;  %v1064_v26 = vld [vmem:[#allocation5 + $0x1b88] sm:$0xff]  ;;  %v1127_v25 = vld [vmem:[#allocation5 + $0x1d80] sm:$0xff] }
 0x246   :  { %3257 = vmatprep.subr.bf16.mxu1 %v3256_v28  ;;  %v3018_v28 = vpack.c.bf16 %v799_v21, %v791_v20  ;;  %v3276_v32 = vpack.c.bf16 %v1072_v27, %v1064_v26  ;;  %v3290_v20 = vpack.c.bf16 %v1119_v14, %v1111_v13  ;;  %v1135_v26 = vld [vmem:[#allocation5 + $0x1dc0] sm:$0xff]  ;;  %v888_v27 = vld [vmem:[#allocation5 + $0x1608] sm:$0xff] }
 0x247   :  { %v935_v14 = vld [vmem:[#allocation5 + $0x1780] sm:$0xff] }
 0x24b   :  { %3003 = vmatpush1.bf16.xpose.msra.mxu0 %v3002_v39  ;;  %v832_v39 = vld [vmem:[#allocation5 + $0x1448] sm:$0xff] }
 0x24c   :  { %3005 = vmatprep.subr.bf16.mxu0 %v3004_v41  ;;  %v1088_v41 = vld [vmem:[#allocation5 + $0x1c48] sm:$0xff]  ;;  %v3024_v44 = vpack.c.bf16 %v832_v39, %v824_v38  ;;  %v895_v38 = vld [vmem:[#allocation5 + $0x1640] sm:$0xff] }
 0x24d   :  { %3259 = vmatpush1.bf16.xpose.msra.mxu1 %v3258_v40  ;;  %v1080_v40 = vld [vmem:[#allocation5 + $0x1c08] sm:$0xff]  ;;  %v1143_v39 = vld [vmem:[#allocation5 + $0x1e00] sm:$0xff] }
 0x24e   :  { %3261 = vmatprep.subr.bf16.mxu1 %v3260_v54  ;;  %v3022_v54 = vpack.c.bf16 %v815_v34, %v807_v33  ;;  %v3280_v45 = vpack.c.bf16 %v1088_v41, %v1080_v40  ;;  %v3294_v33 = vpack.c.bf16 %v1135_v26, %v1127_v25  ;;  %v1151_v40 = vld [vmem:[#allocation5 + $0x1e40] sm:$0xff]  ;;  %v904_v41 = vld [vmem:[#allocation5 + $0x1688] sm:$0xff]  ;;  %v697_v26 = vld [vmem:[#allocation5 + $0x1010] sm:$0xff] }
 0x253   :  { %3007 = vmatpush1.bf16.xpose.msra.mxu0 %v3006_v52  ;;  %v848_v52 = vld [vmem:[#allocation5 + $0x14c8] sm:$0xff] }
 0x254   :  { %3009 = vmatprep.subr.bf16.mxu0 %v3008_v55  ;;  %v1104_v55 = vld [vmem:[#allocation5 + $0x1cc8] sm:$0xff]  ;;  %v3028_v58 = vpack.c.bf16 %v848_v52, %v840_v51  ;;  %v911_v51 = vld [vmem:[#allocation5 + $0x16c0] sm:$0xff] }
 0x255   :  { %3263 = vmatpush1.bf16.xpose.msra.mxu1 %v3262_v53  ;;  %v1096_v53 = vld [vmem:[#allocation5 + $0x1c88] sm:$0xff]  ;;  %v1159_v52 = vld [vmem:[#allocation5 + $0x1e80] sm:$0xff] }
 0x256   :  { %3265 = vmatprep.subr.bf16.mxu1 %v3264_v56  ;;  %v3026_v56 = vpack.c.bf16 %v831_v47, %v823_v46  ;;  %v3284_v59 = vpack.c.bf16 %v1104_v55, %v1096_v53  ;;  %v3298_v46 = vpack.c.bf16 %v1151_v40, %v1143_v39  ;;  %v1167_v53 = vld [vmem:[#allocation5 + $0x1ec0] sm:$0xff]  ;;  %v920_v55 = vld [vmem:[#allocation5 + $0x1708] sm:$0xff]  ;;  %v713_v40 = vld [vmem:[#allocation5 + $0x1090] sm:$0xff] }
 0x25b   :  { %3011 = vmatpush1.bf16.xpose.msra.mxu0 %v3010_v2  ;;  %v864_v2 = vld [vmem:[#allocation5 + $0x1548] sm:$0xff] }
 0x25c   :  { %3013 = vmatprep.subr.bf16.mxu0 %v3012_v4  ;;  %v1120_v4 = vld [vmem:[#allocation5 + $0x1d48] sm:$0xff]  ;;  %v3032_v8 = vpack.c.bf16 %v864_v2, %v856_v1  ;;  %v927_v1 = vld [vmem:[#allocation5 + $0x1740] sm:$0xff] }
 0x25d   :  { %3267 = vmatpush1.bf16.xpose.msra.mxu1 %v3266_v3  ;;  %v1112_v3 = vld [vmem:[#allocation5 + $0x1d08] sm:$0xff]  ;;  %v1175_v2 = vld [vmem:[#allocation5 + $0x1f00] sm:$0xff] }
 0x25e   :  { %3269 = vmatprep.subr.bf16.mxu1 %v3268_v5  ;;  %v3030_v5 = vpack.c.bf16 %v847_v61, %v839_v60  ;;  %v3288_v9 = vpack.c.bf16 %v1120_v4, %v1112_v3  ;;  %v3302_v60 = vpack.c.bf16 %v1167_v53, %v1159_v52  ;;  %v1183_v3 = vld [vmem:[#allocation5 + $0x1f40] sm:$0xff]  ;;  %v936_v4 = vld [vmem:[#allocation5 + $0x1788] sm:$0xff]  ;;  %v737_v53 = vld [vmem:[#allocation5 + $0x1150] sm:$0xff] }
 0x263   :  { %3015 = vmatpush1.bf16.xpose.msra.mxu0 %v3014_v16  ;;  %v880_v16 = vld [vmem:[#allocation5 + $0x15c8] sm:$0xff] }
 0x264   :  { %3017 = vmatprep.subr.bf16.mxu0 %v3016_v18  ;;  %v1136_v18 = vld [vmem:[#allocation5 + $0x1dc8] sm:$0xff]  ;;  %v3036_v21 = vpack.c.bf16 %v880_v16, %v872_v15  ;;  %v943_v15 = vld [vmem:[#allocation5 + $0x17c0] sm:$0xff] }
 0x265   :  { %3271 = vmatpush1.bf16.xpose.msra.mxu1 %v3270_v17  ;;  %v1128_v17 = vld [vmem:[#allocation5 + $0x1d88] sm:$0xff]  ;;  %v1191_v16 = vld [vmem:[#allocation5 + $0x1f80] sm:$0xff] }
 0x266   :  { %3273 = vmatprep.subr.bf16.mxu1 %v3272_v19  ;;  %v3034_v19 = vpack.c.bf16 %v863_v11, %v855_v10  ;;  %v3292_v22 = vpack.c.bf16 %v1136_v18, %v1128_v17  ;;  %v3306_v10 = vpack.c.bf16 %v1183_v3, %v1175_v2  ;;  %v1199_v17 = vld [vmem:[#allocation5 + $0x1fc0] sm:$0xff]  ;;  %v698_v18 = vld [vmem:[#allocation5 + $0x1018] sm:$0xff]  ;;  %v753_v2 = vld [vmem:[#allocation5 + $0x11d0] sm:$0xff] }
 0x267   :  { %v1001_v3 = vld [vmem:[#allocation5 + $0x1990] sm:$0xff] }
 0x26b   :  { %3019 = vmatpush1.bf16.xpose.msra.mxu0 %v3018_v28  ;;  %v896_v28 = vld [vmem:[#allocation5 + $0x1648] sm:$0xff] }
 0x26c   :  { %3021 = vmatprep.subr.bf16.mxu0 %v3020_v31  ;;  %v1152_v31 = vld [vmem:[#allocation5 + $0x1e48] sm:$0xff]  ;;  %v3040_v34 = vpack.c.bf16 %v896_v28, %v888_v27  ;;  %v705_v27 = vld [vmem:[#allocation5 + $0x1050] sm:$0xff] }
 0x26d   :  { %3275 = vmatpush1.bf16.xpose.msra.mxu1 %v3274_v29  ;;  %v1144_v29 = vld [vmem:[#allocation5 + $0x1e08] sm:$0xff]  ;;  %v953_v28 = vld [vmem:[#allocation5 + $0x1810] sm:$0xff] }
 0x26e   :  { %3277 = vmatprep.subr.bf16.mxu1 %v3276_v32  ;;  %v3038_v32 = vpack.c.bf16 %v879_v24, %v871_v23  ;;  %v3296_v35 = vpack.c.bf16 %v1152_v31, %v1144_v29  ;;  %v3310_v23 = vpack.c.bf16 %v1199_v17, %v1191_v16  ;;  %v961_v29 = vld [vmem:[#allocation5 + $0x1850] sm:$0xff]  ;;  %v714_v31 = vld [vmem:[#allocation5 + $0x1098] sm:$0xff] }
 0x26f   :  { %v769_v16 = vld [vmem:[#allocation5 + $0x1250] sm:$0xff] }
 0x270   :  { %v1017_v17 = vld [vmem:[#allocation5 + $0x1a10] sm:$0xff] }
 0x273   :  { %3023 = vmatpush1.bf16.xpose.msra.mxu0 %v3022_v54  ;;  %v912_v54 = vld [vmem:[#allocation5 + $0x16c8] sm:$0xff] }
 0x274   :  { %3025 = vmatprep.subr.bf16.mxu0 %v3024_v44  ;;  %v1168_v44 = vld [vmem:[#allocation5 + $0x1ec8] sm:$0xff]  ;;  %v3044_v47 = vpack.c.bf16 %v912_v54, %v904_v41  ;;  %v721_v41 = vld [vmem:[#allocation5 + $0x10d0] sm:$0xff] }
 0x275   :  { %3279 = vmatpush1.bf16.xpose.msra.mxu1 %v3278_v43  ;;  %v1160_v43 = vld [vmem:[#allocation5 + $0x1e88] sm:$0xff]  ;;  %v969_v54 = vld [vmem:[#allocation5 + $0x1890] sm:$0xff] }
 0x276   :  { %3281 = vmatprep.subr.bf16.mxu1 %v3280_v45  ;;  %v3042_v45 = vpack.c.bf16 %v895_v38, %v887_v36  ;;  %v3300_v48 = vpack.c.bf16 %v1168_v44, %v1160_v43  ;;  %v3314_v36 = vpack.c.bf16 %v961_v29, %v953_v28  ;;  %v977_v43 = vld [vmem:[#allocation5 + $0x18d0] sm:$0xff]  ;;  %v730_v44 = vld [vmem:[#allocation5 + $0x1118] sm:$0xff] }
 0x277   :  { %v785_v28 = vld [vmem:[#allocation5 + $0x12d0] sm:$0xff] }
 0x278   :  { %v1033_v29 = vld [vmem:[#allocation5 + $0x1a90] sm:$0xff] }
 0x27b   :  { %3027 = vmatpush1.bf16.xpose.msra.mxu0 %v3026_v56  ;;  %v928_v56 = vld [vmem:[#allocation5 + $0x1748] sm:$0xff] }
 0x27c   :  { %3029 = vmatprep.subr.bf16.mxu0 %v3028_v58  ;;  %v1184_v58 = vld [vmem:[#allocation5 + $0x1f48] sm:$0xff]  ;;  %v3048_v61 = vpack.c.bf16 %v928_v56, %v920_v55  ;;  %v985_v55 = vld [vmem:[#allocation5 + $0x1910] sm:$0xff] }
 0x27d   :  { %3283 = vmatpush1.bf16.xpose.msra.mxu1 %v3282_v57  ;;  %v1176_v57 = vld [vmem:[#allocation5 + $0x1f08] sm:$0xff]  ;;  %v993_v56 = vld [vmem:[#allocation5 + $0x1950] sm:$0xff] }
 0x27e   :  { %3285 = vmatprep.subr.bf16.mxu1 %v3284_v59  ;;  %v3046_v59 = vpack.c.bf16 %v911_v51, %v903_v50  ;;  %v3304_v62 = vpack.c.bf16 %v1184_v58, %v1176_v57  ;;  %v3318_v50 = vpack.c.bf16 %v977_v43, %v969_v54  ;;  %v746_v57 = vld [vmem:[#allocation5 + $0x1198] sm:$0xff]  ;;  %v801_v54 = vld [vmem:[#allocation5 + $0x1350] sm:$0xff] }
 0x27f   :  { %v754_v58 = vld [vmem:[#allocation5 + $0x11d8] sm:$0xff]  ;;  %v1049_v43 = vld [vmem:[#allocation5 + $0x1b10] sm:$0xff] }
 0x283   :  { %3031 = vmatpush1.bf16.xpose.msra.mxu0 %v3030_v5  ;;  %v944_v5 = vld [vmem:[#allocation5 + $0x17c8] sm:$0xff] }
 0x284   :  { %3033 = vmatprep.subr.bf16.mxu0 %v3032_v8  ;;  %v1200_v8 = vld [vmem:[#allocation5 + $0x1fc8] sm:$0xff]  ;;  %v3052_v11 = vpack.c.bf16 %v944_v5, %v936_v4  ;;  %v1009_v4 = vld [vmem:[#allocation5 + $0x19d0] sm:$0xff]  ;;  %v762_v5 = vld [vmem:[#allocation5 + $0x1218] sm:$0xff] }
 0x285   :  { %3287 = vmatpush1.bf16.xpose.msra.mxu1 %v3286_v7  ;;  %v1192_v7 = vld [vmem:[#allocation5 + $0x1f88] sm:$0xff] }
 0x286   :  { %3289 = vmatprep.subr.bf16.mxu1 %v3288_v9  ;;  %v3050_v9 = vpack.c.bf16 %v927_v1, %v919_v0  ;;  %v3308_v13 = vpack.c.bf16 %v1200_v8, %v1192_v7  ;;  %v3068_v0 = vpack.c.bf16 %v754_v58, %v746_v57  ;;  %v745_v1 = vld [vmem:[#allocation5 + $0x1190] sm:$0xff]  ;;  %v770_v7 = vld [vmem:[#allocation5 + $0x1258] sm:$0xff] }
 0x287   :  { %v1018_v8 = vld [vmem:[#allocation5 + $0x1a18] sm:$0xff]  ;;  %v1073_v57 = vld [vmem:[#allocation5 + $0x1bd0] sm:$0xff] }
 0x288   :  { %v826_v58 = vld [vmem:[#allocation5 + $0x1418] sm:$0xff] }
 0x28b   :  { %3035 = vmatpush1.bf16.xpose.msra.mxu0 %v3034_v19  ;;  %v706_v19 = vld [vmem:[#allocation5 + $0x1058] sm:$0xff] }
 0x28c   :  { %3037 = vmatprep.subr.bf16.mxu0 %v3036_v21  ;;  %v962_v21 = vld [vmem:[#allocation5 + $0x1858] sm:$0xff]  ;;  %v3056_v24 = vpack.c.bf16 %v706_v19, %v698_v18  ;;  %v1025_v18 = vld [vmem:[#allocation5 + $0x1a50] sm:$0xff] }
 0x28d   :  { %3291 = vmatpush1.bf16.xpose.msra.mxu1 %v3290_v20  ;;  %v954_v20 = vld [vmem:[#allocation5 + $0x1818] sm:$0xff] }
 0x28e   :  { %3293 = vmatprep.subr.bf16.mxu1 %v3292_v22  ;;  %v3054_v22 = vpack.c.bf16 %v943_v15, %v935_v14  ;;  %v3312_v25 = vpack.c.bf16 %v962_v21, %v954_v20  ;;  %v761_v15 = vld [vmem:[#allocation5 + $0x1210] sm:$0xff]  ;;  %v778_v19 = vld [vmem:[#allocation5 + $0x1298] sm:$0xff] }
 0x28f   :  { %v786_v20 = vld [vmem:[#allocation5 + $0x12d8] sm:$0xff] }
 0x290   :  { %v1034_v21 = vld [vmem:[#allocation5 + $0x1a98] sm:$0xff] }
 0x293   :  { %3039 = vmatpush1.bf16.xpose.msra.mxu0 %v3038_v32  ;;  %v722_v32 = vld [vmem:[#allocation5 + $0x10d8] sm:$0xff] }
 0x294   :  { %3041 = vmatprep.subr.bf16.mxu0 %v3040_v34  ;;  %v978_v34 = vld [vmem:[#allocation5 + $0x18d8] sm:$0xff]  ;;  %v3060_v38 = vpack.c.bf16 %v722_v32, %v714_v31  ;;  %v1041_v31 = vld [vmem:[#allocation5 + $0x1ad0] sm:$0xff] }
 0x295   :  { %3295 = vmatpush1.bf16.xpose.msra.mxu1 %v3294_v33  ;;  %v970_v33 = vld [vmem:[#allocation5 + $0x1898] sm:$0xff] }
 0x296   :  { %3297 = vmatprep.subr.bf16.mxu1 %v3296_v35  ;;  %v3058_v35 = vpack.c.bf16 %v705_v27, %v697_v26  ;;  %v3316_v39 = vpack.c.bf16 %v978_v34, %v970_v33  ;;  %v777_v27 = vld [vmem:[#allocation5 + $0x1290] sm:$0xff]  ;;  %v794_v32 = vld [vmem:[#allocation5 + $0x1318] sm:$0xff] }
 0x297   :  { %v802_v33 = vld [vmem:[#allocation5 + $0x1358] sm:$0xff] }
 0x298   :  { %v1050_v34 = vld [vmem:[#allocation5 + $0x1b18] sm:$0xff] }
 0x29b   :  { %3043 = vmatpush1.bf16.xpose.msra.mxu0 %v3042_v45  ;;  %v738_v45 = vld [vmem:[#allocation5 + $0x1158] sm:$0xff] }
 0x29c   :  { %3045 = vmatprep.subr.bf16.mxu0 %v3044_v47  ;;  %v994_v47 = vld [vmem:[#allocation5 + $0x1958] sm:$0xff]  ;;  %v3064_v51 = vpack.c.bf16 %v738_v45, %v730_v44  ;;  %v1057_v44 = vld [vmem:[#allocation5 + $0x1b50] sm:$0xff] }
 0x29d   :  { %3299 = vmatpush1.bf16.xpose.msra.mxu1 %v3298_v46  ;;  %v986_v46 = vld [vmem:[#allocation5 + $0x1918] sm:$0xff] }
 0x29e   :  { %3301 = vmatprep.subr.bf16.mxu1 %v3300_v48  ;;  %v3062_v48 = vpack.c.bf16 %v721_v41, %v713_v40  ;;  %v3320_v52 = vpack.c.bf16 %v994_v47, %v986_v46  ;;  %v793_v41 = vld [vmem:[#allocation5 + $0x1310] sm:$0xff]  ;;  %v810_v45 = vld [vmem:[#allocation5 + $0x1398] sm:$0xff] }
 0x29f   :  { %v818_v46 = vld [vmem:[#allocation5 + $0x13d8] sm:$0xff] }
 0x2a0   :  { %v1066_v47 = vld [vmem:[#allocation5 + $0x1b98] sm:$0xff] }
 0x2a3   :  { %3047 = vmatpush1.bf16.xpose.msra.mxu0 %v3046_v59  ;;  %v1002_v59 = vld [vmem:[#allocation5 + $0x1998] sm:$0xff] }
 0x2a4   :  { %3049 = vmatprep.subr.bf16.mxu0 %v3048_v61 }
 0x2a5   :  { %3303 = vmatpush1.bf16.xpose.msra.mxu1 %v3302_v60  ;;  %v1010_v60 = vld [vmem:[#allocation5 + $0x19d8] sm:$0xff] }
 0x2a6   :  { %3305 = vmatprep.subr.bf16.mxu1 %v3304_v62  ;;  %v3322_v62 = vpack.c.bf16 %v993_v56, %v985_v55  ;;  %v817_v55 = vld [vmem:[#allocation5 + $0x13d0] sm:$0xff] }
 0x2a7   :  { %v1065_v56 = vld [vmem:[#allocation5 + $0x1b90] sm:$0xff] }
 0x2ab   :  { %3051 = vmatpush1.bf16.xpose.msra.mxu0 %v3050_v9  ;;  %v1026_v9 = vld [vmem:[#allocation5 + $0x1a58] sm:$0xff] }
 0x2ac   :  { %3053 = vmatprep.subr.bf16.mxu0 %v3052_v11  ;;  %v3326_v11 = vpack.c.bf16 %v1009_v4, %v1001_v3  ;;  %v3328_v14 = vpack.c.bf16 %v1026_v9, %v1018_v8  ;;  %v833_v3 = vld [vmem:[#allocation5 + $0x1450] sm:$0xff]  ;;  %v850_v8 = vld [vmem:[#allocation5 + $0x14d8] sm:$0xff] }
 0x2ad   :  { %3307 = vmatpush1.bf16.xpose.msra.mxu1 %v3306_v10  ;;  %v3070_v10 = vpack.c.bf16 %v753_v2, %v745_v1  ;;  %v825_v2 = vld [vmem:[#allocation5 + $0x1410] sm:$0xff]  ;;  %v1098_v9 = vld [vmem:[#allocation5 + $0x1c98] sm:$0xff] }
 0x2ae   :  { %3309 = vmatprep.subr.bf16.mxu1 %v3308_v13  ;;  %v3072_v13 = vpack.c.bf16 %v770_v7, %v762_v5  ;;  %v1081_v4 = vld [vmem:[#allocation5 + $0x1c10] sm:$0xff]  ;;  %v842_v7 = vld [vmem:[#allocation5 + $0x1498] sm:$0xff] }
 0x2af   :  { %v1089_v5 = vld [vmem:[#allocation5 + $0x1c50] sm:$0xff] }
 0x2b3   :  { %3055 = vmatpush1.bf16.xpose.msra.mxu0 %v3054_v22  ;;  %v1042_v22 = vld [vmem:[#allocation5 + $0x1ad8] sm:$0xff] }
 0x2b4   :  { %3057 = vmatprep.subr.bf16.mxu0 %v3056_v24  ;;  %v3330_v24 = vpack.c.bf16 %v1025_v18, %v1017_v17  ;;  %v3332_v26 = vpack.c.bf16 %v1042_v22, %v1034_v21  ;;  %v849_v17 = vld [vmem:[#allocation5 + $0x14d0] sm:$0xff]  ;;  %v866_v21 = vld [vmem:[#allocation5 + $0x1558] sm:$0xff] }
 0x2b5   :  { %3311 = vmatpush1.bf16.xpose.msra.mxu1 %v3310_v23  ;;  %v3074_v23 = vpack.c.bf16 %v769_v16, %v761_v15  ;;  %v841_v16 = vld [vmem:[#allocation5 + $0x1490] sm:$0xff]  ;;  %v1114_v22 = vld [vmem:[#allocation5 + $0x1d18] sm:$0xff] }
 0x2b6   :  { %3313 = vmatprep.subr.bf16.mxu1 %v3312_v25  ;;  %v3076_v25 = vpack.c.bf16 %v786_v20, %v778_v19  ;;  %v1097_v18 = vld [vmem:[#allocation5 + $0x1c90] sm:$0xff]  ;;  %v858_v20 = vld [vmem:[#allocation5 + $0x1518] sm:$0xff] }
 0x2b7   :  { %v1105_v19 = vld [vmem:[#allocation5 + $0x1cd0] sm:$0xff] }
 0x2ba   :  { %1915 = vmatmul.mubr.f32.vlgmr.msra.gmra.mrb[2].mxu0 %v3714_v63 }
 0x2bb   :  { %3059 = vmatpush1.bf16.xpose.msra.mxu0 %v3058_v35  ;;  %1985 = vmatprep.mubr.f32.mxu0 %v3718_v6  ;;  %v1058_v35 = vld [vmem:[#allocation5 + $0x1b58] sm:$0xff] }
 0x2bc   :  { %2199 = vmatmul.mubr.f32.vlgmr.msra.gmra.mrb[2].mxu1 %v3714_v63  ;;  %3061 = vmatprep.subr.bf16.mxu0 %v3060_v38  ;;  %v729_v63 = vld [vmem:[#allocation5 + $0x1110] sm:$0xff]  ;;  %v3334_v38 = vpack.c.bf16 %v1041_v31, %v1033_v29  ;;  %v3336_v40 = vpack.c.bf16 %v1058_v35, %v1050_v34  ;;  %v874_v35 = vld [vmem:[#allocation5 + $0x1598] sm:$0xff] }
 0x2bd   :  { %3315 = vmatpush1.bf16.xpose.msra.mxu1 %v3314_v36  ;;  %2269 = vmatprep.mubr.f32.mxu1 %v3718_v6  ;;  %v3066_v61 = vpack.c.bf16 %v737_v53, %v729_v63  ;;  %v3324_v6 = vpack.c.bf16 %v1010_v60, %v1002_v59  ;;  %v3078_v36 = vpack.c.bf16 %v785_v28, %v777_v27  ;;  %v809_v53 = vld [vmem:[#allocation5 + $0x1390] sm:$0xff]  ;;  %v834_v59 = vld [vmem:[#allocation5 + $0x1458] sm:$0xff] }
 0x2be   :  { %3317 = vmatprep.subr.bf16.mxu1 %v3316_v39  ;;  %v3080_v39 = vpack.c.bf16 %v802_v33, %v794_v32  ;;  %v1082_v60 = vld [vmem:[#allocation5 + $0x1c18] sm:$0xff]  ;;  %v3096_v27 = vpack.c.bf16 %v866_v21, %v858_v20  ;;  %v857_v31 = vld [vmem:[#allocation5 + $0x1510] sm:$0xff] }
 0x2bf   :  { %v865_v32 = vld [vmem:[#allocation5 + $0x1550] sm:$0xff] }
 0x2c0   :  { %v1113_v33 = vld [vmem:[#allocation5 + $0x1d10] sm:$0xff] }
 0x2c1   :  { %v1121_v34 = vld [vmem:[#allocation5 + $0x1d50] sm:$0xff] }
 0x2c2   :  { %v889_v20 = vld [vmem:[#allocation5 + $0x1610] sm:$0xff] }
 0x2c3   :  { %3063 = vmatpush1.bf16.xpose.msra.mxu0 %v3062_v48  ;;  %v1074_v48 = vld [vmem:[#allocation5 + $0x1bd8] sm:$0xff]  ;;  %v897_v21 = vld [vmem:[#allocation5 + $0x1650] sm:$0xff] }
 0x2c4   :  { %3065 = vmatprep.subr.bf16.mxu0 %v3064_v51  ;;  %v3338_v51 = vpack.c.bf16 %v1057_v44, %v1049_v43  ;;  %v3340_v63 = vpack.c.bf16 %v1074_v48, %v1066_v47  ;;  %v3354_v47 = vpack.c.bf16 %v1121_v34, %v1113_v33 }
 0x2c5   :  { %3319 = vmatpush1.bf16.xpose.msra.mxu1 %v3318_v50  ;;  %v3082_v50 = vpack.c.bf16 %v801_v54, %v793_v41  ;;  %v3098_v41 = vpack.c.bf16 %v865_v32, %v857_v31  ;;  %v1207_v54 = vld [vmem:[#allocation7] sm:$0xff]  ;;  %v3106_v31 = vpack.c.bf16 %v897_v21, %v889_v20 }
 0x2c6   :  { %3321 = vmatprep.subr.bf16.mxu1 %v3320_v52  ;;  %v3084_v52 = vpack.c.bf16 %v818_v46, %v810_v45  ;;  %v3643_v45 = vmov 1983009808  }
 0x2c7   :  { %v2429_v46 = vunpack.c.l.s4 %v3643_v45 }
 0x2cb   :  { %3067 = vmatpush1.bf16.xpose.msra.mxu0 %v3066_v61  ;;  %v1090_v61 = vld [vmem:[#allocation5 + $0x1c58] sm:$0xff] }
 0x2cc   :  { %3069 = vmatprep.subr.bf16.mxu0 %v3068_v0  ;;  %v3342_v0 = vpack.c.bf16 %v1073_v57, %v1065_v56  ;;  %v3344_v1 = vpack.c.bf16 %v1090_v61, %v1082_v60  ;;  %v873_v57 = vld [vmem:[#allocation5 + $0x1590] sm:$0xff] }
 0x2cd   :  { %3323 = vmatpush1.bf16.xpose.msra.mxu1 %v3322_v62  ;;  %v3086_v62 = vpack.c.bf16 %v817_v55, %v809_v53  ;;  %v2430_v55 = vunpack.c.0.s8 %v2429_v46  ;;  %v1137_v61 = vld [vmem:[#allocation5 + $0x1dd0] sm:$0xff] }
 0x2ce   :  { %3325 = vmatprep.subr.bf16.mxu1 %v3324_v6  ;;  %v3088_v6 = vpack.c.bf16 %v834_v59, %v826_v58  ;;  %v881_v58 = vld [vmem:[#allocation5 + $0x15d0] sm:$0xff] }
 0x2cf   :  { %v1129_v59 = vld [vmem:[#allocation5 + $0x1d90] sm:$0xff] }
 0x2d3   :  { %3071 = vmatpush1.bf16.xpose.msra.mxu0 %v3070_v10  ;;  %v1106_v10 = vld [vmem:[#allocation5 + $0x1cd8] sm:$0xff] }
 0x2d4   :  { %3073 = vmatprep.subr.bf16.mxu0 %v3072_v13  ;;  %v3346_v13 = vpack.c.bf16 %v1089_v5, %v1081_v4  ;;  %v3348_v15 = vpack.c.bf16 %v1106_v10, %v1098_v9  ;;  %v1154_v4 = vld [vmem:[#allocation5 + $0x1e58] sm:$0xff]  ;;  %v3102_v10 = vpack.c.bf16 %v881_v58, %v873_v57 }
 0x2d5   :  { %3327 = vmatpush1.bf16.xpose.msra.mxu1 %v3326_v11  ;;  %v3090_v11 = vpack.c.bf16 %v833_v3, %v825_v2  ;;  %v1146_v3 = vld [vmem:[#allocation5 + $0x1e18] sm:$0xff] }
 0x2d6   :  { %3329 = vmatprep.subr.bf16.mxu1 %v3328_v14  ;;  %v3092_v14 = vpack.c.bf16 %v850_v8, %v842_v7 }
 0x2db   :  { %3075 = vmatpush1.bf16.xpose.msra.mxu0 %v3074_v23  ;;  %v1122_v23 = vld [vmem:[#allocation5 + $0x1d58] sm:$0xff] }
 0x2dc   :  { %3077 = vmatprep.subr.bf16.mxu0 %v3076_v25  ;;  %v3094_v25 = vpack.c.bf16 %v849_v17, %v841_v16  ;;  %v3352_v28 = vpack.c.bf16 %v1122_v23, %v1114_v22  ;;  %v3360_v16 = vpack.c.bf16 %v1154_v4, %v1146_v3  ;;  %v1145_v22 = vld [vmem:[#allocation5 + $0x1e10] sm:$0xff]  ;;  %v956_v3 = vld [vmem:[#allocation5 + $0x1828] sm:$0xff] }
 0x2dd   :  { %3331 = vmatpush1.bf16.xpose.msra.mxu1 %v3330_v24  ;;  %v1209_v24 = vlaneseq  ;;  %v1153_v23 = vld [vmem:[#allocation5 + $0x1e50] sm:$0xff]  ;;  %v964_v4 = vld [vmem:[#allocation5 + $0x1868] sm:$0xff] }
 0x2de   :  { %3333 = vmatprep.subr.bf16.mxu1 %v3332_v26  ;;  %v3350_v26 = vpack.c.bf16 %v1105_v19, %v1097_v18  ;;  %v3362_v32 = vpack.c.bf16 %v1153_v23, %v1145_v22 }
 0x2df   :  { %v3754_v29 = vshrl.u32 %v1209_v24, 7  ;;  %v906_v24 = vld [vmem:[#allocation5 + $0x1698] sm:$0xff] }
 0x2e1   :  { %v1219_v43 = vsub.s32 2, %v3754_v29  ;;  %v1215_v44 = vsub.s32 1, %v3754_v29  ;;  %v1223_v48 = vsub.s32 3, %v3754_v29  ;;  %v3761_v8 = vsub.s32 %v2430_v55, %v3754_v29  ;;  %v1194_v55 = vld [vmem:[#allocation5 + $0x1f98] sm:$0xff] }
 0x2e3   :  { %3079 = vmatpush1.bf16.xpose.msra.mxu0 %v3078_v36  ;;  %v882_v36 = vld [vmem:[#allocation5 + $0x15d8] sm:$0xff]  ;;  %v1216_v53 = vrot.slane %v1207_v54, %v1215_v44  ;;  %v1224_v56 = vrot.slane %v1207_v54, %v1223_v48  ;;  %v921_v48 = vld [vmem:[#allocation5 + $0x1710] sm:$0xff] }
 0x2e4   :  { %3081 = vmatprep.subr.bf16.mxu0 %v3080_v39  ;;  %v1130_v39 = vld [vmem:[#allocation5 + $0x1d98] sm:$0xff] }
 0x2e5   :  { %3335 = vmatpush1.bf16.xpose.msra.mxu1 %v3334_v38  ;;  %v1211_v38 = vsub.s32 0, %v3754_v29 }
 0x2e6   :  { %3337 = vmatprep.subr.bf16.mxu1 %v3336_v40  ;;  %v1138_v40 = vld [vmem:[#allocation5 + $0x1dd8] sm:$0xff] }
 0x2eb   :  { %3083 = vmatpush1.bf16.xpose.msra.mxu0 %v3082_v50  ;;  %v3100_v50 = vpack.c.bf16 %v882_v36, %v874_v35  ;;  %v905_v35 = vld [vmem:[#allocation5 + $0x1690] sm:$0xff] }
 0x2ec   :  { %3085 = vmatprep.subr.bf16.mxu0 %v3084_v52  ;;  %v1212_v52 = vrot.slane %v1207_v54, %v1211_v38  ;;  %v913_v36 = vld [vmem:[#allocation5 + $0x16d0] sm:$0xff] }
 0x2ed   :  { %3339 = vmatpush1.bf16.xpose.msra.mxu1 %v3338_v51  ;;  %v3356_v51 = vpack.c.bf16 %v1138_v40, %v1130_v39  ;;  %v1161_v38 = vld [vmem:[#allocation5 + $0x1e90] sm:$0xff]  ;;  %v922_v40 = vld [vmem:[#allocation5 + $0x1718] sm:$0xff]  ;;  %v3110_v44 = vpack.c.bf16 %v913_v36, %v905_v35 }
 0x2ee   :  { %3341 = vmatprep.subr.bf16.mxu1 %v3340_v63  ;;  %v1220_v63 = vrot.slane %v1207_v54, %v1219_v43  ;;  %v1169_v39 = vld [vmem:[#allocation5 + $0x1ed0] sm:$0xff]  ;;  %v1178_v54 = vld [vmem:[#allocation5 + $0x1f18] sm:$0xff] }
 0x2ef   :  { %v1186_v43 = vld [vmem:[#allocation5 + $0x1f58] sm:$0xff]  ;;  %v3366_v45 = vpack.c.bf16 %v1169_v39, %v1161_v38  ;;  %v739_v39 = vld [vmem:[#allocation5 + $0x1160] sm:$0xff] }
 0x2f3   :  { %3087 = vmatpush1.bf16.xpose.msra.mxu0 %v3086_v62  ;;  %v890_v62 = vld [vmem:[#allocation5 + $0x1618] sm:$0xff] }
 0x2f4   :  { %3089 = vmatprep.subr.bf16.mxu0 %v3088_v6 }
 0x2f5   :  { %3343 = vmatpush1.bf16.xpose.msra.mxu1 %v3342_v0  ;;  %v898_v0 = vld [vmem:[#allocation5 + $0x1658] sm:$0xff] }
 0x2f6   :  { %3345 = vmatprep.subr.bf16.mxu1 %v3344_v1 }
 0x2fb   :  { %3091 = vmatpush1.bf16.xpose.msra.mxu0 %v3090_v11 }
 0x2fc   :  { %3093 = vmatprep.subr.bf16.mxu0 %v3092_v14  ;;  %v3104_v14 = vpack.c.bf16 %v898_v0, %v890_v62  ;;  %v945_v62 = vld [vmem:[#allocation5 + $0x17d0] sm:$0xff] }
 0x2fd   :  { %3347 = vmatpush1.bf16.xpose.msra.mxu1 %v3346_v13  ;;  %v3358_v13 = vpack.c.bf16 %v1137_v61, %v1129_v59  ;;  %v937_v61 = vld [vmem:[#allocation5 + $0x1790] sm:$0xff] }
 0x2fe   :  { %3349 = vmatprep.subr.bf16.mxu1 %v3348_v15  ;;  %v1193_v0 = vld [vmem:[#allocation5 + $0x1f90] sm:$0xff] }
 0x303   :  { %3095 = vmatpush1.bf16.xpose.msra.mxu0 %v3094_v25  ;;  %v914_v25 = vld [vmem:[#allocation5 + $0x16d8] sm:$0xff] }
 0x304   :  { %3097 = vmatprep.subr.bf16.mxu0 %v3096_v27  ;;  %v1170_v27 = vld [vmem:[#allocation5 + $0x1ed8] sm:$0xff]  ;;  %v3108_v33 = vpack.c.bf16 %v914_v25, %v906_v24  ;;  %v715_v24 = vld [vmem:[#allocation5 + $0x10a0] sm:$0xff] }
 0x305   :  { %3351 = vmatpush1.bf16.xpose.msra.mxu1 %v3350_v26  ;;  %v1162_v26 = vld [vmem:[#allocation5 + $0x1e98] sm:$0xff]  ;;  %v723_v25 = vld [vmem:[#allocation5 + $0x10e0] sm:$0xff] }
 0x306   :  { %3353 = vmatprep.subr.bf16.mxu1 %v3352_v28  ;;  %v3364_v34 = vpack.c.bf16 %v1170_v27, %v1162_v26  ;;  %v971_v26 = vld [vmem:[#allocation5 + $0x18a0] sm:$0xff] }
 0x307   :  { %v979_v27 = vld [vmem:[#allocation5 + $0x18e0] sm:$0xff] }
 0x308   :  { %v3382_v35 = vpack.c.bf16 %v979_v27, %v971_v26  ;;  %v803_v26 = vld [vmem:[#allocation5 + $0x1360] sm:$0xff] }
 0x309   :  { %v1051_v27 = vld [vmem:[#allocation5 + $0x1b20] sm:$0xff] }
 0x30b   :  { %3099 = vmatpush1.bf16.xpose.msra.mxu0 %v3098_v41  ;;  %v930_v41 = vld [vmem:[#allocation5 + $0x1758] sm:$0xff] }
 0x30c   :  { %3101 = vmatprep.subr.bf16.mxu0 %v3100_v50  ;;  %v3112_v46 = vpack.c.bf16 %v930_v41, %v922_v40  ;;  %v929_v50 = vld [vmem:[#allocation5 + $0x1750] sm:$0xff]  ;;  %v987_v40 = vld [vmem:[#allocation5 + $0x1920] sm:$0xff] }
 0x30d   :  { %3355 = vmatpush1.bf16.xpose.msra.mxu1 %v3354_v47  ;;  %v1561_v60 = vpop.f32.mrb[0].mxu0  ;;  %v3368_v47 = vpack.c.bf16 %v1186_v43, %v1178_v54  ;;  %v3114_v57 = vpack.c.bf16 %v929_v50, %v921_v48  ;;  %v995_v41 = vld [vmem:[#allocation5 + $0x1960] sm:$0xff]  ;;  %v748_v54 = vld [vmem:[#allocation5 + $0x11a8] sm:$0xff] }
 0x30e   :  { %3357 = vmatprep.subr.bf16.mxu1 %v3356_v51  ;;  %v3504_v6 = vadd.f32 %v1561_v60, %v1212_v52  ;;  %v1563_v2 = vpop.f32.mrb[1].mxu0  ;;  %v1177_v51 = vld [vmem:[#allocation5 + $0x1f10] sm:$0xff]  ;;  %v756_v43 = vld [vmem:[#allocation5 + $0x11e8] sm:$0xff]  ;;  %v747_v50 = vld [vmem:[#allocation5 + $0x11a0] sm:$0xff] }
 0x30f   :  { %v1845_v1 = vpop.f32.mrb[0].mxu1  ;;  %v3505_v7 = vadd.f32 %v1563_v2, %v1216_v53  ;;  %v1185_v52 = vld [vmem:[#allocation5 + $0x1f50] sm:$0xff]  ;;  %v946_v53 = vld [vmem:[#allocation5 + $0x17d8] sm:$0xff]  ;;  %v708_v2 = vld [vmem:[#allocation5 + $0x1068] sm:$0xff]  ;;  %v3132_v48 = vpack.c.bf16 %v756_v43, %v748_v54 }
 0x310   :  { %v3506_v5 = vadd.f32 %v1845_v1, %v1220_v63  ;;  %v1847_v9 = vpop.f32.mrb[1].mxu1  ;;  %v938_v63 = vld [vmem:[#allocation5 + $0x1798] sm:$0xff]  ;;  %v3370_v58 = vpack.c.bf16 %v1185_v52, %v1177_v51  ;;  %v700_v1 = vld [vmem:[#allocation5 + $0x1028] sm:$0xff]  ;;  %v755_v51 = vld [vmem:[#allocation5 + $0x11e0] sm:$0xff] }
 0x311   :  { %v3507_v11 = vadd.f32 %v1847_v9, %v1224_v56  ;;  %v2426_v15 = vcombine.low %v3504_v6, %v3505_v7  ;;  %v1202_v56 = vld [vmem:[#allocation5 + $0x1fd8] sm:$0xff]  ;;  %v3116_v59 = vpack.c.bf16 %v946_v53, %v938_v63  ;;  %v1201_v6 = vld [vmem:[#allocation5 + $0x1fd0] sm:$0xff]  ;;  %v3120_v9 = vpack.c.bf16 %v708_v2, %v700_v1  ;;  %v1003_v52 = vld [vmem:[#allocation5 + $0x19a0] sm:$0xff] }
 0x312   :  { %v3372_v60 = vpack.c.bf16 %v1202_v56, %v1194_v55  ;;  %v3374_v7 = vpack.c.bf16 %v1201_v6, %v1193_v0  ;;  %v1011_v63 = vld [vmem:[#allocation5 + $0x19e0] sm:$0xff]  ;;  %v764_v53 = vld [vmem:[#allocation5 + $0x1228] sm:$0xff] }
 0x313   :  { %v2427_v17 = vcombine.low %v3506_v5, %v3507_v11  ;;  %v2434_v18 = vrot.slane %v2426_v15, %v3761_v8  ;;  %3103 = vmatpush1.bf16.xpose.msra.mxu0 %v3102_v10  ;;  %v3118_v5 = vpack.c.bf16 %v945_v62, %v937_v61  ;;  %v3376_v10 = vpack.c.bf16 %v964_v4, %v956_v3  ;;  %v699_v11 = vld [vmem:[#allocation5 + $0x1020] sm:$0xff]  ;;  %v772_v55 = vld [vmem:[#allocation5 + $0x1268] sm:$0xff] }
 0x314   :  { %3105 = vmatprep.subr.bf16.mxu0 %v3104_v14  ;;  %v955_v14 = vld [vmem:[#allocation5 + $0x1820] sm:$0xff]  ;;  %v1020_v56 = vld [vmem:[#allocation5 + $0x1a28] sm:$0xff] }
 0x315   :  { %v2441_v19 = vrot.slane %v2427_v17, %v3761_v8  ;;  %3359 = vmatpush1.bf16.xpose.msra.mxu1 %v3358_v13  ;;  %v707_v13 = vld [vmem:[#allocation5 + $0x1060] sm:$0xff]  ;;  %v724_v17 = vld [vmem:[#allocation5 + $0x10e8] sm:$0xff] }
 0x316   :  { %3361 = vmatprep.subr.bf16.mxu1 %v3360_v16  ;;  %v963_v15 = vld [vmem:[#allocation5 + $0x1860] sm:$0xff]  ;;  %v716_v16 = vld [vmem:[#allocation5 + $0x10a8] sm:$0xff]  ;;  %v3122_v20 = vpack.c.bf16 %v707_v13, %v699_v11 }
 0x317   :  { %v2442_v28 = vcombine.low %v2434_v18, %v2441_v19  ;;  %v972_v18 = vld [vmem:[#allocation5 + $0x18a8] sm:$0xff]  ;;  %v3378_v21 = vpack.c.bf16 %v963_v15, %v955_v14  ;;  %v3124_v22 = vpack.c.bf16 %v724_v17, %v716_v16  ;;  %v763_v62 = vld [vmem:[#allocation5 + $0x1220] sm:$0xff] }
 0x318   :  { %v980_v19 = vld [vmem:[#allocation5 + $0x18e8] sm:$0xff]  ;;  %v771_v0 = vld [vmem:[#allocation5 + $0x1260] sm:$0xff] }
 0x319   :  { %2462 = vst [vmem:[#allocation8] sm:$0xff] %v2442_v28  ;;  %v3380_v23 = vpack.c.bf16 %v980_v19, %v972_v18  ;;  %v732_v28 = vld [vmem:[#allocation5 + $0x1128] sm:$0xff]  ;;  %v1019_v6 = vld [vmem:[#allocation5 + $0x1a20] sm:$0xff] }
 0x31a   :  { %v1027_v1 = vld [vmem:[#allocation5 + $0x1a60] sm:$0xff]  ;;  %v780_v2 = vld [vmem:[#allocation5 + $0x12a8] sm:$0xff] }
 0x31b   :  { %3107 = vmatpush1.bf16.xpose.msra.mxu0 %v3106_v31  ;;  %v740_v31 = vld [vmem:[#allocation5 + $0x1168] sm:$0xff]  ;;  %v779_v13 = vld [vmem:[#allocation5 + $0x12a0] sm:$0xff] }
 0x31c   :  { %3109 = vmatprep.subr.bf16.mxu0 %v3108_v33  ;;  %v996_v33 = vld [vmem:[#allocation5 + $0x1968] sm:$0xff]  ;;  %v3128_v36 = vpack.c.bf16 %v740_v31, %v732_v28  ;;  %v787_v14 = vld [vmem:[#allocation5 + $0x12e0] sm:$0xff] }
 0x31d   :  { %3363 = vmatpush1.bf16.xpose.msra.mxu1 %v3362_v32  ;;  %v988_v32 = vld [vmem:[#allocation5 + $0x1928] sm:$0xff]  ;;  %v1035_v15 = vld [vmem:[#allocation5 + $0x1aa0] sm:$0xff] }
 0x31e   :  { %3365 = vmatprep.subr.bf16.mxu1 %v3364_v34  ;;  %v3126_v34 = vpack.c.bf16 %v723_v25, %v715_v24  ;;  %v3384_v38 = vpack.c.bf16 %v996_v33, %v988_v32  ;;  %v788_v3 = vld [vmem:[#allocation5 + $0x12e8] sm:$0xff]  ;;  %v1043_v16 = vld [vmem:[#allocation5 + $0x1ae0] sm:$0xff] }
 0x31f   :  { %v1036_v4 = vld [vmem:[#allocation5 + $0x1aa8] sm:$0xff]  ;;  %v795_v25 = vld [vmem:[#allocation5 + $0x1320] sm:$0xff] }
 0x320   :  { %v796_v17 = vld [vmem:[#allocation5 + $0x1328] sm:$0xff]  ;;  %v1059_v28 = vld [vmem:[#allocation5 + $0x1b60] sm:$0xff] }
 0x321   :  { %v804_v18 = vld [vmem:[#allocation5 + $0x1368] sm:$0xff]  ;;  %v1075_v54 = vld [vmem:[#allocation5 + $0x1be0] sm:$0xff] }
 0x322   :  { %v1052_v19 = vld [vmem:[#allocation5 + $0x1b28] sm:$0xff] }
 0x323   :  { %3111 = vmatpush1.bf16.xpose.msra.mxu0 %v3110_v44  ;;  %v1004_v44 = vld [vmem:[#allocation5 + $0x19a8] sm:$0xff] }
 0x324   :  { %3113 = vmatprep.subr.bf16.mxu0 %v3112_v46  ;;  %v812_v31 = vld [vmem:[#allocation5 + $0x13a8] sm:$0xff] }
 0x325   :  { %3367 = vmatpush1.bf16.xpose.msra.mxu1 %v3366_v45  ;;  %v1012_v45 = vld [vmem:[#allocation5 + $0x19e8] sm:$0xff] }
 0x326   :  { %3369 = vmatprep.subr.bf16.mxu1 %v3368_v47  ;;  %v3386_v47 = vpack.c.bf16 %v995_v41, %v987_v40  ;;  %v820_v32 = vld [vmem:[#allocation5 + $0x13e8] sm:$0xff]  ;;  %v819_v40 = vld [vmem:[#allocation5 + $0x13e0] sm:$0xff] }
 0x327   :  { %v1068_v33 = vld [vmem:[#allocation5 + $0x1ba8] sm:$0xff]  ;;  %v1067_v41 = vld [vmem:[#allocation5 + $0x1ba0] sm:$0xff] }
 0x328   :  { %v828_v43 = vld [vmem:[#allocation5 + $0x1428] sm:$0xff] }
 0x32b   :  { %3115 = vmatpush1.bf16.xpose.msra.mxu0 %v3114_v57  ;;  %v1028_v57 = vld [vmem:[#allocation5 + $0x1a68] sm:$0xff] }
 0x32c   :  { %3117 = vmatprep.subr.bf16.mxu0 %v3116_v59  ;;  %v3390_v59 = vpack.c.bf16 %v1011_v63, %v1003_v52  ;;  %v3392_v61 = vpack.c.bf16 %v1028_v57, %v1020_v56  ;;  %v835_v52 = vld [vmem:[#allocation5 + $0x1460] sm:$0xff]  ;;  %v852_v56 = vld [vmem:[#allocation5 + $0x14e8] sm:$0xff] }
 0x32d   :  { %3371 = vmatpush1.bf16.xpose.msra.mxu1 %v3370_v58  ;;  %v3134_v58 = vpack.c.bf16 %v755_v51, %v747_v50  ;;  %v827_v51 = vld [vmem:[#allocation5 + $0x1420] sm:$0xff]  ;;  %v1100_v57 = vld [vmem:[#allocation5 + $0x1ca8] sm:$0xff] }
 0x32e   :  { %3373 = vmatprep.subr.bf16.mxu1 %v3372_v60  ;;  %v3136_v60 = vpack.c.bf16 %v772_v55, %v764_v53  ;;  %v1083_v63 = vld [vmem:[#allocation5 + $0x1c20] sm:$0xff]  ;;  %v844_v55 = vld [vmem:[#allocation5 + $0x14a8] sm:$0xff] }
 0x32f   :  { %v1091_v53 = vld [vmem:[#allocation5 + $0x1c60] sm:$0xff] }
 0x333   :  { %3119 = vmatpush1.bf16.xpose.msra.mxu0 %v3118_v5  ;;  %v1044_v5 = vld [vmem:[#allocation5 + $0x1ae8] sm:$0xff] }
 0x334   :  { %3121 = vmatprep.subr.bf16.mxu0 %v3120_v9  ;;  %v3394_v9 = vpack.c.bf16 %v1027_v1, %v1019_v6  ;;  %v3396_v11 = vpack.c.bf16 %v1044_v5, %v1036_v4  ;;  %v851_v6 = vld [vmem:[#allocation5 + $0x14e0] sm:$0xff]  ;;  %v868_v4 = vld [vmem:[#allocation5 + $0x1568] sm:$0xff] }
 0x335   :  { %3375 = vmatpush1.bf16.xpose.msra.mxu1 %v3374_v7  ;;  %v3138_v7 = vpack.c.bf16 %v771_v0, %v763_v62  ;;  %v843_v0 = vld [vmem:[#allocation5 + $0x14a0] sm:$0xff]  ;;  %v1116_v5 = vld [vmem:[#allocation5 + $0x1d28] sm:$0xff] }
 0x336   :  { %3377 = vmatprep.subr.bf16.mxu1 %v3376_v10  ;;  %v3140_v10 = vpack.c.bf16 %v788_v3, %v780_v2  ;;  %v1099_v1 = vld [vmem:[#allocation5 + $0x1ca0] sm:$0xff]  ;;  %v860_v3 = vld [vmem:[#allocation5 + $0x1528] sm:$0xff] }
 0x337   :  { %v1107_v2 = vld [vmem:[#allocation5 + $0x1ce0] sm:$0xff] }
 0x33a   :  { %1986 = vmatmul.mubr.f32.vlgmr.msra.gmra.mrb[2].mxu0 %v3724_v42 }
 0x33b   :  { %3123 = vmatpush1.bf16.xpose.msra.mxu0 %v3122_v20  ;;  %2056 = vmatprep.mubr.f32.mxu0 %v3728_v49  ;;  %v1060_v20 = vld [vmem:[#allocation5 + $0x1b68] sm:$0xff] }
 0x33c   :  { %2270 = vmatmul.mubr.f32.vlgmr.msra.gmra.mrb[2].mxu1 %v3724_v42  ;;  %3125 = vmatprep.subr.bf16.mxu0 %v3124_v22  ;;  %v731_v42 = vld [vmem:[#allocation5 + $0x1120] sm:$0xff]  ;;  %v3398_v22 = vpack.c.bf16 %v1043_v16, %v1035_v15  ;;  %v3400_v24 = vpack.c.bf16 %v1060_v20, %v1052_v19  ;;  %v884_v19 = vld [vmem:[#allocation5 + $0x15e8] sm:$0xff] }
 0x33d   :  { %3379 = vmatpush1.bf16.xpose.msra.mxu1 %v3378_v21  ;;  %2340 = vmatprep.mubr.f32.mxu1 %v3728_v49  ;;  %v3130_v46 = vpack.c.bf16 %v739_v39, %v731_v42  ;;  %v3388_v49 = vpack.c.bf16 %v1012_v45, %v1004_v44  ;;  %v3142_v21 = vpack.c.bf16 %v787_v14, %v779_v13  ;;  %v811_v39 = vld [vmem:[#allocation5 + $0x13a0] sm:$0xff]  ;;  %v836_v44 = vld [vmem:[#allocation5 + $0x1468] sm:$0xff] }
 0x33e   :  { %3381 = vmatprep.subr.bf16.mxu1 %v3380_v23  ;;  %v3144_v23 = vpack.c.bf16 %v804_v18, %v796_v17  ;;  %v1084_v45 = vld [vmem:[#allocation5 + $0x1c28] sm:$0xff]  ;;  %v859_v14 = vld [vmem:[#allocation5 + $0x1520] sm:$0xff] }
 0x33f   :  { %v867_v15 = vld [vmem:[#allocation5 + $0x1560] sm:$0xff]  ;;  %v876_v18 = vld [vmem:[#allocation5 + $0x15a8] sm:$0xff] }
 0x340   :  { %v1115_v16 = vld [vmem:[#allocation5 + $0x1d20] sm:$0xff]  ;;  %v1132_v20 = vld [vmem:[#allocation5 + $0x1da8] sm:$0xff] }
 0x341   :  { %v1123_v17 = vld [vmem:[#allocation5 + $0x1d60] sm:$0xff] }
 0x343   :  { %3127 = vmatpush1.bf16.xpose.msra.mxu0 %v3126_v34  ;;  %v1076_v34 = vld [vmem:[#allocation5 + $0x1be8] sm:$0xff] }
 0x344   :  { %3129 = vmatprep.subr.bf16.mxu0 %v3128_v36  ;;  %v3402_v36 = vpack.c.bf16 %v1059_v28, %v1051_v27  ;;  %v3404_v42 = vpack.c.bf16 %v1076_v34, %v1068_v33  ;;  %v883_v27 = vld [vmem:[#allocation5 + $0x15e0] sm:$0xff]  ;;  %v900_v33 = vld [vmem:[#allocation5 + $0x1668] sm:$0xff] }
 0x345   :  { %3383 = vmatpush1.bf16.xpose.msra.mxu1 %v3382_v35  ;;  %v3146_v35 = vpack.c.bf16 %v803_v26, %v795_v25  ;;  %v875_v26 = vld [vmem:[#allocation5 + $0x15a0] sm:$0xff]  ;;  %v1148_v34 = vld [vmem:[#allocation5 + $0x1e28] sm:$0xff] }
 0x346   :  { %3385 = vmatprep.subr.bf16.mxu1 %v3384_v38  ;;  %v3148_v38 = vpack.c.bf16 %v820_v32, %v812_v31  ;;  %v1131_v28 = vld [vmem:[#allocation5 + $0x1da0] sm:$0xff]  ;;  %v892_v32 = vld [vmem:[#allocation5 + $0x1628] sm:$0xff] }
 0x347   :  { %v1139_v31 = vld [vmem:[#allocation5 + $0x1de0] sm:$0xff] }
 0x34b   :  { %3131 = vmatpush1.bf16.xpose.msra.mxu0 %v3130_v46  ;;  %v1092_v46 = vld [vmem:[#allocation5 + $0x1c68] sm:$0xff] }
 0x34c   :  { %3133 = vmatprep.subr.bf16.mxu0 %v3132_v48  ;;  %v3406_v48 = vpack.c.bf16 %v1075_v54, %v1067_v41  ;;  %v3408_v50 = vpack.c.bf16 %v1092_v46, %v1084_v45  ;;  %v899_v41 = vld [vmem:[#allocation5 + $0x1660] sm:$0xff]  ;;  %v916_v45 = vld [vmem:[#allocation5 + $0x16e8] sm:$0xff] }
 0x34d   :  { %3387 = vmatpush1.bf16.xpose.msra.mxu1 %v3386_v47  ;;  %v3150_v47 = vpack.c.bf16 %v819_v40, %v811_v39  ;;  %v891_v40 = vld [vmem:[#allocation5 + $0x1620] sm:$0xff]  ;;  %v1164_v46 = vld [vmem:[#allocation5 + $0x1ea8] sm:$0xff] }
 0x34e   :  { %3389 = vmatprep.subr.bf16.mxu1 %v3388_v49  ;;  %v3152_v49 = vpack.c.bf16 %v836_v44, %v828_v43  ;;  %v1147_v54 = vld [vmem:[#allocation5 + $0x1e20] sm:$0xff]  ;;  %v908_v44 = vld [vmem:[#allocation5 + $0x16a8] sm:$0xff] }
 0x34f   :  { %v1155_v43 = vld [vmem:[#allocation5 + $0x1e60] sm:$0xff] }
 0x353   :  { %3135 = vmatpush1.bf16.xpose.msra.mxu0 %v3134_v58  ;;  %v1108_v58 = vld [vmem:[#allocation5 + $0x1ce8] sm:$0xff] }
 0x354   :  { %3137 = vmatprep.subr.bf16.mxu0 %v3136_v60  ;;  %v3410_v60 = vpack.c.bf16 %v1091_v53, %v1083_v63  ;;  %v3412_v62 = vpack.c.bf16 %v1108_v58, %v1100_v57  ;;  %v915_v63 = vld [vmem:[#allocation5 + $0x16e0] sm:$0xff]  ;;  %v932_v57 = vld [vmem:[#allocation5 + $0x1768] sm:$0xff] }
 0x355   :  { %3391 = vmatpush1.bf16.xpose.msra.mxu1 %v3390_v59  ;;  %v3154_v59 = vpack.c.bf16 %v835_v52, %v827_v51  ;;  %v907_v52 = vld [vmem:[#allocation5 + $0x16a0] sm:$0xff]  ;;  %v1180_v58 = vld [vmem:[#allocation5 + $0x1f28] sm:$0xff] }
 0x356   :  { %3393 = vmatprep.subr.bf16.mxu1 %v3392_v61  ;;  %v3156_v61 = vpack.c.bf16 %v852_v56, %v844_v55  ;;  %v1163_v53 = vld [vmem:[#allocation5 + $0x1ea0] sm:$0xff]  ;;  %v924_v56 = vld [vmem:[#allocation5 + $0x1728] sm:$0xff] }
 0x357   :  { %v1171_v55 = vld [vmem:[#allocation5 + $0x1ee0] sm:$0xff] }
 0x35b   :  { %3139 = vmatpush1.bf16.xpose.msra.mxu0 %v3138_v7  ;;  %v1124_v7 = vld [vmem:[#allocation5 + $0x1d68] sm:$0xff] }
 0x35c   :  { %3141 = vmatprep.subr.bf16.mxu0 %v3140_v10  ;;  %v3414_v10 = vpack.c.bf16 %v1107_v2, %v1099_v1  ;;  %v3416_v13 = vpack.c.bf16 %v1124_v7, %v1116_v5  ;;  %v931_v1 = vld [vmem:[#allocation5 + $0x1760] sm:$0xff]  ;;  %v948_v5 = vld [vmem:[#allocation5 + $0x17e8] sm:$0xff] }
 0x35d   :  { %3395 = vmatpush1.bf16.xpose.msra.mxu1 %v3394_v9  ;;  %v3158_v9 = vpack.c.bf16 %v851_v6, %v843_v0  ;;  %v923_v6 = vld [vmem:[#allocation5 + $0x1720] sm:$0xff]  ;;  %v1196_v7 = vld [vmem:[#allocation5 + $0x1fa8] sm:$0xff] }
 0x35e   :  { %3397 = vmatprep.subr.bf16.mxu1 %v3396_v11  ;;  %v3160_v11 = vpack.c.bf16 %v868_v4, %v860_v3  ;;  %v1179_v2 = vld [vmem:[#allocation5 + $0x1f20] sm:$0xff]  ;;  %v940_v4 = vld [vmem:[#allocation5 + $0x17a8] sm:$0xff] }
 0x35f   :  { %v1187_v3 = vld [vmem:[#allocation5 + $0x1f60] sm:$0xff] }
 0x363   :  { %3143 = vmatpush1.bf16.xpose.msra.mxu0 %v3142_v21  ;;  %v1140_v21 = vld [vmem:[#allocation5 + $0x1de8] sm:$0xff] }
 0x364   :  { %3145 = vmatprep.subr.bf16.mxu0 %v3144_v23  ;;  %v3418_v23 = vpack.c.bf16 %v1123_v17, %v1115_v16  ;;  %v3420_v25 = vpack.c.bf16 %v1140_v21, %v1132_v20  ;;  %v947_v16 = vld [vmem:[#allocation5 + $0x17e0] sm:$0xff]  ;;  %v710_v20 = vld [vmem:[#allocation5 + $0x1078] sm:$0xff] }
 0x365   :  { %3399 = vmatpush1.bf16.xpose.msra.mxu1 %v3398_v22  ;;  %v3162_v22 = vpack.c.bf16 %v867_v15, %v859_v14  ;;  %v939_v15 = vld [vmem:[#allocation5 + $0x17a0] sm:$0xff]  ;;  %v958_v21 = vld [vmem:[#allocation5 + $0x1838] sm:$0xff] }
 0x366   :  { %3401 = vmatprep.subr.bf16.mxu1 %v3400_v24  ;;  %v3164_v24 = vpack.c.bf16 %v884_v19, %v876_v18  ;;  %v1195_v17 = vld [vmem:[#allocation5 + $0x1fa0] sm:$0xff]  ;;  %v702_v19 = vld [vmem:[#allocation5 + $0x1038] sm:$0xff] }
 0x367   :  { %v1203_v18 = vld [vmem:[#allocation5 + $0x1fe0] sm:$0xff] }
 0x36b   :  { %3147 = vmatpush1.bf16.xpose.msra.mxu0 %v3146_v35  ;;  %v1156_v35 = vld [vmem:[#allocation5 + $0x1e68] sm:$0xff] }
 0x36c   :  { %3149 = vmatprep.subr.bf16.mxu0 %v3148_v38  ;;  %v3422_v38 = vpack.c.bf16 %v1139_v31, %v1131_v28  ;;  %v3424_v39 = vpack.c.bf16 %v1156_v35, %v1148_v34  ;;  %v709_v28 = vld [vmem:[#allocation5 + $0x1070] sm:$0xff]  ;;  %v726_v34 = vld [vmem:[#allocation5 + $0x10f8] sm:$0xff] }
 0x36d   :  { %3403 = vmatpush1.bf16.xpose.msra.mxu1 %v3402_v36  ;;  %v3166_v36 = vpack.c.bf16 %v883_v27, %v875_v26  ;;  %v701_v27 = vld [vmem:[#allocation5 + $0x1030] sm:$0xff]  ;;  %v974_v35 = vld [vmem:[#allocation5 + $0x18b8] sm:$0xff] }
 0x36e   :  { %3405 = vmatprep.subr.bf16.mxu1 %v3404_v42  ;;  %v3168_v42 = vpack.c.bf16 %v900_v33, %v892_v32  ;;  %v957_v31 = vld [vmem:[#allocation5 + $0x1830] sm:$0xff]  ;;  %v718_v33 = vld [vmem:[#allocation5 + $0x10b8] sm:$0xff] }
 0x36f   :  { %v965_v32 = vld [vmem:[#allocation5 + $0x1870] sm:$0xff] }
 0x373   :  { %3151 = vmatpush1.bf16.xpose.msra.mxu0 %v3150_v47  ;;  %v1172_v47 = vld [vmem:[#allocation5 + $0x1ee8] sm:$0xff] }
 0x374   :  { %3153 = vmatprep.subr.bf16.mxu0 %v3152_v49  ;;  %v3426_v49 = vpack.c.bf16 %v1155_v43, %v1147_v54  ;;  %v3428_v51 = vpack.c.bf16 %v1172_v47, %v1164_v46  ;;  %v725_v54 = vld [vmem:[#allocation5 + $0x10f0] sm:$0xff]  ;;  %v742_v46 = vld [vmem:[#allocation5 + $0x1178] sm:$0xff] }
 0x375   :  { %3407 = vmatpush1.bf16.xpose.msra.mxu1 %v3406_v48  ;;  %v3170_v48 = vpack.c.bf16 %v899_v41, %v891_v40  ;;  %v717_v41 = vld [vmem:[#allocation5 + $0x10b0] sm:$0xff]  ;;  %v990_v47 = vld [vmem:[#allocation5 + $0x1938] sm:$0xff] }
 0x376   :  { %3409 = vmatprep.subr.bf16.mxu1 %v3408_v50  ;;  %v3172_v50 = vpack.c.bf16 %v916_v45, %v908_v44  ;;  %v973_v43 = vld [vmem:[#allocation5 + $0x18b0] sm:$0xff]  ;;  %v734_v45 = vld [vmem:[#allocation5 + $0x1138] sm:$0xff] }
 0x377   :  { %v981_v44 = vld [vmem:[#allocation5 + $0x18f0] sm:$0xff] }
 0x37b   :  { %3155 = vmatpush1.bf16.xpose.msra.mxu0 %v3154_v59  ;;  %v1188_v59 = vld [vmem:[#allocation5 + $0x1f68] sm:$0xff] }
 0x37c   :  { %3157 = vmatprep.subr.bf16.mxu0 %v3156_v61  ;;  %v3430_v61 = vpack.c.bf16 %v1171_v55, %v1163_v53  ;;  %v3432_v0 = vpack.c.bf16 %v1188_v59, %v1180_v58  ;;  %v989_v53 = vld [vmem:[#allocation5 + $0x1930] sm:$0xff]  ;;  %v1006_v58 = vld [vmem:[#allocation5 + $0x19b8] sm:$0xff] }
 0x37d   :  { %3411 = vmatpush1.bf16.xpose.msra.mxu1 %v3410_v60  ;;  %v3174_v60 = vpack.c.bf16 %v915_v63, %v907_v52  ;;  %v741_v63 = vld [vmem:[#allocation5 + $0x1170] sm:$0xff]  ;;  %v1014_v59 = vld [vmem:[#allocation5 + $0x19f8] sm:$0xff] }
 0x37e   :  { %3413 = vmatprep.subr.bf16.mxu1 %v3412_v62  ;;  %v3176_v62 = vpack.c.bf16 %v932_v57, %v924_v56  ;;  %v997_v55 = vld [vmem:[#allocation5 + $0x1970] sm:$0xff]  ;;  %v750_v56 = vld [vmem:[#allocation5 + $0x11b8] sm:$0xff] }
 0x37f   :  { %v758_v57 = vld [vmem:[#allocation5 + $0x11f8] sm:$0xff] }
 0x383   :  { %3159 = vmatpush1.bf16.xpose.msra.mxu0 %v3158_v9  ;;  %v1204_v9 = vld [vmem:[#allocation5 + $0x1fe8] sm:$0xff] }
 0x384   :  { %3161 = vmatprep.subr.bf16.mxu0 %v3160_v11  ;;  %v3434_v11 = vpack.c.bf16 %v1187_v3, %v1179_v2  ;;  %v3436_v14 = vpack.c.bf16 %v1204_v9, %v1196_v7  ;;  %v1013_v2 = vld [vmem:[#allocation5 + $0x19f0] sm:$0xff]  ;;  %v766_v3 = vld [vmem:[#allocation5 + $0x1238] sm:$0xff] }
 0x385   :  { %3415 = vmatpush1.bf16.xpose.msra.mxu1 %v3414_v10  ;;  %v3178_v10 = vpack.c.bf16 %v931_v1, %v923_v6  ;;  %v757_v6 = vld [vmem:[#allocation5 + $0x11f0] sm:$0xff]  ;;  %v1030_v7 = vld [vmem:[#allocation5 + $0x1a78] sm:$0xff] }
 0x386   :  { %3417 = vmatprep.subr.bf16.mxu1 %v3416_v13  ;;  %v3180_v13 = vpack.c.bf16 %v948_v5, %v940_v4  ;;  %v1005_v1 = vld [vmem:[#allocation5 + $0x19b0] sm:$0xff]  ;;  %v774_v4 = vld [vmem:[#allocation5 + $0x1278] sm:$0xff] }
 0x387   :  { %v1022_v5 = vld [vmem:[#allocation5 + $0x1a38] sm:$0xff] }
 0x38b   :  { %3163 = vmatpush1.bf16.xpose.msra.mxu0 %v3162_v22  ;;  %v966_v22 = vld [vmem:[#allocation5 + $0x1878] sm:$0xff] }
 0x38c   :  { %3165 = vmatprep.subr.bf16.mxu0 %v3164_v24  ;;  %v3438_v24 = vpack.c.bf16 %v1203_v18, %v1195_v17  ;;  %v3440_v26 = vpack.c.bf16 %v966_v22, %v958_v21  ;;  %v1029_v17 = vld [vmem:[#allocation5 + $0x1a70] sm:$0xff]  ;;  %v782_v18 = vld [vmem:[#allocation5 + $0x12b8] sm:$0xff] }
 0x38d   :  { %3419 = vmatpush1.bf16.xpose.msra.mxu1 %v3418_v23  ;;  %v3182_v23 = vpack.c.bf16 %v947_v16, %v939_v15  ;;  %v773_v15 = vld [vmem:[#allocation5 + $0x1270] sm:$0xff]  ;;  %v1046_v21 = vld [vmem:[#allocation5 + $0x1af8] sm:$0xff] }
 0x38e   :  { %3421 = vmatprep.subr.bf16.mxu1 %v3420_v25  ;;  %v3184_v25 = vpack.c.bf16 %v710_v20, %v702_v19  ;;  %v1021_v16 = vld [vmem:[#allocation5 + $0x1a30] sm:$0xff]  ;;  %v790_v19 = vld [vmem:[#allocation5 + $0x12f8] sm:$0xff] }
 0x38f   :  { %v1038_v20 = vld [vmem:[#allocation5 + $0x1ab8] sm:$0xff] }
 0x393   :  { %3167 = vmatpush1.bf16.xpose.msra.mxu0 %v3166_v36  ;;  %v982_v36 = vld [vmem:[#allocation5 + $0x18f8] sm:$0xff] }
 0x394   :  { %3169 = vmatprep.subr.bf16.mxu0 %v3168_v42  ;;  %v3442_v42 = vpack.c.bf16 %v965_v32, %v957_v31  ;;  %v3444_v40 = vpack.c.bf16 %v982_v36, %v974_v35  ;;  %v1045_v31 = vld [vmem:[#allocation5 + $0x1af0] sm:$0xff]  ;;  %v798_v32 = vld [vmem:[#allocation5 + $0x1338] sm:$0xff] }
 0x395   :  { %3423 = vmatpush1.bf16.xpose.msra.mxu1 %v3422_v38  ;;  %v3186_v38 = vpack.c.bf16 %v709_v28, %v701_v27  ;;  %v789_v27 = vld [vmem:[#allocation5 + $0x12f0] sm:$0xff]  ;;  %v1062_v35 = vld [vmem:[#allocation5 + $0x1b78] sm:$0xff] }
 0x396   :  { %3425 = vmatprep.subr.bf16.mxu1 %v3424_v39  ;;  %v3188_v39 = vpack.c.bf16 %v726_v34, %v718_v33  ;;  %v1037_v28 = vld [vmem:[#allocation5 + $0x1ab0] sm:$0xff]  ;;  %v806_v33 = vld [vmem:[#allocation5 + $0x1378] sm:$0xff] }
 0x397   :  { %v1054_v34 = vld [vmem:[#allocation5 + $0x1b38] sm:$0xff] }
 0x39b   :  { %3171 = vmatpush1.bf16.xpose.msra.mxu0 %v3170_v48  ;;  %v998_v48 = vld [vmem:[#allocation5 + $0x1978] sm:$0xff] }
 0x39c   :  { %3173 = vmatprep.subr.bf16.mxu0 %v3172_v50  ;;  %v3446_v50 = vpack.c.bf16 %v981_v44, %v973_v43  ;;  %v3448_v52 = vpack.c.bf16 %v998_v48, %v990_v47  ;;  %v1061_v43 = vld [vmem:[#allocation5 + $0x1b70] sm:$0xff]  ;;  %v814_v44 = vld [vmem:[#allocation5 + $0x13b8] sm:$0xff] }
 0x39d   :  { %3427 = vmatpush1.bf16.xpose.msra.mxu1 %v3426_v49  ;;  %v3190_v49 = vpack.c.bf16 %v725_v54, %v717_v41  ;;  %v805_v41 = vld [vmem:[#allocation5 + $0x1370] sm:$0xff]  ;;  %v1078_v47 = vld [vmem:[#allocation5 + $0x1bf8] sm:$0xff] }
 0x39e   :  { %3429 = vmatprep.subr.bf16.mxu1 %v3428_v51  ;;  %v3192_v51 = vpack.c.bf16 %v742_v46, %v734_v45  ;;  %v1053_v54 = vld [vmem:[#allocation5 + $0x1b30] sm:$0xff]  ;;  %v822_v45 = vld [vmem:[#allocation5 + $0x13f8] sm:$0xff] }
 0x39f   :  { %v1070_v46 = vld [vmem:[#allocation5 + $0x1bb8] sm:$0xff] }
 0x3a3   :  { %3175 = vmatpush1.bf16.xpose.msra.mxu0 %v3174_v60 }
 0x3a4   :  { %3177 = vmatprep.subr.bf16.mxu0 %v3176_v62  ;;  %v3196_v62 = vpack.c.bf16 %v758_v57, %v750_v56  ;;  %v838_v56 = vld [vmem:[#allocation5 + $0x1478] sm:$0xff] }
 0x3a5   :  { %3431 = vmatpush1.bf16.xpose.msra.mxu1 %v3430_v61  ;;  %v3450_v61 = vpack.c.bf16 %v997_v55, %v989_v53  ;;  %v1077_v53 = vld [vmem:[#allocation5 + $0x1bf0] sm:$0xff]  ;;  %v830_v55 = vld [vmem:[#allocation5 + $0x1438] sm:$0xff] }
 0x3a6   :  { %3433 = vmatprep.subr.bf16.mxu1 %v3432_v0  ;;  %v749_v0 = vld [vmem:[#allocation5 + $0x11b0] sm:$0xff]  ;;  %v1086_v57 = vld [vmem:[#allocation5 + $0x1c38] sm:$0xff] }
 0x3a7   :  { %v3198_v9 = vpack.c.bf16 %v757_v6, %v749_v0  ;;  %v837_v0 = vld [vmem:[#allocation5 + $0x1470] sm:$0xff] }
 0x3a8   :  { %v1085_v6 = vld [vmem:[#allocation5 + $0x1c30] sm:$0xff] }
 0x3ab   :  { %3179 = vmatpush1.bf16.xpose.msra.mxu0 %v3178_v10  ;;  %v3454_v10 = vpack.c.bf16 %v1013_v2, %v1005_v1  ;;  %v1093_v1 = vld [vmem:[#allocation5 + $0x1c70] sm:$0xff]  ;;  %v846_v2 = vld [vmem:[#allocation5 + $0x14b8] sm:$0xff] }
 0x3ac   :  { %3181 = vmatprep.subr.bf16.mxu0 %v3180_v13  ;;  %v3456_v13 = vpack.c.bf16 %v1030_v7, %v1022_v5  ;;  %v1110_v5 = vld [vmem:[#allocation5 + $0x1cf8] sm:$0xff] }
 0x3ad   :  { %3435 = vmatpush1.bf16.xpose.msra.mxu1 %v3434_v11  ;;  %v3200_v11 = vpack.c.bf16 %v774_v4, %v766_v3  ;;  %v854_v3 = vld [vmem:[#allocation5 + $0x14f8] sm:$0xff] }
 0x3ae   :  { %3437 = vmatprep.subr.bf16.mxu1 %v3436_v14  ;;  %v765_v14 = vld [vmem:[#allocation5 + $0x1230] sm:$0xff]  ;;  %v1102_v4 = vld [vmem:[#allocation5 + $0x1cb8] sm:$0xff] }
 0x3af   :  { %v3202_v22 = vpack.c.bf16 %v773_v15, %v765_v14  ;;  %v853_v14 = vld [vmem:[#allocation5 + $0x14f0] sm:$0xff] }
 0x3b0   :  { %v1101_v15 = vld [vmem:[#allocation5 + $0x1cb0] sm:$0xff] }
 0x3b3   :  { %3183 = vmatpush1.bf16.xpose.msra.mxu0 %v3182_v23  ;;  %v3458_v23 = vpack.c.bf16 %v1029_v17, %v1021_v16  ;;  %v1109_v16 = vld [vmem:[#allocation5 + $0x1cf0] sm:$0xff]  ;;  %v862_v17 = vld [vmem:[#allocation5 + $0x1538] sm:$0xff] }
 0x3b4   :  { %3185 = vmatprep.subr.bf16.mxu0 %v3184_v25  ;;  %v3460_v25 = vpack.c.bf16 %v1046_v21, %v1038_v20  ;;  %v1126_v20 = vld [vmem:[#allocation5 + $0x1d78] sm:$0xff] }
 0x3b5   :  { %3439 = vmatpush1.bf16.xpose.msra.mxu1 %v3438_v24  ;;  %v3204_v24 = vpack.c.bf16 %v790_v19, %v782_v18  ;;  %v870_v18 = vld [vmem:[#allocation5 + $0x1578] sm:$0xff] }
 0x3b6   :  { %3441 = vmatprep.subr.bf16.mxu1 %v3440_v26  ;;  %v781_v26 = vld [vmem:[#allocation5 + $0x12b0] sm:$0xff]  ;;  %v1118_v19 = vld [vmem:[#allocation5 + $0x1d38] sm:$0xff] }
 0x3b7   :  { %v3206_v36 = vpack.c.bf16 %v789_v27, %v781_v26  ;;  %v869_v26 = vld [vmem:[#allocation5 + $0x1570] sm:$0xff] }
 0x3b8   :  { %v1117_v27 = vld [vmem:[#allocation5 + $0x1d30] sm:$0xff] }
 0x3ba   :  { %2057 = vmatmul.mubr.f32.vlgmr.msra.gmra.mrb[2].mxu0 %v3734_v30 }
 0x3bb   :  { %3187 = vmatpush1.bf16.xpose.msra.mxu0 %v3186_v38  ;;  %2127 = vmatprep.mubr.f32.mxu0 %v3738_v37  ;;  %v3462_v38 = vpack.c.bf16 %v1045_v31, %v1037_v28  ;;  %v1125_v28 = vld [vmem:[#allocation5 + $0x1d70] sm:$0xff]  ;;  %v878_v31 = vld [vmem:[#allocation5 + $0x15b8] sm:$0xff] }
 0x3bc   :  { %2341 = vmatmul.mubr.f32.vlgmr.msra.gmra.mrb[2].mxu1 %v3734_v30  ;;  %3189 = vmatprep.subr.bf16.mxu0 %v3188_v39  ;;  %v733_v30 = vld [vmem:[#allocation5 + $0x1130] sm:$0xff]  ;;  %v3464_v39 = vpack.c.bf16 %v1062_v35, %v1054_v34  ;;  %v1142_v34 = vld [vmem:[#allocation5 + $0x1df8] sm:$0xff] }
 0x3bd   :  { %3443 = vmatpush1.bf16.xpose.msra.mxu1 %v3442_v42  ;;  %2411 = vmatprep.mubr.f32.mxu1 %v3738_v37  ;;  %v3194_v60 = vpack.c.bf16 %v741_v63, %v733_v30  ;;  %v3452_v37 = vpack.c.bf16 %v1014_v59, %v1006_v58  ;;  %v3208_v42 = vpack.c.bf16 %v806_v33, %v798_v32  ;;  %v821_v30 = vld [vmem:[#allocation5 + $0x13f0] sm:$0xff]  ;;  %v1094_v58 = vld [vmem:[#allocation5 + $0x1c78] sm:$0xff] }
 0x3be   :  { %3445 = vmatprep.subr.bf16.mxu1 %v3444_v40  ;;  %v797_v40 = vld [vmem:[#allocation5 + $0x1330] sm:$0xff]  ;;  %v886_v32 = vld [vmem:[#allocation5 + $0x15f8] sm:$0xff] }
 0x3bf   :  { %v3210_v48 = vpack.c.bf16 %v805_v41, %v797_v40  ;;  %v1069_v63 = vld [vmem:[#allocation5 + $0x1bb0] sm:$0xff]  ;;  %v1134_v33 = vld [vmem:[#allocation5 + $0x1db8] sm:$0xff] }
 0x3c0   :  { %v885_v40 = vld [vmem:[#allocation5 + $0x15f0] sm:$0xff] }
 0x3c1   :  { %v1133_v41 = vld [vmem:[#allocation5 + $0x1db0] sm:$0xff] }
 0x3c3   :  { %3191 = vmatpush1.bf16.xpose.msra.mxu0 %v3190_v49  ;;  %v3466_v49 = vpack.c.bf16 %v1061_v43, %v1053_v54  ;;  %v1141_v54 = vld [vmem:[#allocation5 + $0x1df0] sm:$0xff]  ;;  %v894_v43 = vld [vmem:[#allocation5 + $0x1638] sm:$0xff] }
 0x3c4   :  { %3193 = vmatprep.subr.bf16.mxu0 %v3192_v51  ;;  %v3468_v51 = vpack.c.bf16 %v1078_v47, %v1070_v46  ;;  %v1158_v46 = vld [vmem:[#allocation5 + $0x1e78] sm:$0xff] }
 0x3c5   :  { %3447 = vmatpush1.bf16.xpose.msra.mxu1 %v3446_v50  ;;  %v3212_v50 = vpack.c.bf16 %v822_v45, %v814_v44  ;;  %v902_v44 = vld [vmem:[#allocation5 + $0x1678] sm:$0xff] }
 0x3c6   :  { %3449 = vmatprep.subr.bf16.mxu1 %v3448_v52  ;;  %v813_v52 = vld [vmem:[#allocation5 + $0x13b0] sm:$0xff]  ;;  %v1150_v45 = vld [vmem:[#allocation5 + $0x1e38] sm:$0xff] }
 0x3c7   :  { %v3214_v59 = vpack.c.bf16 %v821_v30, %v813_v52  ;;  %v901_v52 = vld [vmem:[#allocation5 + $0x1670] sm:$0xff] }
 0x3c8   :  { %v1149_v30 = vld [vmem:[#allocation5 + $0x1e30] sm:$0xff] }
 0x3cb   :  { %3195 = vmatpush1.bf16.xpose.msra.mxu0 %v3194_v60  ;;  %v3470_v60 = vpack.c.bf16 %v1077_v53, %v1069_v63  ;;  %v1157_v63 = vld [vmem:[#allocation5 + $0x1e70] sm:$0xff]  ;;  %v910_v53 = vld [vmem:[#allocation5 + $0x16b8] sm:$0xff] }
 0x3cc   :  { %3197 = vmatprep.subr.bf16.mxu0 %v3196_v62  ;;  %v3472_v62 = vpack.c.bf16 %v1094_v58, %v1086_v57  ;;  %v1174_v57 = vld [vmem:[#allocation5 + $0x1ef8] sm:$0xff] }
 0x3cd   :  { %3451 = vmatpush1.bf16.xpose.msra.mxu1 %v3450_v61  ;;  %v3216_v61 = vpack.c.bf16 %v838_v56, %v830_v55  ;;  %v918_v55 = vld [vmem:[#allocation5 + $0x16f8] sm:$0xff] }
 0x3ce   :  { %3453 = vmatprep.subr.bf16.mxu1 %v3452_v37  ;;  %v829_v37 = vld [vmem:[#allocation5 + $0x1430] sm:$0xff]  ;;  %v1166_v56 = vld [vmem:[#allocation5 + $0x1eb8] sm:$0xff] }
 0x3cf   :  { %v3218_v7 = vpack.c.bf16 %v837_v0, %v829_v37  ;;  %v917_v37 = vld [vmem:[#allocation5 + $0x16f0] sm:$0xff] }
 0x3d0   :  { %v1165_v0 = vld [vmem:[#allocation5 + $0x1eb0] sm:$0xff] }
 0x3d3   :  { %3199 = vmatpush1.bf16.xpose.msra.mxu0 %v3198_v9  ;;  %v3474_v9 = vpack.c.bf16 %v1093_v1, %v1085_v6  ;;  %v1173_v6 = vld [vmem:[#allocation5 + $0x1ef0] sm:$0xff]  ;;  %v926_v1 = vld [vmem:[#allocation5 + $0x1738] sm:$0xff] }
 0x3d4   :  { %3201 = vmatprep.subr.bf16.mxu0 %v3200_v11  ;;  %v3476_v11 = vpack.c.bf16 %v1110_v5, %v1102_v4  ;;  %v1190_v4 = vld [vmem:[#allocation5 + $0x1f78] sm:$0xff] }
 0x3d5   :  { %3455 = vmatpush1.bf16.xpose.msra.mxu1 %v3454_v10  ;;  %v3220_v10 = vpack.c.bf16 %v854_v3, %v846_v2  ;;  %v934_v2 = vld [vmem:[#allocation5 + $0x1778] sm:$0xff] }
 0x3d6   :  { %3457 = vmatprep.subr.bf16.mxu1 %v3456_v13  ;;  %v845_v13 = vld [vmem:[#allocation5 + $0x14b0] sm:$0xff]  ;;  %v1182_v3 = vld [vmem:[#allocation5 + $0x1f38] sm:$0xff] }
 0x3d7   :  { %v3222_v21 = vpack.c.bf16 %v853_v14, %v845_v13  ;;  %v933_v13 = vld [vmem:[#allocation5 + $0x1770] sm:$0xff] }
 0x3d8   :  { %v1181_v14 = vld [vmem:[#allocation5 + $0x1f30] sm:$0xff] }
 0x3db   :  { %3203 = vmatpush1.bf16.xpose.msra.mxu0 %v3202_v22  ;;  %v3478_v22 = vpack.c.bf16 %v1109_v16, %v1101_v15  ;;  %v1189_v15 = vld [vmem:[#allocation5 + $0x1f70] sm:$0xff]  ;;  %v942_v16 = vld [vmem:[#allocation5 + $0x17b8] sm:$0xff] }
 0x3dc   :  { %3205 = vmatprep.subr.bf16.mxu0 %v3204_v24  ;;  %v3480_v24 = vpack.c.bf16 %v1126_v20, %v1118_v19  ;;  %v1206_v19 = vld [vmem:[#allocation5 + $0x1ff8] sm:$0xff] }
 0x3dd   :  { %3459 = vmatpush1.bf16.xpose.msra.mxu1 %v3458_v23  ;;  %v3224_v23 = vpack.c.bf16 %v870_v18, %v862_v17  ;;  %v950_v17 = vld [vmem:[#allocation5 + $0x17f8] sm:$0xff] }
 0x3de   :  { %3461 = vmatprep.subr.bf16.mxu1 %v3460_v25  ;;  %v861_v25 = vld [vmem:[#allocation5 + $0x1530] sm:$0xff]  ;;  %v1198_v18 = vld [vmem:[#allocation5 + $0x1fb8] sm:$0xff] }
 0x3df   :  { %v3226_v35 = vpack.c.bf16 %v869_v26, %v861_v25  ;;  %v949_v25 = vld [vmem:[#allocation5 + $0x17f0] sm:$0xff] }
 0x3e0   :  { %v1197_v26 = vld [vmem:[#allocation5 + $0x1fb0] sm:$0xff] }
 0x3e3   :  { %3207 = vmatpush1.bf16.xpose.msra.mxu0 %v3206_v36  ;;  %v3482_v36 = vpack.c.bf16 %v1125_v28, %v1117_v27  ;;  %v1205_v27 = vld [vmem:[#allocation5 + $0x1ff0] sm:$0xff] }
 0x3e4   :  { %3209 = vmatprep.subr.bf16.mxu0 %v3208_v42  ;;  %v3484_v42 = vpack.c.bf16 %v1142_v34, %v1134_v33  ;;  %v1235_v33 = vsub.s32 6, %v3754_v29  ;;  %v1231_v34 = vsub.s32 5, %v3754_v29 }
 0x3e5   :  { %3463 = vmatpush1.bf16.xpose.msra.mxu1 %v3462_v38  ;;  %v3228_v38 = vpack.c.bf16 %v886_v32, %v878_v31  ;;  %v3502_v31 = vpack.c.bf16 %v1205_v27, %v1197_v26  ;;  %v1227_v32 = vsub.s32 4, %v3754_v29 }
 0x3e6   :  { %3465 = vmatprep.subr.bf16.mxu1 %v3464_v39  ;;  %v877_v39 = vld [vmem:[#allocation5 + $0x15b0] sm:$0xff] }
 0x3e7   :  { %v3230_v47 = vpack.c.bf16 %v885_v40, %v877_v39 }
 0x3eb   :  { %3211 = vmatpush1.bf16.xpose.msra.mxu0 %v3210_v48  ;;  %v3486_v48 = vpack.c.bf16 %v1141_v54, %v1133_v41 }
 0x3ec   :  { %3213 = vmatprep.subr.bf16.mxu0 %v3212_v50  ;;  %v3488_v50 = vpack.c.bf16 %v1158_v46, %v1150_v45 }
 0x3ed   :  { %3467 = vmatpush1.bf16.xpose.msra.mxu1 %v3466_v49  ;;  %v3232_v49 = vpack.c.bf16 %v902_v44, %v894_v43 }
 0x3ee   :  { %3469 = vmatprep.subr.bf16.mxu1 %v3468_v51  ;;  %v893_v51 = vld [vmem:[#allocation5 + $0x1630] sm:$0xff] }
 0x3ef   :  { %v3234_v58 = vpack.c.bf16 %v901_v52, %v893_v51 }
 0x3f3   :  { %3215 = vmatpush1.bf16.xpose.msra.mxu0 %v3214_v59  ;;  %v3490_v59 = vpack.c.bf16 %v1157_v63, %v1149_v30 }
 0x3f4   :  { %3217 = vmatprep.subr.bf16.mxu0 %v3216_v61  ;;  %v3492_v61 = vpack.c.bf16 %v1174_v57, %v1166_v56 }
 0x3f5   :  { %3471 = vmatpush1.bf16.xpose.msra.mxu1 %v3470_v60  ;;  %v3236_v60 = vpack.c.bf16 %v918_v55, %v910_v53 }
 0x3f6   :  { %3473 = vmatprep.subr.bf16.mxu1 %v3472_v62  ;;  %v909_v62 = vld [vmem:[#allocation5 + $0x16b0] sm:$0xff] }
 0x3f7   :  { %v3238_v5 = vpack.c.bf16 %v917_v37, %v909_v62 }
 0x3fb   :  { %3219 = vmatpush1.bf16.xpose.msra.mxu0 %v3218_v7  ;;  %v3494_v7 = vpack.c.bf16 %v1173_v6, %v1165_v0 }
 0x3fc   :  { %3221 = vmatprep.subr.bf16.mxu0 %v3220_v10  ;;  %v3496_v10 = vpack.c.bf16 %v1190_v4, %v1182_v3 }
 0x3fd   :  { %3475 = vmatpush1.bf16.xpose.msra.mxu1 %v3474_v9  ;;  %v3240_v9 = vpack.c.bf16 %v934_v2, %v926_v1 }
 0x3fe   :  { %3477 = vmatprep.subr.bf16.mxu1 %v3476_v11  ;;  %v925_v11 = vld [vmem:[#allocation5 + $0x1730] sm:$0xff] }
 0x3ff   :  { %v3242_v20 = vpack.c.bf16 %v933_v13, %v925_v11 }
 0x403   :  { %3223 = vmatpush1.bf16.xpose.msra.mxu0 %v3222_v21  ;;  %v3498_v21 = vpack.c.bf16 %v1189_v15, %v1181_v14 }
 0x404   :  { %3225 = vmatprep.subr.bf16.mxu0 %v3224_v23  ;;  %v3500_v23 = vpack.c.bf16 %v1206_v19, %v1198_v18 }
 0x405   :  { %3479 = vmatpush1.bf16.xpose.msra.mxu1 %v3478_v22  ;;  %v3244_v22 = vpack.c.bf16 %v950_v17, %v942_v16 }
 0x406   :  { %3481 = vmatprep.subr.bf16.mxu1 %v3480_v24  ;;  %v941_v24 = vld [vmem:[#allocation5 + $0x17b0] sm:$0xff] }
 0x407   :  { %v3246_v28 = vpack.c.bf16 %v949_v25, %v941_v24 }
 0x40b   :  { %3227 = vmatpush1.bf16.xpose.msra.mxu0 %v3226_v35  ;;  %v1239_v35 = vsub.s32 7, %v3754_v29 }
 0x40c   :  { %3229 = vmatprep.subr.bf16.mxu0 %v3228_v38 }
 0x40d   :  { %3483 = vmatpush1.bf16.xpose.msra.mxu1 %v3482_v36  ;;  %v3543_v36 = vld [vmem:[#allocation7] sm:$0xff] }
 0x40e   :  { %3485 = vmatprep.subr.bf16.mxu1 %v3484_v42  ;;  %v1228_v38 = vrot.slane %v3543_v36, %v1227_v32  ;;  %v1236_v42 = vrot.slane %v3543_v36, %v1235_v33  ;;  %v1232_v39 = vrot.slane %v3543_v36, %v1231_v34  ;;  %v1240_v40 = vrot.slane %v3543_v36, %v1239_v35 }
 0x413   :  { %3231 = vmatpush1.bf16.xpose.msra.mxu0 %v3230_v47 }
 0x414   :  { %3233 = vmatprep.subr.bf16.mxu0 %v3232_v49 }
 0x415   :  { %3487 = vmatpush1.bf16.xpose.msra.mxu1 %v3486_v48 }
 0x416   :  { %3489 = vmatprep.subr.bf16.mxu1 %v3488_v50 }
 0x41b   :  { %3235 = vmatpush1.bf16.xpose.msra.mxu0 %v3234_v58 }
 0x41c   :  { %3237 = vmatprep.subr.bf16.mxu0 %v3236_v60 }
 0x41d   :  { %3491 = vmatpush1.bf16.xpose.msra.mxu1 %v3490_v59 }
 0x41e   :  { %3493 = vmatprep.subr.bf16.mxu1 %v3492_v61 }
 0x423   :  { %3239 = vmatpush1.bf16.xpose.msra.mxu0 %v3238_v5 }
 0x424   :  { %3241 = vmatprep.subr.bf16.mxu0 %v3240_v9 }
 0x425   :  { %3495 = vmatpush1.bf16.xpose.msra.mxu1 %v3494_v7 }
 0x426   :  { %3497 = vmatprep.subr.bf16.mxu1 %v3496_v10 }
 0x42b   :  { %3243 = vmatpush1.bf16.xpose.msra.mxu0 %v3242_v20 }
 0x42c   :  { %3245 = vmatprep.subr.bf16.mxu0 %v3244_v22 }
 0x42d   :  { %3499 = vmatpush1.bf16.xpose.msra.mxu1 %v3498_v21 }
 0x42e   :  { %3501 = vmatprep.subr.bf16.mxu1 %v3500_v23 }
 0x433   :  { %3247 = vmatpush1.bf16.xpose.msra.mxu0 %v3246_v28 }
 0x435   :  { %3503 = vmatpush1.bf16.xpose.msra.mxu1 %v3502_v31 }
 0x43a   :  { %2128 = vmatmul.mubr.f32.vlgmr.msra.gmra.mrb[2].mxu0 %v3744_v12 }
 0x43c   :  { %2412 = vmatmul.mubr.f32.vlgmr.msra.gmra.mrb[2].mxu1 %v3744_v12 }
 0x50d   :  { %v2129_v41 = vpop.f32.mrb[2].mxu0 }
 0x50e   :  { %v3508_v54 = vadd.f32 %v2129_v41, %v1228_v38  ;;  %v2131_v44 = vpop.f32.mrb[3].mxu0 }
 0x50f   :  { %v2413_v43 = vpop.f32.mrb[2].mxu1  ;;  %v3509_v46 = vadd.f32 %v2131_v44, %v1232_v39 }
 0x510   :  { %v3510_v45 = vadd.f32 %v2413_v43, %v1236_v42  ;;  %v2415_v12 = vpop.f32.mrb[3].mxu1 }
 0x511   :  { %v3511_v47 = vadd.f32 %v2415_v12, %v1240_v40  ;;  %v2443_v48 = vcombine.low %v3508_v54, %v3509_v46 }
 0x513   :  { %v2444_v49 = vcombine.low %v3510_v45, %v3511_v47  ;;  %v2451_v50 = vrot.slane %v2443_v48, %v3761_v8 }
 0x515   :  { %v2458_v29 = vrot.slane %v2444_v49, %v3761_v8 }
 0x517   :  { %v2459_v51 = vcombine.low %v2451_v50, %v2458_v29 }
 0x519   :  { %2463 = vst [vmem:[#allocation8 + $0x8] sm:$0xff] %v2459_v51 }
 0x51a   :  { %3621 = shalt.err (!%p3618_p0)
}
 0x51b   :  { %s3622_s25 = scalar_lea.hbm %s3796_s3, 256 }
 0x51c   :  { %p3623_p1 = scmp.ne.s32.totalorder %s3796_s3, %s3622_s25  ;;  %p3626_p2 = scmp.lt.u32.totalorder %s3622_s25, %s3796_s3 }
 0x51e   :  { %p3628_p3 = pnand %p3626_p2, %p3623_p1 }
 0x520   :  { %3631 = shalt.err (!%p3628_p3)
}
 0x521   :  { %2473 = dma.vmem_to_hbm [thread:$0]  %s2471_s21, 256, %s3796_s3, [#allocation4]  }
 0x522   :  { %3636 = dma.done.wait [#allocation4], 256  }
 0x523   :  { %3637 = vsyncadd [#allocation4], 4294967040 }
 0x524   :  { %2477 = vsyncpa [#allocation3], 1 }
 0x525   :  { %2478 = vsyncpa [#allocation6], 1 }
 0x526   :  { %2479 = vsyncpa [#allocation4], 1 }

</bundles_post_ra>
